<compile_context>
chip_gen: v7x
topology: tpu7x:2x2x1
jax: 0.10.0
libtpu: 0.0.40
codegen_flags: <defaults>
</compile_context>

<pallas_src>
import math

import jax
import jax.numpy as jnp
from jax.experimental import pallas as pl
from jax.experimental.pallas import tpu as pltpu


def _generator_kernel(
    zc_ref,        # (B, 20)      bf16, VMEM
    w1_ref,        # (20, 128)    bf16, VMEM
    w2_ref,        # (128, 256)   bf16, VMEM (BN folded)
    w3_ref,        # (256, 512)   bf16, VMEM (BN folded)
    w4q_hbm,       # (512, 1024)  int8, HBM  (BN folded, per-col quantized)
    w5q_hbm,       # (1024, 784)  int8, HBM  (per-col quantized)
    bias_ref,      # (7, width)   f32,  VMEM: rows = b1..b5, s4, s5
    o_ref,         # (B, 784)     f32,  VMEM
    w4_vmem,       # (512, 1024)  int8 scratch
    w5_vmem,       # (1024, 784)  int8 scratch
    sem,           # DMA semaphores, shape (2,)
):
    """Whole forward pass in one invocation; big-weight DMAs overlapped."""
    dt = w1_ref.dtype  # MXU compute dtype (bf16); accumulation stays f32.

    # Kick off the dominant layer-4/5 weight DMAs immediately so they overlap
    # the (cheap) layer 1-3 compute instead of serializing in front of it.
    cp4 = pltpu.make_async_copy(w4q_hbm, w4_vmem, sem.at[0])
    cp5 = pltpu.make_async_copy(w5q_hbm, w5_vmem, sem.at[1])
    cp4.start()
    cp5.start()

    n1 = w1_ref.shape[1]
    n2 = w2_ref.shape[1]
    n3 = w3_ref.shape[1]
    n4 = w4_vmem.shape[1]
    n5 = w5_vmem.shape[1]

    # Linear(noise+classes, 128) + LeakyReLU(0.2)       (no BatchNorm)
    h = jnp.dot(zc_ref[...], w1_ref[...], preferred_element_type=jnp.float32)
    h = h + bias_ref[0:1, 0:n1]
    h = jnp.maximum(h, 0.2 * h)

    # Linear(128, 256) [BN folded] + LeakyReLU(0.2)
    h = jnp.dot(h.astype(dt), w2_ref[...], preferred_element_type=jnp.float32)
    h = h + bias_ref[1:2, 0:n2]
    h = jnp.maximum(h, 0.2 * h)

    # Linear(256, 512) [BN folded] + LeakyReLU(0.2)
    h = jnp.dot(h.astype(dt), w3_ref[...], preferred_element_type=jnp.float32)
    h = h + bias_ref[2:3, 0:n3]
    h = jnp.maximum(h, 0.2 * h)

    # Linear(512, 1024) [BN folded, int8 weight-only] + LeakyReLU(0.2)
    cp4.wait()
    w4 = w4_vmem[...].astype(jnp.float32).astype(dt)   # int8 values exact in bf16
    h = jnp.dot(h.astype(dt), w4, preferred_element_type=jnp.float32)
    h = h * bias_ref[5:6, 0:n4] + bias_ref[3:4, 0:n4]  # per-channel scale + bias
    h = jnp.maximum(h, 0.2 * h)

    # Linear(1024, H*W) [int8 weight-only] + Tanh
    cp5.wait()
    w5 = w5_vmem[...].astype(jnp.float32).astype(dt)
    h = jnp.dot(h.astype(dt), w5, preferred_element_type=jnp.float32)
    h = h * bias_ref[6:7, 0:n5] + bias_ref[4:5, 0:n5]
    o_ref[...] = jnp.tanh(h).astype(o_ref.dtype)


def scitator_c_generator(z, c_one_hot, fused_params, image_resolution=(28, 28)):
    """z: (B, noise_dim) f32; c_one_hot: (B, num_classes).

    `fused_params` comes from `fold_params` (BatchNorm folded into the Linear
    weights, w1-w3 in bf16, w4/w5 weight-only int8 with per-channel scales,
    biases + scales coalesced into one f32 blob).
    Returns images of shape (B, 1, H, W), f32 in (-1, 1).
    """
    p = fused_params
    B = z.shape[0]
    H, W = image_resolution
    out_dim = p["w5q"].shape[1]
    dt = p["w1"].dtype

    # concat(z, one_hot) once on the host side -> single (B, 20) kernel operand.
    zc = jnp.concatenate([z, c_one_hot.astype(z.dtype)], axis=1).astype(dt)

    args = (zc, p["w1"], p["w2"], p["w3"], p["w4q"], p["w5q"], p["bias"])

    vmem = pltpu.MemorySpace.VMEM
    in_specs = [
        pl.BlockSpec(memory_space=vmem),    # zc
        pl.BlockSpec(memory_space=vmem),    # w1
        pl.BlockSpec(memory_space=vmem),    # w2
        pl.BlockSpec(memory_space=vmem),    # w3
        pl.BlockSpec(memory_space=pl.ANY),  # w4q stays in HBM; DMA'd in-kernel
        pl.BlockSpec(memory_space=pl.ANY),  # w5q stays in HBM; DMA'd in-kernel
        pl.BlockSpec(memory_space=vmem),    # bias/scale blob
    ]

    # No grid: single kernel invocation, small operands whole-array resident in
    # VMEM; the two big weights are streamed concurrently with early layers.
    out = pl.pallas_call(
        _generator_kernel,
        out_shape=jax.ShapeDtypeStruct((B, out_dim), jnp.float32),
        in_specs=in_specs,
        out_specs=pl.BlockSpec(memory_space=vmem),
        scratch_shapes=[
            pltpu.VMEM(p["w4q"].shape, p["w4q"].dtype),
            pltpu.VMEM(p["w5q"].shape, p["w5q"].dtype),
            pltpu.SemaphoreType.DMA((2,)),
        ],
    )(*args)

    return out.reshape(B, 1, H, W)


# ----------------------------------------------------------------------------
# Parameter construction / BatchNorm folding / weight-only quantization
# ----------------------------------------------------------------------------

def init_params(key, noise_dim, num_classes, image_resolution=(28, 28)):
    """PyTorch-style Linear init + nontrivial BatchNorm (eval) statistics."""
    dims = [noise_dim + num_classes, 128, 256, 512, 1024,
            int(math.prod(image_resolution))]
    has_bn = [False, True, True, True, False]   # matches block(..., normalize=...)

    params = []
    keys = jax.random.split(key, len(dims) - 1)
    for i, k in enumerate(keys):
        fan_in, fan_out = dims[i], dims[i + 1]
        kw, kb, kg, kbeta, km, kv = jax.random.split(k, 6)
        bound = 1.0 / jnp.sqrt(fan_in)
        layer = {
            "w": jax.random.uniform(kw, (fan_in, fan_out), jnp.float32, -bound, bound),
            "b": jax.random.uniform(kb, (fan_out,), jnp.float32, -bound, bound),
        }
        if has_bn[i]:
            layer["bn"] = {
                "gamma": jax.random.uniform(kg, (fan_out,), jnp.float32, 0.5, 1.5),
                "beta": jax.random.uniform(kbeta, (fan_out,), jnp.float32, -0.1, 0.1),
                "mean": jax.random.uniform(km, (fan_out,), jnp.float32, -0.1, 0.1),
                "var": jax.random.uniform(kv, (fan_out,), jnp.float32, 0.5, 1.5),
                "eps": 0.8,   # nn.BatchNorm1d(out_feat, 0.8) -> eps = 0.8
            }
        params.append(layer)
    return params


def _quantize_per_col_int8(w):
    """Symmetric per-output-channel int8 quantization. Returns (int8, f32 scale)."""
    amax = jnp.max(jnp.abs(w), axis=0)
    scale = jnp.maximum(amax, 1e-12) / 127.0
    wq = jnp.clip(jnp.round(w / scale[None, :]), -127.0, 127.0).astype(jnp.int8)
    return wq, scale.astype(jnp.float32)


def fold_params(params, dtype=jnp.bfloat16):
    """Fold eval-mode BatchNorm into the preceding Linear, cast small weights to
    bf16, weight-only int8 for the two large matrices, coalesce biases+scales."""
    folded = []
    for layer in params:
        w, b = layer["w"], layer["b"]
        if "bn" in layer:
            bn = layer["bn"]
            scale = bn["gamma"] / jnp.sqrt(bn["var"] + bn["eps"])
            w = w * scale[None, :]
            b = (b - bn["mean"]) * scale + bn["beta"]
        folded.append((w, b))

    (w1, b1), (w2, b2), (w3, b3), (w4, b4), (w5, b5) = folded

    # Weight-only int8 for the dominant HBM traffic (w4 + w5 ~ 85% of bytes).
    w4q, s4 = _quantize_per_col_int8(w4)
    w5q, s5 = _quantize_per_col_int8(w5)

    width = max(w1.shape[1], w2.shape[1], w3.shape[1], w4.shape[1], w5.shape[1])

    def pad(v):
        return jnp.pad(v.astype(jnp.float32), (0, width - v.shape[0]))

    bias = jnp.stack([pad(b1), pad(b2), pad(b3), pad(b4), pad(b5), pad(s4), pad(s5)])

    return {
        "w1": w1.astype(dtype),
        "w2": w2.astype(dtype),
        "w3": w3.astype(dtype),
        "w4q": w4q,
        "w5q": w5q,
        "bias": bias,  # (7, width) f32: b1..b5, s4, s5
    }


# ----------------------------------------------------------------------------
# Pure-JAX references for correctness checks
# ----------------------------------------------------------------------------

def _reference_fused(z, c_one_hot, fused):
    """Identical math to the kernel (bf16 weights, int8 w4/w5, f32 accumulation)."""
    dt = fused["w1"].dtype
    bias = fused["bias"]
    h = jnp.concatenate([z, c_one_hot.astype(z.dtype)], axis=1).astype(dt)

    for i, w in enumerate([fused["w1"], fused["w2"], fused["w3"]]):
        n = w.shape[1]
        h = jnp.dot(h, w, preferred_element_type=jnp.float32) + bias[i, :n]
        h = jnp.maximum(h, 0.2 * h).astype(dt)

    n4 = fused["w4q"].shape[1]
    w4 = fused["w4q"].astype(jnp.float32).astype(dt)
    h = jnp.dot(h, w4, preferred_element_type=jnp.float32) * bias[5, :n4] + bias[3, :n4]
    h = jnp.maximum(h, 0.2 * h).astype(dt)

    n5 = fused["w5q"].shape[1]
    w5 = fused["w5q"].astype(jnp.float32).astype(dt)
    h = jnp.dot(h, w5, preferred_element_type=jnp.float32) * bias[6, :n5] + bias[4, :n5]
    return jnp.tanh(h)


def _reference_f32(z, c_one_hot, params):
    """Unfused f32 reference with explicit eval-mode BatchNorm (module semantics)."""
    h = jnp.concatenate([z, c_one_hot.astype(jnp.float32)], axis=1)
    n = len(params)
    for i, layer in enumerate(params):
        h = h @ layer["w"] + layer["b"]
        if "bn" in layer:
            bn = layer["bn"]
            h = (h - bn["mean"]) / jnp.sqrt(bn["var"] + bn["eps"]) * bn["gamma"] + bn["beta"]
        if i < n - 1:
            h = jnp.where(h > 0, h, 0.2 * h)
    return jnp.tanh(h)


if __name__ == "__main__":
    # Module defaults: noise_dim=10, num_classes=10, image_resolution=(28, 28).
    B = 8
    noise_dim, num_classes = 10, 10
    image_resolution = (28, 28)

    key = jax.random.PRNGKey(0)
    kz, kc, kp = jax.random.split(key, 3)

    z = jax.random.normal(kz, (B, noise_dim), jnp.float32)
    labels = jax.random.randint(kc, (B,), 0, num_classes)
    c_one_hot = jax.nn.one_hot(labels, num_classes, dtype=jnp.float32)

    raw_params = init_params(kp, noise_dim, num_classes, image_resolution)
    fused_params = fold_params(raw_params, dtype=jnp.bfloat16)

    img = scitator_c_generator(z, c_one_hot, fused_params, image_resolution)
    img = jax.block_until_ready(img)
    assert img.shape == (B, 1, *image_resolution)

    # 1) Kernel vs identical-math XLA reference (tight).
    ref_fused = _reference_fused(z, c_one_hot, fused_params).reshape(img.shape)
    assert jnp.allclose(img, ref_fused, atol=2e-3, rtol=2e-3), float(
        jnp.max(jnp.abs(img - ref_fused)))

    # 2) Kernel vs f32 unfused module semantics (loose: bf16 + int8 rounding).
    ref_f32 = _reference_f32(z, c_one_hot, raw_params).reshape(img.shape)
    assert jnp.allclose(img, ref_f32, atol=1e-1), float(
        jnp.max(jnp.abs(img - ref_f32)))

    print("KERNEL_OK")
</pallas_src>

<mosaic_0001>
module attributes {stable_mosaic.version = 11 : i64} {
  func.func @_generator_kernel(%arg0: memref<8x20xbf16, #tpu.memory_space<vmem>>, %arg1: memref<20x128xbf16, #tpu.memory_space<vmem>>, %arg2: memref<128x256xbf16, #tpu.memory_space<vmem>>, %arg3: memref<256x512xbf16, #tpu.memory_space<vmem>>, %arg4: memref<512x1024xi8, #tpu.memory_space<any>>, %arg5: memref<1024x784xi8, #tpu.memory_space<any>>, %arg6: memref<7x1024xf32, #tpu.memory_space<vmem>>, %arg7: memref<8x784xf32, #tpu.memory_space<vmem>>, %arg8: memref<512x1024xi8, #tpu.memory_space<vmem>>, %arg9: memref<1024x784xi8, #tpu.memory_space<vmem>>, %arg10: memref<2x!tpu.dma_semaphore, #tpu.memory_space<semaphore_mem>>) attributes {dimension_semantics = [], scalar_prefetch = 0 : i64, scratch_operands = 3 : i64, tpu.core_type = #tpu.core_type<tc>} {
    %c0_i32 = arith.constant 0 : i32
    %0 = tpu.memref_slice %arg10[%c0_i32] : memref<2x!tpu.dma_semaphore, #tpu.memory_space<semaphore_mem>> -> memref<1x!tpu.dma_semaphore, #tpu.memory_space<semaphore_mem>>
    %1 = tpu.memref_squeeze %0 : memref<1x!tpu.dma_semaphore, #tpu.memory_space<semaphore_mem>> -> memref<!tpu.dma_semaphore, #tpu.memory_space<semaphore_mem>>
    tpu.enqueue_dma source(%arg4 : memref<512x1024xi8, #tpu.memory_space<any>>) target(%arg8 : memref<512x1024xi8, #tpu.memory_space<vmem>>) target_semaphore(%1 : memref<!tpu.dma_semaphore, #tpu.memory_space<semaphore_mem>>)
    %c1_i32 = arith.constant 1 : i32
    %2 = tpu.memref_slice %arg10[%c1_i32] : memref<2x!tpu.dma_semaphore, #tpu.memory_space<semaphore_mem>> -> memref<1x!tpu.dma_semaphore, #tpu.memory_space<semaphore_mem>>
    %3 = tpu.memref_squeeze %2 : memref<1x!tpu.dma_semaphore, #tpu.memory_space<semaphore_mem>> -> memref<!tpu.dma_semaphore, #tpu.memory_space<semaphore_mem>>
    tpu.enqueue_dma source(%arg5 : memref<1024x784xi8, #tpu.memory_space<any>>) target(%arg9 : memref<1024x784xi8, #tpu.memory_space<vmem>>) target_semaphore(%3 : memref<!tpu.dma_semaphore, #tpu.memory_space<semaphore_mem>>)
    %c0 = arith.constant 0 : index
    %c0_0 = arith.constant 0 : index
    %4 = vector.load %arg0[%c0, %c0_0] : memref<8x20xbf16, #tpu.memory_space<vmem>>, vector<8x20xbf16>
    %c0_1 = arith.constant 0 : index
    %c0_2 = arith.constant 0 : index
    %5 = vector.load %arg1[%c0_1, %c0_2] : memref<20x128xbf16, #tpu.memory_space<vmem>>, vector<20x128xbf16>
    %cst = arith.constant dense<0.000000e+00> : vector<8x128xf32>
    %6 = tpu.matmul %4, %5, %cst {dimension_numbers = #tpu.dot_dimension_numbers<[1], [0], [0], [1], [0, 0, 1, 1], [], []>} : vector<8x20xbf16>, vector<20x128xbf16>, vector<8x128xf32> -> vector<8x128xf32>
    %c0_3 = arith.constant 0 : index
    %c0_4 = arith.constant 0 : index
    %7 = vector.load %arg6[%c0_3, %c0_4] : memref<7x1024xf32, #tpu.memory_space<vmem>>, vector<1x128xf32>
    %8 = vector.broadcast %7 : vector<1x128xf32> to vector<8x128xf32>
    %9 = arith.addf %6, %8 : vector<8x128xf32>
    %cst_5 = arith.constant 2.000000e-01 : f32
    %10 = vector.broadcast %cst_5 : f32 to vector<8x128xf32>
    %11 = arith.mulf %10, %9 : vector<8x128xf32>
    %12 = arith.maximumf %9, %11 : vector<8x128xf32>
    %13 = arith.truncf %12 : vector<8x128xf32> to vector<8x128xbf16>
    %c0_6 = arith.constant 0 : index
    %c0_7 = arith.constant 0 : index
    %14 = vector.load %arg2[%c0_6, %c0_7] : memref<128x256xbf16, #tpu.memory_space<vmem>>, vector<128x256xbf16>
    %cst_8 = arith.constant dense<0.000000e+00> : vector<8x256xf32>
    %15 = tpu.matmul %13, %14, %cst_8 {dimension_numbers = #tpu.dot_dimension_numbers<[1], [0], [0], [1], [0, 0, 1, 1], [], []>} : vector<8x128xbf16>, vector<128x256xbf16>, vector<8x256xf32> -> vector<8x256xf32>
    %c1 = arith.constant 1 : index
    %c0_9 = arith.constant 0 : index
    %16 = vector.load %arg6[%c1, %c0_9] : memref<7x1024xf32, #tpu.memory_space<vmem>>, vector<1x256xf32>
    %17 = vector.broadcast %16 : vector<1x256xf32> to vector<8x256xf32>
    %18 = arith.addf %15, %17 : vector<8x256xf32>
    %cst_10 = arith.constant 2.000000e-01 : f32
    %19 = vector.broadcast %cst_10 : f32 to vector<8x256xf32>
    %20 = arith.mulf %19, %18 : vector<8x256xf32>
    %21 = arith.maximumf %18, %20 : vector<8x256xf32>
    %22 = arith.truncf %21 : vector<8x256xf32> to vector<8x256xbf16>
    %c0_11 = arith.constant 0 : index
    %c0_12 = arith.constant 0 : index
    %23 = vector.load %arg3[%c0_11, %c0_12] : memref<256x512xbf16, #tpu.memory_space<vmem>>, vector<256x512xbf16>
    %cst_13 = arith.constant dense<0.000000e+00> : vector<8x512xf32>
    %24 = tpu.matmul %22, %23, %cst_13 {dimension_numbers = #tpu.dot_dimension_numbers<[1], [0], [0], [1], [0, 0, 1, 1], [], []>} : vector<8x256xbf16>, vector<256x512xbf16>, vector<8x512xf32> -> vector<8x512xf32>
    %c2 = arith.constant 2 : index
    %c0_14 = arith.constant 0 : index
    %25 = vector.load %arg6[%c2, %c0_14] : memref<7x1024xf32, #tpu.memory_space<vmem>>, vector<1x512xf32>
    %26 = vector.broadcast %25 : vector<1x512xf32> to vector<8x512xf32>
    %27 = arith.addf %24, %26 : vector<8x512xf32>
    %cst_15 = arith.constant 2.000000e-01 : f32
    %28 = vector.broadcast %cst_15 : f32 to vector<8x512xf32>
    %29 = arith.mulf %28, %27 : vector<8x512xf32>
    %30 = arith.maximumf %27, %29 : vector<8x512xf32>
    %c0_i32_16 = arith.constant 0 : i32
    %31 = tpu.memref_slice %arg10[%c0_i32_16] : memref<2x!tpu.dma_semaphore, #tpu.memory_space<semaphore_mem>> -> memref<1x!tpu.dma_semaphore, #tpu.memory_space<semaphore_mem>>
    %32 = tpu.memref_squeeze %31 : memref<1x!tpu.dma_semaphore, #tpu.memory_space<semaphore_mem>> -> memref<!tpu.dma_semaphore, #tpu.memory_space<semaphore_mem>>
    tpu.wait_dma2 semaphore(%32 : memref<!tpu.dma_semaphore, #tpu.memory_space<semaphore_mem>>) src(%arg4 : memref<512x1024xi8, #tpu.memory_space<any>>) dst(%arg8 : memref<512x1024xi8, #tpu.memory_space<vmem>>)
    %c0_17 = arith.constant 0 : index
    %c0_18 = arith.constant 0 : index
    %33 = vector.load %arg8[%c0_17, %c0_18] : memref<512x1024xi8, #tpu.memory_space<vmem>>, vector<512x1024xi8>
    %34 = arith.sitofp %33 : vector<512x1024xi8> to vector<512x1024xf32>
    %35 = arith.truncf %34 : vector<512x1024xf32> to vector<512x1024xbf16>
    %36 = arith.truncf %30 : vector<8x512xf32> to vector<8x512xbf16>
    %cst_19 = arith.constant dense<0.000000e+00> : vector<8x1024xf32>
    %37 = tpu.matmul %36, %35, %cst_19 {dimension_numbers = #tpu.dot_dimension_numbers<[1], [0], [0], [1], [0, 0, 1, 1], [], []>} : vector<8x512xbf16>, vector<512x1024xbf16>, vector<8x1024xf32> -> vector<8x1024xf32>
    %c5 = arith.constant 5 : index
    %c0_20 = arith.constant 0 : index
    %38 = vector.load %arg6[%c5, %c0_20] : memref<7x1024xf32, #tpu.memory_space<vmem>>, vector<1x1024xf32>
    %39 = vector.broadcast %38 : vector<1x1024xf32> to vector<8x1024xf32>
    %40 = arith.mulf %37, %39 : vector<8x1024xf32>
    %c3 = arith.constant 3 : index
    %c0_21 = arith.constant 0 : index
    %41 = vector.load %arg6[%c3, %c0_21] : memref<7x1024xf32, #tpu.memory_space<vmem>>, vector<1x1024xf32>
    %42 = vector.broadcast %41 : vector<1x1024xf32> to vector<8x1024xf32>
    %43 = arith.addf %40, %42 : vector<8x1024xf32>
    %cst_22 = arith.constant 2.000000e-01 : f32
    %44 = vector.broadcast %cst_22 : f32 to vector<8x1024xf32>
    %45 = arith.mulf %44, %43 : vector<8x1024xf32>
    %46 = arith.maximumf %43, %45 : vector<8x1024xf32>
    %c1_i32_23 = arith.constant 1 : i32
    %47 = tpu.memref_slice %arg10[%c1_i32_23] : memref<2x!tpu.dma_semaphore, #tpu.memory_space<semaphore_mem>> -> memref<1x!tpu.dma_semaphore, #tpu.memory_space<semaphore_mem>>
    %48 = tpu.memref_squeeze %47 : memref<1x!tpu.dma_semaphore, #tpu.memory_space<semaphore_mem>> -> memref<!tpu.dma_semaphore, #tpu.memory_space<semaphore_mem>>
    tpu.wait_dma2 semaphore(%48 : memref<!tpu.dma_semaphore, #tpu.memory_space<semaphore_mem>>) src(%arg5 : memref<1024x784xi8, #tpu.memory_space<any>>) dst(%arg9 : memref<1024x784xi8, #tpu.memory_space<vmem>>)
    %c0_24 = arith.constant 0 : index
    %c0_25 = arith.constant 0 : index
    %49 = vector.load %arg9[%c0_24, %c0_25] : memref<1024x784xi8, #tpu.memory_space<vmem>>, vector<1024x784xi8>
    %50 = arith.sitofp %49 : vector<1024x784xi8> to vector<1024x784xf32>
    %51 = arith.truncf %50 : vector<1024x784xf32> to vector<1024x784xbf16>
    %52 = arith.truncf %46 : vector<8x1024xf32> to vector<8x1024xbf16>
    %cst_26 = arith.constant dense<0.000000e+00> : vector<8x784xf32>
    %53 = tpu.matmul %52, %51, %cst_26 {dimension_numbers = #tpu.dot_dimension_numbers<[1], [0], [0], [1], [0, 0, 1, 1], [], []>} : vector<8x1024xbf16>, vector<1024x784xbf16>, vector<8x784xf32> -> vector<8x784xf32>
    %c6 = arith.constant 6 : index
    %c0_27 = arith.constant 0 : index
    %54 = vector.load %arg6[%c6, %c0_27] : memref<7x1024xf32, #tpu.memory_space<vmem>>, vector<1x784xf32>
    %55 = vector.broadcast %54 : vector<1x784xf32> to vector<8x784xf32>
    %56 = arith.mulf %53, %55 : vector<8x784xf32>
    %c4 = arith.constant 4 : index
    %c0_28 = arith.constant 0 : index
    %57 = vector.load %arg6[%c4, %c0_28] : memref<7x1024xf32, #tpu.memory_space<vmem>>, vector<1x784xf32>
    %58 = vector.broadcast %57 : vector<1x784xf32> to vector<8x784xf32>
    %59 = arith.addf %56, %58 : vector<8x784xf32>
    %60 = math.tanh %59 : vector<8x784xf32>
    %c0_29 = arith.constant 0 : index
    %c0_30 = arith.constant 0 : index
    %61 = vector.load %arg7[%c0_29, %c0_30] : memref<8x784xf32, #tpu.memory_space<vmem>>, vector<8x784xf32>
    tpu.vector_store %arg7[%c0_29, %c0_30], %60 {strides = array<i32>} : memref<8x784xf32, #tpu.memory_space<vmem>>, vector<8x784xf32>,
    return
  }
}

</mosaic_0001>

<bundles_post_ra>
// kernel: tpu_custom_call.1
= control target key start
LH: loop header
LB: loop body
LE: loop exit
PB: predicated region body
PF: predicated region fallthrough
CT: control target
= control target key end

     0   :  { %12 = vsyncpa [#allocation6], 0  ;;  %s7269_s0 = inlined_call_operand.vmem [shape: bf16[8,20], index: 0, kind: input, shape index: {}]   ;;  %s7270_s1 = inlined_call_operand.vmem [shape: bf16[20,128], index: 1, kind: input, shape index: {}]   ;;  %s7271_s2 = inlined_call_operand.vmem [shape: bf16[128,256], index: 2, kind: input, shape index: {}]   ;;  %s7272_s3 = inlined_call_operand.vmem [shape: bf16[256,512], index: 3, kind: input, shape index: {}]   ;;  %s7273_s4 = inlined_call_operand.vmem [shape: s8[512,1024], index: 4, kind: input, shape index: {}]   ;;  %s7274_s5 = inlined_call_operand.vmem [shape: s8[1024,784], index: 5, kind: input, shape index: {}]   ;;  %s7275_s6 = inlined_call_operand.vmem [shape: f32[7,1024], index: 6, kind: input, shape index: {}]   ;;  %s7276_s7 = inlined_call_operand.hbm [shape: f32[8,784], index: 7, kind: output, shape index: {}]  }
   0x1   :  { %v4318_v0 = vld [vmem:[%s7273_s4] sm:$0xff]  ;;  %v4323_v1 = vld [vmem:[%s7273_s4 + $0x8] sm:$0xff]  ;;  %v4328_v2 = vld [vmem:[%s7273_s4 + $0x10] sm:$0xff] }
   0x2   :  { %v4333_v3 = vld [vmem:[%s7273_s4 + $0x18] sm:$0xff]  ;;  %v4338_v4 = vld [vmem:[%s7273_s4 + $0x20] sm:$0xff]  ;;  %v4343_v5 = vld [vmem:[%s7273_s4 + $0x28] sm:$0xff] }
   0x3   :  { %7592 = vst [vmem:[#allocation12_spill] sm:$0xff] %v4338_v4  ;;  %7593 = vst [vmem:[#allocation13_spill] sm:$0xff] %v4343_v5  ;;  %v4348_v6 = vld [vmem:[%s7273_s4 + $0x30] sm:$0xff]  ;;  %v4353_v7 = vld [vmem:[%s7273_s4 + $0x38] sm:$0xff] }
   0x4   :  { %7594 = vst [vmem:[#allocation14_spill] sm:$0xff] %v4348_v6  ;;  %7595 = vst [vmem:[#allocation15_spill] sm:$0xff] %v4353_v7  ;;  %v4358_v8 = vld [vmem:[%s7273_s4 + $0x40] sm:$0xff]  ;;  %v4363_v9 = vld [vmem:[%s7273_s4 + $0x48] sm:$0xff] }
   0x5   :  { %v4368_v10 = vld [vmem:[%s7273_s4 + $0x50] sm:$0xff]  ;;  %v4373_v11 = vld [vmem:[%s7273_s4 + $0x58] sm:$0xff]  ;;  %v4378_v12 = vld [vmem:[%s7273_s4 + $0x60] sm:$0xff] }
   0x6   :  { %7596 = vst [vmem:[#allocation16_spill] sm:$0xff] %v4378_v12  ;;  %v4383_v13 = vld [vmem:[%s7273_s4 + $0x68] sm:$0xff]  ;;  %v4388_v14 = vld [vmem:[%s7273_s4 + $0x70] sm:$0xff]  ;;  %v4393_v15 = vld [vmem:[%s7273_s4 + $0x78] sm:$0xff] }
   0x7   :  { %7597 = vst [vmem:[#allocation17_spill] sm:$0xff] %v4383_v13  ;;  %7598 = vst [vmem:[#allocation18_spill] sm:$0xff] %v4388_v14  ;;  %v4398_v16 = vld [vmem:[%s7273_s4 + $0x80] sm:$0xff]  ;;  %v4403_v17 = vld [vmem:[%s7273_s4 + $0x88] sm:$0xff] }
   0x8   :  { %7599 = vst [vmem:[#allocation19_spill] sm:$0xff] %v4393_v15  ;;  %v4408_v18 = vld [vmem:[%s7273_s4 + $0x90] sm:$0xff]  ;;  %v4413_v19 = vld [vmem:[%s7273_s4 + $0x98] sm:$0xff]  ;;  %v4418_v20 = vld [vmem:[%s7273_s4 + $0xa0] sm:$0xff] }
   0x9   :  { %7600 = vst [vmem:[#allocation20_spill] sm:$0xff] %v4418_v20  ;;  %v4423_v21 = vld [vmem:[%s7273_s4 + $0xa8] sm:$0xff]  ;;  %v4428_v22 = vld [vmem:[%s7273_s4 + $0xb0] sm:$0xff]  ;;  %v4433_v23 = vld [vmem:[%s7273_s4 + $0xb8] sm:$0xff] }
   0xa   :  { %7601 = vst [vmem:[#allocation21_spill] sm:$0xff] %v4423_v21  ;;  %7602 = vst [vmem:[#allocation22_spill] sm:$0xff] %v4428_v22  ;;  %v4438_v24 = vld [vmem:[%s7273_s4 + $0xc0] sm:$0xff]  ;;  %v4443_v25 = vld [vmem:[%s7273_s4 + $0xc8] sm:$0xff] }
   0xb   :  { %7603 = vst [vmem:[#allocation23_spill] sm:$0xff] %v4433_v23  ;;  %v4448_v26 = vld [vmem:[%s7273_s4 + $0xd0] sm:$0xff]  ;;  %v4453_v27 = vld [vmem:[%s7273_s4 + $0xd8] sm:$0xff]  ;;  %v4458_v28 = vld [vmem:[%s7273_s4 + $0xe0] sm:$0xff] }
   0xc   :  { %7604 = vst [vmem:[#allocation24_spill] sm:$0xff] %v4458_v28  ;;  %v4463_v29 = vld [vmem:[%s7273_s4 + $0xe8] sm:$0xff]  ;;  %v4468_v30 = vld [vmem:[%s7273_s4 + $0xf0] sm:$0xff]  ;;  %v4473_v31 = vld [vmem:[%s7273_s4 + $0xf8] sm:$0xff] }
   0xd   :  { %7605 = vst [vmem:[#allocation25_spill] sm:$0xff] %v4463_v29  ;;  %7606 = vst [vmem:[#allocation26_spill] sm:$0xff] %v4468_v30  ;;  %v4478_v32 = vld [vmem:[%s7273_s4 + $0x100] sm:$0xff]  ;;  %v4483_v33 = vld [vmem:[%s7273_s4 + $0x108] sm:$0xff] }
   0xe   :  { %7607 = vst [vmem:[#allocation27_spill] sm:$0xff] %v4473_v31  ;;  %v4488_v34 = vld [vmem:[%s7273_s4 + $0x110] sm:$0xff]  ;;  %v4493_v35 = vld [vmem:[%s7273_s4 + $0x118] sm:$0xff]  ;;  %v4498_v36 = vld [vmem:[%s7273_s4 + $0x120] sm:$0xff] }
   0xf   :  { %7608 = vst [vmem:[#allocation28_spill] sm:$0xff] %v4498_v36  ;;  %v4503_v37 = vld [vmem:[%s7273_s4 + $0x128] sm:$0xff]  ;;  %v4508_v38 = vld [vmem:[%s7273_s4 + $0x130] sm:$0xff]  ;;  %v4513_v39 = vld [vmem:[%s7273_s4 + $0x138] sm:$0xff] }
  0x10   :  { %7609 = vst [vmem:[#allocation29_spill] sm:$0xff] %v4503_v37  ;;  %7610 = vst [vmem:[#allocation30_spill] sm:$0xff] %v4508_v38  ;;  %v4518_v40 = vld [vmem:[%s7273_s4 + $0x140] sm:$0xff]  ;;  %v4523_v41 = vld [vmem:[%s7273_s4 + $0x148] sm:$0xff] }
  0x11   :  { %7611 = vst [vmem:[#allocation31_spill] sm:$0xff] %v4513_v39  ;;  %v4528_v42 = vld [vmem:[%s7273_s4 + $0x150] sm:$0xff]  ;;  %v4533_v43 = vld [vmem:[%s7273_s4 + $0x158] sm:$0xff]  ;;  %v4538_v44 = vld [vmem:[%s7273_s4 + $0x160] sm:$0xff] }
  0x12   :  { %7612 = vst [vmem:[#allocation32_spill] sm:$0xff] %v4538_v44  ;;  %v4543_v45 = vld [vmem:[%s7273_s4 + $0x168] sm:$0xff]  ;;  %v4548_v46 = vld [vmem:[%s7273_s4 + $0x170] sm:$0xff]  ;;  %v4553_v47 = vld [vmem:[%s7273_s4 + $0x178] sm:$0xff] }
  0x13   :  { %7613 = vst [vmem:[#allocation33_spill] sm:$0xff] %v4543_v45  ;;  %7614 = vst [vmem:[#allocation34_spill] sm:$0xff] %v4548_v46  ;;  %v4558_v48 = vld [vmem:[%s7273_s4 + $0x180] sm:$0xff]  ;;  %v4563_v49 = vld [vmem:[%s7273_s4 + $0x188] sm:$0xff] }
  0x14   :  { %7615 = vst [vmem:[#allocation35_spill] sm:$0xff] %v4553_v47  ;;  %v4568_v50 = vld [vmem:[%s7273_s4 + $0x190] sm:$0xff]  ;;  %v4573_v51 = vld [vmem:[%s7273_s4 + $0x198] sm:$0xff]  ;;  %v4578_v52 = vld [vmem:[%s7273_s4 + $0x1a0] sm:$0xff] }
  0x15   :  { %7616 = vst [vmem:[#allocation36_spill] sm:$0xff] %v4578_v52  ;;  %v4583_v53 = vld [vmem:[%s7273_s4 + $0x1a8] sm:$0xff]  ;;  %v4588_v54 = vld [vmem:[%s7273_s4 + $0x1b0] sm:$0xff]  ;;  %v4593_v55 = vld [vmem:[%s7273_s4 + $0x1b8] sm:$0xff] }
  0x16   :  { %7617 = vst [vmem:[#allocation37_spill] sm:$0xff] %v4583_v53  ;;  %7618 = vst [vmem:[#allocation38_spill] sm:$0xff] %v4588_v54  ;;  %v4598_v56 = vld [vmem:[%s7273_s4 + $0x1c0] sm:$0xff]  ;;  %v4603_v57 = vld [vmem:[%s7273_s4 + $0x1c8] sm:$0xff] }
  0x17   :  { %7619 = vst [vmem:[#allocation39_spill] sm:$0xff] %v4593_v55  ;;  %v4608_v58 = vld [vmem:[%s7273_s4 + $0x1d0] sm:$0xff]  ;;  %v4613_v59 = vld [vmem:[%s7273_s4 + $0x1d8] sm:$0xff]  ;;  %v4618_v60 = vld [vmem:[%s7273_s4 + $0x1e0] sm:$0xff] }
  0x18   :  { %7620 = vst [vmem:[#allocation40_spill] sm:$0xff] %v4618_v60  ;;  %v4623_v61 = vld [vmem:[%s7273_s4 + $0x1e8] sm:$0xff]  ;;  %v4628_v62 = vld [vmem:[%s7273_s4 + $0x1f0] sm:$0xff]  ;;  %v4633_v63 = vld [vmem:[%s7273_s4 + $0x1f8] sm:$0xff] }
  0x19   :  { %7621 = vst [vmem:[#allocation41_spill] sm:$0xff] %v4623_v61  ;;  %7622 = vst [vmem:[#allocation42_spill] sm:$0xff] %v4628_v62  ;;  %v4638_v54 = vld [vmem:[%s7273_s4 + $0x200] sm:$0xff]  ;;  %v4643_v60 = vld [vmem:[%s7273_s4 + $0x208] sm:$0xff] }
  0x1a   :  { %7623 = vst [vmem:[#allocation43_spill] sm:$0xff] %v4633_v63  ;;  %v4648_v61 = vld [vmem:[%s7273_s4 + $0x210] sm:$0xff]  ;;  %v4653_v62 = vld [vmem:[%s7273_s4 + $0x218] sm:$0xff]  ;;  %v4658_v63 = vld [vmem:[%s7273_s4 + $0x220] sm:$0xff] }
  0x1b   :  { %7624 = vst [vmem:[#allocation44_spill] sm:$0xff] %v4658_v63  ;;  %v4663_v52 = vld [vmem:[%s7273_s4 + $0x228] sm:$0xff]  ;;  %v4668_v55 = vld [vmem:[%s7273_s4 + $0x230] sm:$0xff]  ;;  %v4673_v53 = vld [vmem:[%s7273_s4 + $0x238] sm:$0xff] }
  0x1c   :  { %7625 = vst [vmem:[#allocation45_spill] sm:$0xff] %v4663_v52  ;;  %7626 = vst [vmem:[#allocation46_spill] sm:$0xff] %v4668_v55  ;;  %v4678_v46 = vld [vmem:[%s7273_s4 + $0x240] sm:$0xff]  ;;  %v4683_v63 = vld [vmem:[%s7273_s4 + $0x248] sm:$0xff] }
  0x1d   :  { %7627 = vst [vmem:[#allocation47_spill] sm:$0xff] %v4673_v53  ;;  %v4688_v52 = vld [vmem:[%s7273_s4 + $0x250] sm:$0xff]  ;;  %v4693_v55 = vld [vmem:[%s7273_s4 + $0x258] sm:$0xff]  ;;  %v4698_v53 = vld [vmem:[%s7273_s4 + $0x260] sm:$0xff] }
  0x1e   :  { %7628 = vst [vmem:[#allocation48_spill] sm:$0xff] %v4698_v53  ;;  %v4703_v44 = vld [vmem:[%s7273_s4 + $0x268] sm:$0xff]  ;;  %v4708_v47 = vld [vmem:[%s7273_s4 + $0x270] sm:$0xff]  ;;  %v4713_v45 = vld [vmem:[%s7273_s4 + $0x278] sm:$0xff] }
  0x1f   :  { %7629 = vst [vmem:[#allocation49_spill] sm:$0xff] %v4703_v44  ;;  %7630 = vst [vmem:[#allocation50_spill] sm:$0xff] %v4708_v47  ;;  %v4718_v38 = vld [vmem:[%s7273_s4 + $0x280] sm:$0xff]  ;;  %v4723_v53 = vld [vmem:[%s7273_s4 + $0x288] sm:$0xff] }
  0x20   :  { %7631 = vst [vmem:[#allocation51_spill] sm:$0xff] %v4713_v45  ;;  %v4728_v44 = vld [vmem:[%s7273_s4 + $0x290] sm:$0xff]  ;;  %v4733_v47 = vld [vmem:[%s7273_s4 + $0x298] sm:$0xff]  ;;  %v4738_v45 = vld [vmem:[%s7273_s4 + $0x2a0] sm:$0xff] }
  0x21   :  { %7632 = vst [vmem:[#allocation52_spill] sm:$0xff] %v4738_v45  ;;  %v4743_v36 = vld [vmem:[%s7273_s4 + $0x2a8] sm:$0xff]  ;;  %v4748_v39 = vld [vmem:[%s7273_s4 + $0x2b0] sm:$0xff]  ;;  %v4753_v37 = vld [vmem:[%s7273_s4 + $0x2b8] sm:$0xff] }
  0x22   :  { %7633 = vst [vmem:[#allocation53_spill] sm:$0xff] %v4743_v36  ;;  %7634 = vst [vmem:[#allocation54_spill] sm:$0xff] %v4748_v39  ;;  %v4758_v30 = vld [vmem:[%s7273_s4 + $0x2c0] sm:$0xff]  ;;  %v4763_v45 = vld [vmem:[%s7273_s4 + $0x2c8] sm:$0xff] }
  0x23   :  { %7635 = vst [vmem:[#allocation55_spill] sm:$0xff] %v4753_v37  ;;  %7636 = vst [vmem:[#allocation56_spill] sm:$0xff] %v4758_v30  ;;  %v4768_v36 = vld [vmem:[%s7273_s4 + $0x2d0] sm:$0xff]  ;;  %v4773_v39 = vld [vmem:[%s7273_s4 + $0x2d8] sm:$0xff] }
  0x24   :  { %7637 = vst [vmem:[#allocation57_spill] sm:$0xff] %v4768_v36  ;;  %7638 = vst [vmem:[#allocation58_spill] sm:$0xff] %v4773_v39  ;;  %v4778_v37 = vld [vmem:[%s7273_s4 + $0x2e0] sm:$0xff]  ;;  %v4783_v28 = vld [vmem:[%s7273_s4 + $0x2e8] sm:$0xff] }
  0x25   :  { %7639 = vst [vmem:[#allocation59_spill] sm:$0xff] %v4778_v37  ;;  %7640 = vst [vmem:[#allocation60_spill] sm:$0xff] %v4783_v28  ;;  %v4788_v31 = vld [vmem:[%s7273_s4 + $0x2f0] sm:$0xff]  ;;  %v4793_v29 = vld [vmem:[%s7273_s4 + $0x2f8] sm:$0xff] }
  0x26   :  { %7641 = vst [vmem:[#allocation61_spill] sm:$0xff] %v4788_v31  ;;  %7642 = vst [vmem:[#allocation62_spill] sm:$0xff] %v4793_v29  ;;  %v4798_v22 = vld [vmem:[%s7273_s4 + $0x300] sm:$0xff]  ;;  %v4803_v37 = vld [vmem:[%s7273_s4 + $0x308] sm:$0xff] }
  0x27   :  { %7643 = vst [vmem:[#allocation63_spill] sm:$0xff] %v4798_v22  ;;  %7644 = vst [vmem:[#allocation64_spill] sm:$0xff] %v4803_v37  ;;  %v4808_v28 = vld [vmem:[%s7273_s4 + $0x310] sm:$0xff]  ;;  %v4813_v31 = vld [vmem:[%s7273_s4 + $0x318] sm:$0xff] }
  0x28   :  { %7645 = vst [vmem:[#allocation65_spill] sm:$0xff] %v4808_v28  ;;  %7646 = vst [vmem:[#allocation66_spill] sm:$0xff] %v4813_v31  ;;  %v4818_v29 = vld [vmem:[%s7273_s4 + $0x320] sm:$0xff]  ;;  %v4823_v20 = vld [vmem:[%s7273_s4 + $0x328] sm:$0xff] }
  0x29   :  { %7647 = vst [vmem:[#allocation67_spill] sm:$0xff] %v4818_v29  ;;  %7648 = vst [vmem:[#allocation68_spill] sm:$0xff] %v4823_v20  ;;  %v4828_v23 = vld [vmem:[%s7273_s4 + $0x330] sm:$0xff]  ;;  %v4833_v21 = vld [vmem:[%s7273_s4 + $0x338] sm:$0xff] }
  0x2a   :  { %7649 = vst [vmem:[#allocation69_spill] sm:$0xff] %v4828_v23  ;;  %7650 = vst [vmem:[#allocation70_spill] sm:$0xff] %v4833_v21  ;;  %v4838_v14 = vld [vmem:[%s7273_s4 + $0x340] sm:$0xff]  ;;  %v4843_v29 = vld [vmem:[%s7273_s4 + $0x348] sm:$0xff] }
  0x2b   :  { %7651 = vst [vmem:[#allocation71_spill] sm:$0xff] %v4838_v14  ;;  %7652 = vst [vmem:[#allocation72_spill] sm:$0xff] %v4843_v29  ;;  %v4848_v20 = vld [vmem:[%s7273_s4 + $0x350] sm:$0xff]  ;;  %v4853_v23 = vld [vmem:[%s7273_s4 + $0x358] sm:$0xff] }
  0x2c   :  { %7653 = vst [vmem:[#allocation73_spill] sm:$0xff] %v4848_v20  ;;  %7654 = vst [vmem:[#allocation74_spill] sm:$0xff] %v4853_v23  ;;  %v4858_v21 = vld [vmem:[%s7273_s4 + $0x360] sm:$0xff]  ;;  %v4863_v12 = vld [vmem:[%s7273_s4 + $0x368] sm:$0xff] }
  0x2d   :  { %7655 = vst [vmem:[#allocation75_spill] sm:$0xff] %v4858_v21  ;;  %7656 = vst [vmem:[#allocation76_spill] sm:$0xff] %v4863_v12  ;;  %v4868_v15 = vld [vmem:[%s7273_s4 + $0x370] sm:$0xff]  ;;  %v4873_v13 = vld [vmem:[%s7273_s4 + $0x378] sm:$0xff] }
  0x2e   :  { %7657 = vst [vmem:[#allocation77_spill] sm:$0xff] %v4868_v15  ;;  %7658 = vst [vmem:[#allocation78_spill] sm:$0xff] %v4873_v13  ;;  %v4878_v6 = vld [vmem:[%s7273_s4 + $0x380] sm:$0xff]  ;;  %v4883_v21 = vld [vmem:[%s7273_s4 + $0x388] sm:$0xff] }
  0x2f   :  { %7659 = vst [vmem:[#allocation79_spill] sm:$0xff] %v4878_v6  ;;  %7660 = vst [vmem:[#allocation80_spill] sm:$0xff] %v4883_v21  ;;  %v4888_v12 = vld [vmem:[%s7273_s4 + $0x390] sm:$0xff]  ;;  %v4893_v15 = vld [vmem:[%s7273_s4 + $0x398] sm:$0xff] }
  0x30   :  { %7661 = vst [vmem:[#allocation81_spill] sm:$0xff] %v4888_v12  ;;  %7662 = vst [vmem:[#allocation82_spill] sm:$0xff] %v4893_v15  ;;  %v4898_v13 = vld [vmem:[%s7273_s4 + $0x3a0] sm:$0xff]  ;;  %v4903_v4 = vld [vmem:[%s7273_s4 + $0x3a8] sm:$0xff] }
  0x31   :  { %7663 = vst [vmem:[#allocation83_spill] sm:$0xff] %v4898_v13  ;;  %7664 = vst [vmem:[#allocation84_spill] sm:$0xff] %v4903_v4  ;;  %v4908_v7 = vld [vmem:[%s7273_s4 + $0x3b0] sm:$0xff]  ;;  %v4913_v5 = vld [vmem:[%s7273_s4 + $0x3b8] sm:$0xff] }
  0x32   :  { %7665 = vst [vmem:[#allocation85_spill] sm:$0xff] %v4908_v7  ;;  %7666 = vst [vmem:[#allocation86_spill] sm:$0xff] %v4913_v5  ;;  %v4918_v12 = vld [vmem:[%s7273_s4 + $0x3c0] sm:$0xff]  ;;  %v4923_v13 = vld [vmem:[%s7273_s4 + $0x3c8] sm:$0xff] }
  0x33   :  { %7667 = vst [vmem:[#allocation87_spill] sm:$0xff] %v4918_v12  ;;  %7668 = vst [vmem:[#allocation88_spill] sm:$0xff] %v4923_v13  ;;  %v4928_v4 = vld [vmem:[%s7273_s4 + $0x3d0] sm:$0xff]  ;;  %v4933_v7 = vld [vmem:[%s7273_s4 + $0x3d8] sm:$0xff] }
  0x34   :  { %7669 = vst [vmem:[#allocation89_spill] sm:$0xff] %v4928_v4  ;;  %7670 = vst [vmem:[#allocation90_spill] sm:$0xff] %v4933_v7  ;;  %v4938_v5 = vld [vmem:[%s7273_s4 + $0x3e0] sm:$0xff]  ;;  %v4943_v12 = vld [vmem:[%s7273_s4 + $0x3e8] sm:$0xff] }
  0x35   :  { %7671 = vst [vmem:[#allocation91_spill] sm:$0xff] %v4938_v5  ;;  %7672 = vst [vmem:[#allocation92_spill] sm:$0xff] %v4943_v12  ;;  %v4948_v13 = vld [vmem:[%s7273_s4 + $0x3f0] sm:$0xff]  ;;  %v4953_v4 = vld [vmem:[%s7273_s4 + $0x3f8] sm:$0xff] }
  0x36   :  { %7673 = vst [vmem:[#allocation93_spill] sm:$0xff] %v4948_v13  ;;  %7674 = vst [vmem:[#allocation94_spill] sm:$0xff] %v4953_v4 }
  0x37   :  { %319 = vsyncadd [#allocation4], 16384  ;;  %v4958_v5 = vld [vmem:[%s7274_s5] sm:$0xff]  ;;  %v4963_v12 = vld [vmem:[%s7274_s5 + $0x8] sm:$0xff] }
  0x38   :  { %7675 = vst [vmem:[#allocation95_spill] sm:$0xff] %v4958_v5  ;;  %7676 = vst [vmem:[#allocation96_spill] sm:$0xff] %v4963_v12  ;;  %v4968_v13 = vld [vmem:[%s7274_s5 + $0x10] sm:$0xff]  ;;  %v4973_v4 = vld [vmem:[%s7274_s5 + $0x18] sm:$0xff] }
  0x39   :  { %7677 = vst [vmem:[#allocation97_spill] sm:$0xff] %v4968_v13  ;;  %7678 = vst [vmem:[#allocation98_spill] sm:$0xff] %v4973_v4  ;;  %v4978_v7 = vld [vmem:[%s7274_s5 + $0x20] sm:$0xff]  ;;  %v4983_v5 = vld [vmem:[%s7274_s5 + $0x28] sm:$0xff] }
  0x3a   :  { %7679 = vst [vmem:[#allocation99_spill] sm:$0xff] %v4978_v7  ;;  %7680 = vst [vmem:[#allocation100_spill] sm:$0xff] %v4983_v5  ;;  %v4988_v12 = vld [vmem:[%s7274_s5 + $0x30] sm:$0xff]  ;;  %v4993_v13 = vld [vmem:[%s7274_s5 + $0x38] sm:$0xff] }
  0x3b   :  { %7681 = vst [vmem:[#allocation101_spill] sm:$0xff] %v4988_v12  ;;  %7682 = vst [vmem:[#allocation102_spill] sm:$0xff] %v4993_v13  ;;  %v4998_v4 = vld [vmem:[%s7274_s5 + $0x40] sm:$0xff]  ;;  %v5003_v7 = vld [vmem:[%s7274_s5 + $0x48] sm:$0xff] }
  0x3c   :  { %7683 = vst [vmem:[#allocation103_spill] sm:$0xff] %v4998_v4  ;;  %7684 = vst [vmem:[#allocation104_spill] sm:$0xff] %v5003_v7  ;;  %v5008_v5 = vld [vmem:[%s7274_s5 + $0x50] sm:$0xff]  ;;  %v5013_v12 = vld [vmem:[%s7274_s5 + $0x58] sm:$0xff] }
  0x3d   :  { %7685 = vst [vmem:[#allocation105_spill] sm:$0xff] %v5008_v5  ;;  %7686 = vst [vmem:[#allocation106_spill] sm:$0xff] %v5013_v12  ;;  %v5018_v13 = vld [vmem:[%s7274_s5 + $0x60] sm:$0xff]  ;;  %v5023_v4 = vld [vmem:[%s7274_s5 + $0x68] sm:$0xff] }
  0x3e   :  { %7687 = vst [vmem:[#allocation107_spill] sm:$0xff] %v5018_v13  ;;  %7688 = vst [vmem:[#allocation108_spill] sm:$0xff] %v5023_v4  ;;  %v5028_v7 = vld [vmem:[%s7274_s5 + $0x70] sm:$0xff]  ;;  %v5033_v5 = vld [vmem:[%s7274_s5 + $0x78] sm:$0xff] }
  0x3f   :  { %7689 = vst [vmem:[#allocation109_spill] sm:$0xff] %v5028_v7  ;;  %7690 = vst [vmem:[#allocation110_spill] sm:$0xff] %v5033_v5  ;;  %v5038_v12 = vld [vmem:[%s7274_s5 + $0x80] sm:$0xff]  ;;  %v5043_v13 = vld [vmem:[%s7274_s5 + $0x88] sm:$0xff] }
  0x40   :  { %7691 = vst [vmem:[#allocation111_spill] sm:$0xff] %v5038_v12  ;;  %7692 = vst [vmem:[#allocation112_spill] sm:$0xff] %v5043_v13  ;;  %v5048_v4 = vld [vmem:[%s7274_s5 + $0x90] sm:$0xff]  ;;  %v5053_v7 = vld [vmem:[%s7274_s5 + $0x98] sm:$0xff] }
  0x41   :  { %7693 = vst [vmem:[#allocation113_spill] sm:$0xff] %v5048_v4  ;;  %7694 = vst [vmem:[#allocation114_spill] sm:$0xff] %v5053_v7  ;;  %v5058_v5 = vld [vmem:[%s7274_s5 + $0xa0] sm:$0xff]  ;;  %v5063_v12 = vld [vmem:[%s7274_s5 + $0xa8] sm:$0xff] }
  0x42   :  { %7695 = vst [vmem:[#allocation115_spill] sm:$0xff] %v5058_v5  ;;  %7696 = vst [vmem:[#allocation116_spill] sm:$0xff] %v5063_v12  ;;  %v5068_v13 = vld [vmem:[%s7274_s5 + $0xb0] sm:$0xff]  ;;  %v5073_v4 = vld [vmem:[%s7274_s5 + $0xb8] sm:$0xff] }
  0x43   :  { %7697 = vst [vmem:[#allocation117_spill] sm:$0xff] %v5068_v13  ;;  %7698 = vst [vmem:[#allocation118_spill] sm:$0xff] %v5073_v4  ;;  %v5078_v7 = vld [vmem:[%s7274_s5 + $0xc0] sm:$0xff]  ;;  %v5083_v5 = vld [vmem:[%s7274_s5 + $0xc8] sm:$0xff] }
  0x44   :  { %7699 = vst [vmem:[#allocation119_spill] sm:$0xff] %v5078_v7  ;;  %7700 = vst [vmem:[#allocation120_spill] sm:$0xff] %v5083_v5  ;;  %v5088_v12 = vld [vmem:[%s7274_s5 + $0xd0] sm:$0xff]  ;;  %v5093_v13 = vld [vmem:[%s7274_s5 + $0xd8] sm:$0xff] }
  0x45   :  { %7701 = vst [vmem:[#allocation121_spill] sm:$0xff] %v5088_v12  ;;  %7702 = vst [vmem:[#allocation122_spill] sm:$0xff] %v5093_v13  ;;  %v5098_v4 = vld [vmem:[%s7274_s5 + $0xe0] sm:$0xff]  ;;  %v5103_v7 = vld [vmem:[%s7274_s5 + $0xe8] sm:$0xff] }
  0x46   :  { %7703 = vst [vmem:[#allocation123_spill] sm:$0xff] %v5098_v4  ;;  %7704 = vst [vmem:[#allocation124_spill] sm:$0xff] %v5103_v7  ;;  %v5108_v5 = vld [vmem:[%s7274_s5 + $0xf0] sm:$0xff]  ;;  %v5113_v12 = vld [vmem:[%s7274_s5 + $0xf8] sm:$0xff] }
  0x47   :  { %7705 = vst [vmem:[#allocation125_spill] sm:$0xff] %v5108_v5  ;;  %7706 = vst [vmem:[#allocation126_spill] sm:$0xff] %v5113_v12  ;;  %v5118_v13 = vld [vmem:[%s7274_s5 + $0x100] sm:$0xff]  ;;  %v5123_v4 = vld [vmem:[%s7274_s5 + $0x108] sm:$0xff] }
  0x48   :  { %7707 = vst [vmem:[#allocation127_spill] sm:$0xff] %v5118_v13  ;;  %7708 = vst [vmem:[#allocation128_spill] sm:$0xff] %v5123_v4  ;;  %v5128_v7 = vld [vmem:[%s7274_s5 + $0x110] sm:$0xff]  ;;  %v5133_v5 = vld [vmem:[%s7274_s5 + $0x118] sm:$0xff] }
  0x49   :  { %7709 = vst [vmem:[#allocation129_spill] sm:$0xff] %v5128_v7  ;;  %7710 = vst [vmem:[#allocation130_spill] sm:$0xff] %v5133_v5  ;;  %v5138_v12 = vld [vmem:[%s7274_s5 + $0x120] sm:$0xff]  ;;  %v5143_v13 = vld [vmem:[%s7274_s5 + $0x128] sm:$0xff] }
  0x4a   :  { %7711 = vst [vmem:[#allocation131_spill] sm:$0xff] %v5138_v12  ;;  %7712 = vst [vmem:[#allocation132_spill] sm:$0xff] %v5143_v13  ;;  %v5148_v4 = vld [vmem:[%s7274_s5 + $0x130] sm:$0xff]  ;;  %v5153_v7 = vld [vmem:[%s7274_s5 + $0x138] sm:$0xff] }
  0x4b   :  { %7713 = vst [vmem:[#allocation133_spill] sm:$0xff] %v5148_v4  ;;  %7714 = vst [vmem:[#allocation134_spill] sm:$0xff] %v5153_v7  ;;  %v5158_v5 = vld [vmem:[%s7274_s5 + $0x140] sm:$0xff]  ;;  %v5163_v12 = vld [vmem:[%s7274_s5 + $0x148] sm:$0xff] }
  0x4c   :  { %7715 = vst [vmem:[#allocation135_spill] sm:$0xff] %v5158_v5  ;;  %7716 = vst [vmem:[#allocation136_spill] sm:$0xff] %v5163_v12  ;;  %v5168_v13 = vld [vmem:[%s7274_s5 + $0x150] sm:$0xff]  ;;  %v5173_v4 = vld [vmem:[%s7274_s5 + $0x158] sm:$0xff] }
  0x4d   :  { %7717 = vst [vmem:[#allocation137_spill] sm:$0xff] %v5168_v13  ;;  %7718 = vst [vmem:[#allocation138_spill] sm:$0xff] %v5173_v4  ;;  %v5178_v7 = vld [vmem:[%s7274_s5 + $0x160] sm:$0xff]  ;;  %v5183_v5 = vld [vmem:[%s7274_s5 + $0x168] sm:$0xff] }
  0x4e   :  { %7719 = vst [vmem:[#allocation139_spill] sm:$0xff] %v5178_v7  ;;  %7720 = vst [vmem:[#allocation140_spill] sm:$0xff] %v5183_v5  ;;  %v5188_v12 = vld [vmem:[%s7274_s5 + $0x170] sm:$0xff]  ;;  %v5193_v13 = vld [vmem:[%s7274_s5 + $0x178] sm:$0xff] }
  0x4f   :  { %7721 = vst [vmem:[#allocation141_spill] sm:$0xff] %v5188_v12  ;;  %7722 = vst [vmem:[#allocation142_spill] sm:$0xff] %v5193_v13  ;;  %v5198_v4 = vld [vmem:[%s7274_s5 + $0x180] sm:$0xff]  ;;  %v5203_v7 = vld [vmem:[%s7274_s5 + $0x188] sm:$0xff] }
  0x50   :  { %7723 = vst [vmem:[#allocation143_spill] sm:$0xff] %v5198_v4  ;;  %7724 = vst [vmem:[#allocation144_spill] sm:$0xff] %v5203_v7  ;;  %v5208_v5 = vld [vmem:[%s7274_s5 + $0x190] sm:$0xff]  ;;  %v5213_v12 = vld [vmem:[%s7274_s5 + $0x198] sm:$0xff] }
  0x51   :  { %7725 = vst [vmem:[#allocation145_spill] sm:$0xff] %v5208_v5  ;;  %7726 = vst [vmem:[#allocation146_spill] sm:$0xff] %v5213_v12  ;;  %v5218_v13 = vld [vmem:[%s7274_s5 + $0x1a0] sm:$0xff]  ;;  %v5223_v4 = vld [vmem:[%s7274_s5 + $0x1a8] sm:$0xff] }
  0x52   :  { %7727 = vst [vmem:[#allocation147_spill] sm:$0xff] %v5218_v13  ;;  %7728 = vst [vmem:[#allocation148_spill] sm:$0xff] %v5223_v4  ;;  %v5228_v7 = vld [vmem:[%s7274_s5 + $0x1b0] sm:$0xff]  ;;  %v5233_v5 = vld [vmem:[%s7274_s5 + $0x1b8] sm:$0xff] }
  0x53   :  { %7729 = vst [vmem:[#allocation149_spill] sm:$0xff] %v5228_v7  ;;  %7730 = vst [vmem:[#allocation150_spill] sm:$0xff] %v5233_v5  ;;  %v5238_v12 = vld [vmem:[%s7274_s5 + $0x1c0] sm:$0xff]  ;;  %v5243_v13 = vld [vmem:[%s7274_s5 + $0x1c8] sm:$0xff] }
  0x54   :  { %7731 = vst [vmem:[#allocation151_spill] sm:$0xff] %v5238_v12  ;;  %7732 = vst [vmem:[#allocation152_spill] sm:$0xff] %v5243_v13  ;;  %v5248_v4 = vld [vmem:[%s7274_s5 + $0x1d0] sm:$0xff]  ;;  %v5253_v7 = vld [vmem:[%s7274_s5 + $0x1d8] sm:$0xff] }
  0x55   :  { %7733 = vst [vmem:[#allocation153_spill] sm:$0xff] %v5248_v4  ;;  %7734 = vst [vmem:[#allocation154_spill] sm:$0xff] %v5253_v7  ;;  %v5258_v5 = vld [vmem:[%s7274_s5 + $0x1e0] sm:$0xff]  ;;  %v5263_v12 = vld [vmem:[%s7274_s5 + $0x1e8] sm:$0xff] }
  0x56   :  { %7735 = vst [vmem:[#allocation155_spill] sm:$0xff] %v5258_v5  ;;  %7736 = vst [vmem:[#allocation156_spill] sm:$0xff] %v5263_v12  ;;  %v5268_v13 = vld [vmem:[%s7274_s5 + $0x1f0] sm:$0xff]  ;;  %v5273_v4 = vld [vmem:[%s7274_s5 + $0x1f8] sm:$0xff] }
  0x57   :  { %7737 = vst [vmem:[#allocation157_spill] sm:$0xff] %v5268_v13  ;;  %7738 = vst [vmem:[#allocation158_spill] sm:$0xff] %v5273_v4  ;;  %v5278_v7 = vld [vmem:[%s7274_s5 + $0x200] sm:$0xff]  ;;  %v5283_v5 = vld [vmem:[%s7274_s5 + $0x208] sm:$0xff] }
  0x58   :  { %7739 = vst [vmem:[#allocation159_spill] sm:$0xff] %v5278_v7  ;;  %7740 = vst [vmem:[#allocation160_spill] sm:$0xff] %v5283_v5  ;;  %v5288_v12 = vld [vmem:[%s7274_s5 + $0x210] sm:$0xff]  ;;  %v5293_v13 = vld [vmem:[%s7274_s5 + $0x218] sm:$0xff] }
  0x59   :  { %7741 = vst [vmem:[#allocation161_spill] sm:$0xff] %v5288_v12  ;;  %7742 = vst [vmem:[#allocation162_spill] sm:$0xff] %v5293_v13  ;;  %v5298_v4 = vld [vmem:[%s7274_s5 + $0x220] sm:$0xff]  ;;  %v5303_v7 = vld [vmem:[%s7274_s5 + $0x228] sm:$0xff] }
  0x5a   :  { %7743 = vst [vmem:[#allocation163_spill] sm:$0xff] %v5298_v4  ;;  %7744 = vst [vmem:[#allocation164_spill] sm:$0xff] %v5303_v7  ;;  %v5308_v5 = vld [vmem:[%s7274_s5 + $0x230] sm:$0xff]  ;;  %v5313_v12 = vld [vmem:[%s7274_s5 + $0x238] sm:$0xff] }
  0x5b   :  { %7745 = vst [vmem:[#allocation165_spill] sm:$0xff] %v5308_v5  ;;  %7746 = vst [vmem:[#allocation166_spill] sm:$0xff] %v5313_v12  ;;  %v5318_v13 = vld [vmem:[%s7274_s5 + $0x240] sm:$0xff]  ;;  %v5323_v4 = vld [vmem:[%s7274_s5 + $0x248] sm:$0xff] }
  0x5c   :  { %7747 = vst [vmem:[#allocation167_spill] sm:$0xff] %v5318_v13  ;;  %7748 = vst [vmem:[#allocation168_spill] sm:$0xff] %v5323_v4  ;;  %v5328_v7 = vld [vmem:[%s7274_s5 + $0x250] sm:$0xff]  ;;  %v5333_v5 = vld [vmem:[%s7274_s5 + $0x258] sm:$0xff] }
  0x5d   :  { %7749 = vst [vmem:[#allocation169_spill] sm:$0xff] %v5328_v7  ;;  %7750 = vst [vmem:[#allocation170_spill] sm:$0xff] %v5333_v5  ;;  %v5338_v12 = vld [vmem:[%s7274_s5 + $0x260] sm:$0xff]  ;;  %v5343_v13 = vld [vmem:[%s7274_s5 + $0x268] sm:$0xff] }
  0x5e   :  { %7751 = vst [vmem:[#allocation171_spill] sm:$0xff] %v5338_v12  ;;  %7752 = vst [vmem:[#allocation172_spill] sm:$0xff] %v5343_v13  ;;  %v5348_v4 = vld [vmem:[%s7274_s5 + $0x270] sm:$0xff]  ;;  %v5353_v7 = vld [vmem:[%s7274_s5 + $0x278] sm:$0xff] }
  0x5f   :  { %7753 = vst [vmem:[#allocation173_spill] sm:$0xff] %v5348_v4  ;;  %7754 = vst [vmem:[#allocation174_spill] sm:$0xff] %v5353_v7  ;;  %v5358_v5 = vld [vmem:[%s7274_s5 + $0x280] sm:$0xff]  ;;  %v5363_v12 = vld [vmem:[%s7274_s5 + $0x288] sm:$0xff] }
  0x60   :  { %7755 = vst [vmem:[#allocation175_spill] sm:$0xff] %v5358_v5  ;;  %7756 = vst [vmem:[#allocation176_spill] sm:$0xff] %v5363_v12  ;;  %v5368_v13 = vld [vmem:[%s7274_s5 + $0x290] sm:$0xff]  ;;  %v5373_v4 = vld [vmem:[%s7274_s5 + $0x298] sm:$0xff] }
  0x61   :  { %7757 = vst [vmem:[#allocation177_spill] sm:$0xff] %v5368_v13  ;;  %7758 = vst [vmem:[#allocation178_spill] sm:$0xff] %v5373_v4  ;;  %v5378_v7 = vld [vmem:[%s7274_s5 + $0x2a0] sm:$0xff]  ;;  %v5383_v5 = vld [vmem:[%s7274_s5 + $0x2a8] sm:$0xff] }
  0x62   :  { %7759 = vst [vmem:[#allocation179_spill] sm:$0xff] %v5378_v7  ;;  %7760 = vst [vmem:[#allocation180_spill] sm:$0xff] %v5383_v5  ;;  %v5388_v12 = vld [vmem:[%s7274_s5 + $0x2b0] sm:$0xff]  ;;  %v5393_v13 = vld [vmem:[%s7274_s5 + $0x2b8] sm:$0xff] }
  0x63   :  { %7761 = vst [vmem:[#allocation181_spill] sm:$0xff] %v5388_v12  ;;  %7762 = vst [vmem:[#allocation182_spill] sm:$0xff] %v5393_v13  ;;  %v5398_v4 = vld [vmem:[%s7274_s5 + $0x2c0] sm:$0xff]  ;;  %v5403_v7 = vld [vmem:[%s7274_s5 + $0x2c8] sm:$0xff] }
  0x64   :  { %7763 = vst [vmem:[#allocation183_spill] sm:$0xff] %v5398_v4  ;;  %7764 = vst [vmem:[#allocation184_spill] sm:$0xff] %v5403_v7  ;;  %v5408_v5 = vld [vmem:[%s7274_s5 + $0x2d0] sm:$0xff]  ;;  %v5413_v12 = vld [vmem:[%s7274_s5 + $0x2d8] sm:$0xff] }
  0x65   :  { %7765 = vst [vmem:[#allocation185_spill] sm:$0xff] %v5408_v5  ;;  %7766 = vst [vmem:[#allocation186_spill] sm:$0xff] %v5413_v12  ;;  %v5418_v13 = vld [vmem:[%s7274_s5 + $0x2e0] sm:$0xff]  ;;  %v5423_v4 = vld [vmem:[%s7274_s5 + $0x2e8] sm:$0xff] }
  0x66   :  { %7767 = vst [vmem:[#allocation187_spill] sm:$0xff] %v5418_v13  ;;  %7768 = vst [vmem:[#allocation188_spill] sm:$0xff] %v5423_v4  ;;  %v5428_v7 = vld [vmem:[%s7274_s5 + $0x2f0] sm:$0xff]  ;;  %v5433_v5 = vld [vmem:[%s7274_s5 + $0x2f8] sm:$0xff] }
  0x67   :  { %7769 = vst [vmem:[#allocation189_spill] sm:$0xff] %v5428_v7  ;;  %7770 = vst [vmem:[#allocation190_spill] sm:$0xff] %v5433_v5  ;;  %v5438_v12 = vld [vmem:[%s7274_s5 + $0x300] sm:$0xff]  ;;  %v5443_v13 = vld [vmem:[%s7274_s5 + $0x308] sm:$0xff] }
  0x68   :  { %7771 = vst [vmem:[#allocation191_spill] sm:$0xff] %v5438_v12  ;;  %7772 = vst [vmem:[#allocation192_spill] sm:$0xff] %v5443_v13  ;;  %v5448_v4 = vld [vmem:[%s7274_s5 + $0x310] sm:$0xff]  ;;  %v5453_v7 = vld [vmem:[%s7274_s5 + $0x318] sm:$0xff] }
  0x69   :  { %7773 = vst [vmem:[#allocation193_spill] sm:$0xff] %v5448_v4  ;;  %7774 = vst [vmem:[#allocation194_spill] sm:$0xff] %v5453_v7  ;;  %v5458_v5 = vld [vmem:[%s7274_s5 + $0x320] sm:$0xff]  ;;  %v5463_v12 = vld [vmem:[%s7274_s5 + $0x328] sm:$0xff] }
  0x6a   :  { %7775 = vst [vmem:[#allocation195_spill] sm:$0xff] %v5458_v5  ;;  %7776 = vst [vmem:[#allocation196_spill] sm:$0xff] %v5463_v12  ;;  %v5468_v13 = vld [vmem:[%s7274_s5 + $0x330] sm:$0xff]  ;;  %v5473_v4 = vld [vmem:[%s7274_s5 + $0x338] sm:$0xff] }
  0x6b   :  { %7777 = vst [vmem:[#allocation197_spill] sm:$0xff] %v5468_v13  ;;  %7778 = vst [vmem:[#allocation198_spill] sm:$0xff] %v5473_v4  ;;  %v5478_v7 = vld [vmem:[%s7274_s5 + $0x340] sm:$0xff]  ;;  %v5483_v5 = vld [vmem:[%s7274_s5 + $0x348] sm:$0xff] }
  0x6c   :  { %7779 = vst [vmem:[#allocation199_spill] sm:$0xff] %v5478_v7  ;;  %7780 = vst [vmem:[#allocation200_spill] sm:$0xff] %v5483_v5  ;;  %v5488_v12 = vld [vmem:[%s7274_s5 + $0x350] sm:$0xff]  ;;  %v5493_v13 = vld [vmem:[%s7274_s5 + $0x358] sm:$0xff] }
  0x6d   :  { %7781 = vst [vmem:[#allocation201_spill] sm:$0xff] %v5488_v12  ;;  %7782 = vst [vmem:[#allocation202_spill] sm:$0xff] %v5493_v13  ;;  %v5498_v4 = vld [vmem:[%s7274_s5 + $0x360] sm:$0xff]  ;;  %v5503_v7 = vld [vmem:[%s7274_s5 + $0x368] sm:$0xff] }
  0x6e   :  { %7783 = vst [vmem:[#allocation203_spill] sm:$0xff] %v5498_v4  ;;  %7784 = vst [vmem:[#allocation204_spill] sm:$0xff] %v5503_v7  ;;  %v5508_v5 = vld [vmem:[%s7274_s5 + $0x370] sm:$0xff]  ;;  %v5513_v12 = vld [vmem:[%s7274_s5 + $0x378] sm:$0xff] }
  0x6f   :  { %7785 = vst [vmem:[#allocation205_spill] sm:$0xff] %v5508_v5  ;;  %7786 = vst [vmem:[#allocation206_spill] sm:$0xff] %v5513_v12  ;;  %v5518_v13 = vld [vmem:[%s7274_s5 + $0x380] sm:$0xff]  ;;  %v5523_v4 = vld [vmem:[%s7274_s5 + $0x388] sm:$0xff] }
  0x70   :  { %7787 = vst [vmem:[#allocation207_spill] sm:$0xff] %v5518_v13  ;;  %7788 = vst [vmem:[#allocation208_spill] sm:$0xff] %v5523_v4  ;;  %v5528_v7 = vld [vmem:[%s7274_s5 + $0x390] sm:$0xff]  ;;  %v5533_v5 = vld [vmem:[%s7274_s5 + $0x398] sm:$0xff] }
  0x71   :  { %7789 = vst [vmem:[#allocation209_spill] sm:$0xff] %v5528_v7  ;;  %7790 = vst [vmem:[#allocation210_spill] sm:$0xff] %v5533_v5  ;;  %v5538_v12 = vld [vmem:[%s7274_s5 + $0x3a0] sm:$0xff]  ;;  %v5543_v13 = vld [vmem:[%s7274_s5 + $0x3a8] sm:$0xff] }
  0x72   :  { %7791 = vst [vmem:[#allocation211_spill] sm:$0xff] %v5538_v12  ;;  %7792 = vst [vmem:[#allocation212_spill] sm:$0xff] %v5543_v13  ;;  %v5548_v4 = vld [vmem:[%s7274_s5 + $0x3b0] sm:$0xff]  ;;  %v5553_v7 = vld [vmem:[%s7274_s5 + $0x3b8] sm:$0xff] }
  0x73   :  { %7793 = vst [vmem:[#allocation213_spill] sm:$0xff] %v5548_v4  ;;  %7794 = vst [vmem:[#allocation214_spill] sm:$0xff] %v5553_v7  ;;  %v5558_v5 = vld [vmem:[%s7274_s5 + $0x3c0] sm:$0xff]  ;;  %v5563_v12 = vld [vmem:[%s7274_s5 + $0x3c8] sm:$0xff] }
  0x74   :  { %7795 = vst [vmem:[#allocation215_spill] sm:$0xff] %v5558_v5  ;;  %7796 = vst [vmem:[#allocation216_spill] sm:$0xff] %v5563_v12  ;;  %v5568_v13 = vld [vmem:[%s7274_s5 + $0x3d0] sm:$0xff]  ;;  %v5573_v4 = vld [vmem:[%s7274_s5 + $0x3d8] sm:$0xff] }
  0x75   :  { %7797 = vst [vmem:[#allocation217_spill] sm:$0xff] %v5568_v13  ;;  %7798 = vst [vmem:[#allocation218_spill] sm:$0xff] %v5573_v4  ;;  %v5578_v7 = vld [vmem:[%s7274_s5 + $0x3e0] sm:$0xff]  ;;  %v5583_v5 = vld [vmem:[%s7274_s5 + $0x3e8] sm:$0xff] }
  0x76   :  { %7799 = vst [vmem:[#allocation219_spill] sm:$0xff] %v5578_v7  ;;  %7800 = vst [vmem:[#allocation220_spill] sm:$0xff] %v5583_v5  ;;  %v5588_v12 = vld [vmem:[%s7274_s5 + $0x3f0] sm:$0xff]  ;;  %v5593_v13 = vld [vmem:[%s7274_s5 + $0x3f8] sm:$0xff] }
  0x77   :  { %7801 = vst [vmem:[#allocation221_spill] sm:$0xff] %v5588_v12  ;;  %7802 = vst [vmem:[#allocation222_spill] sm:$0xff] %v5593_v13  ;;  %v5598_v4 = vld [vmem:[%s7274_s5 + $0x400] sm:$0xff]  ;;  %v5603_v7 = vld [vmem:[%s7274_s5 + $0x408] sm:$0xff] }
  0x78   :  { %7803 = vst [vmem:[#allocation223_spill] sm:$0xff] %v5598_v4  ;;  %7804 = vst [vmem:[#allocation224_spill] sm:$0xff] %v5603_v7  ;;  %v5608_v5 = vld [vmem:[%s7274_s5 + $0x410] sm:$0xff]  ;;  %v5613_v12 = vld [vmem:[%s7274_s5 + $0x418] sm:$0xff] }
  0x79   :  { %7805 = vst [vmem:[#allocation225_spill] sm:$0xff] %v5608_v5  ;;  %7806 = vst [vmem:[#allocation226_spill] sm:$0xff] %v5613_v12  ;;  %v5618_v13 = vld [vmem:[%s7274_s5 + $0x420] sm:$0xff]  ;;  %v5623_v4 = vld [vmem:[%s7274_s5 + $0x428] sm:$0xff] }
  0x7a   :  { %7807 = vst [vmem:[#allocation227_spill] sm:$0xff] %v5618_v13  ;;  %7808 = vst [vmem:[#allocation228_spill] sm:$0xff] %v5623_v4  ;;  %v5628_v7 = vld [vmem:[%s7274_s5 + $0x430] sm:$0xff]  ;;  %v5633_v5 = vld [vmem:[%s7274_s5 + $0x438] sm:$0xff] }
  0x7b   :  { %7809 = vst [vmem:[#allocation229_spill] sm:$0xff] %v5628_v7  ;;  %7810 = vst [vmem:[#allocation230_spill] sm:$0xff] %v5633_v5  ;;  %v5638_v12 = vld [vmem:[%s7274_s5 + $0x440] sm:$0xff]  ;;  %v5643_v13 = vld [vmem:[%s7274_s5 + $0x448] sm:$0xff] }
  0x7c   :  { %7811 = vst [vmem:[#allocation231_spill] sm:$0xff] %v5638_v12  ;;  %7812 = vst [vmem:[#allocation232_spill] sm:$0xff] %v5643_v13  ;;  %v5648_v4 = vld [vmem:[%s7274_s5 + $0x450] sm:$0xff]  ;;  %v5653_v7 = vld [vmem:[%s7274_s5 + $0x458] sm:$0xff] }
  0x7d   :  { %7813 = vst [vmem:[#allocation233_spill] sm:$0xff] %v5648_v4  ;;  %7814 = vst [vmem:[#allocation234_spill] sm:$0xff] %v5653_v7  ;;  %v5658_v5 = vld [vmem:[%s7274_s5 + $0x460] sm:$0xff]  ;;  %v5663_v12 = vld [vmem:[%s7274_s5 + $0x468] sm:$0xff] }
  0x7e   :  { %7815 = vst [vmem:[#allocation235_spill] sm:$0xff] %v5658_v5  ;;  %7816 = vst [vmem:[#allocation236_spill] sm:$0xff] %v5663_v12  ;;  %v5668_v13 = vld [vmem:[%s7274_s5 + $0x470] sm:$0xff]  ;;  %v5673_v4 = vld [vmem:[%s7274_s5 + $0x478] sm:$0xff] }
  0x7f   :  { %7817 = vst [vmem:[#allocation237_spill] sm:$0xff] %v5668_v13  ;;  %7818 = vst [vmem:[#allocation238_spill] sm:$0xff] %v5673_v4  ;;  %v5678_v7 = vld [vmem:[%s7274_s5 + $0x480] sm:$0xff]  ;;  %v5683_v5 = vld [vmem:[%s7274_s5 + $0x488] sm:$0xff] }
  0x80   :  { %7819 = vst [vmem:[#allocation239_spill] sm:$0xff] %v5678_v7  ;;  %7820 = vst [vmem:[#allocation240_spill] sm:$0xff] %v5683_v5  ;;  %v5688_v12 = vld [vmem:[%s7274_s5 + $0x490] sm:$0xff]  ;;  %v5693_v13 = vld [vmem:[%s7274_s5 + $0x498] sm:$0xff] }
  0x81   :  { %7821 = vst [vmem:[#allocation241_spill] sm:$0xff] %v5688_v12  ;;  %7822 = vst [vmem:[#allocation242_spill] sm:$0xff] %v5693_v13  ;;  %v5698_v4 = vld [vmem:[%s7274_s5 + $0x4a0] sm:$0xff]  ;;  %v5703_v7 = vld [vmem:[%s7274_s5 + $0x4a8] sm:$0xff] }
  0x82   :  { %7823 = vst [vmem:[#allocation243_spill] sm:$0xff] %v5698_v4  ;;  %7824 = vst [vmem:[#allocation244_spill] sm:$0xff] %v5703_v7  ;;  %v5708_v5 = vld [vmem:[%s7274_s5 + $0x4b0] sm:$0xff]  ;;  %v5713_v12 = vld [vmem:[%s7274_s5 + $0x4b8] sm:$0xff] }
  0x83   :  { %7825 = vst [vmem:[#allocation245_spill] sm:$0xff] %v5708_v5  ;;  %7826 = vst [vmem:[#allocation246_spill] sm:$0xff] %v5713_v12  ;;  %v5718_v13 = vld [vmem:[%s7274_s5 + $0x4c0] sm:$0xff]  ;;  %v5723_v4 = vld [vmem:[%s7274_s5 + $0x4c8] sm:$0xff] }
  0x84   :  { %7827 = vst [vmem:[#allocation247_spill] sm:$0xff] %v5718_v13  ;;  %7828 = vst [vmem:[#allocation248_spill] sm:$0xff] %v5723_v4  ;;  %v5728_v7 = vld [vmem:[%s7274_s5 + $0x4d0] sm:$0xff]  ;;  %v5733_v5 = vld [vmem:[%s7274_s5 + $0x4d8] sm:$0xff] }
  0x85   :  { %7829 = vst [vmem:[#allocation249_spill] sm:$0xff] %v5728_v7  ;;  %7830 = vst [vmem:[#allocation250_spill] sm:$0xff] %v5733_v5  ;;  %v5738_v12 = vld [vmem:[%s7274_s5 + $0x4e0] sm:$0xff]  ;;  %v5743_v13 = vld [vmem:[%s7274_s5 + $0x4e8] sm:$0xff] }
  0x86   :  { %7831 = vst [vmem:[#allocation251_spill] sm:$0xff] %v5738_v12  ;;  %7832 = vst [vmem:[#allocation252_spill] sm:$0xff] %v5743_v13  ;;  %v5748_v4 = vld [vmem:[%s7274_s5 + $0x4f0] sm:$0xff]  ;;  %v5753_v7 = vld [vmem:[%s7274_s5 + $0x4f8] sm:$0xff] }
  0x87   :  { %7833 = vst [vmem:[#allocation253_spill] sm:$0xff] %v5748_v4  ;;  %7834 = vst [vmem:[#allocation254_spill] sm:$0xff] %v5753_v7  ;;  %v5758_v5 = vld [vmem:[%s7274_s5 + $0x500] sm:$0xff]  ;;  %v5763_v12 = vld [vmem:[%s7274_s5 + $0x508] sm:$0xff] }
  0x88   :  { %7835 = vst [vmem:[#allocation255_spill] sm:$0xff] %v5758_v5  ;;  %7836 = vst [vmem:[#allocation256_spill] sm:$0xff] %v5763_v12  ;;  %v5768_v13 = vld [vmem:[%s7274_s5 + $0x510] sm:$0xff]  ;;  %v5773_v4 = vld [vmem:[%s7274_s5 + $0x518] sm:$0xff] }
  0x89   :  { %7837 = vst [vmem:[#allocation257_spill] sm:$0xff] %v5768_v13  ;;  %7838 = vst [vmem:[#allocation258_spill] sm:$0xff] %v5773_v4  ;;  %v5778_v7 = vld [vmem:[%s7274_s5 + $0x520] sm:$0xff]  ;;  %v5783_v5 = vld [vmem:[%s7274_s5 + $0x528] sm:$0xff] }
  0x8a   :  { %7839 = vst [vmem:[#allocation259_spill] sm:$0xff] %v5778_v7  ;;  %7840 = vst [vmem:[#allocation260_spill] sm:$0xff] %v5783_v5  ;;  %v5788_v12 = vld [vmem:[%s7274_s5 + $0x530] sm:$0xff]  ;;  %v5793_v13 = vld [vmem:[%s7274_s5 + $0x538] sm:$0xff] }
  0x8b   :  { %7841 = vst [vmem:[#allocation261_spill] sm:$0xff] %v5788_v12  ;;  %7842 = vst [vmem:[#allocation262_spill] sm:$0xff] %v5793_v13  ;;  %v5798_v4 = vld [vmem:[%s7274_s5 + $0x540] sm:$0xff]  ;;  %v5803_v7 = vld [vmem:[%s7274_s5 + $0x548] sm:$0xff] }
  0x8c   :  { %7843 = vst [vmem:[#allocation263_spill] sm:$0xff] %v5798_v4  ;;  %7844 = vst [vmem:[#allocation264_spill] sm:$0xff] %v5803_v7  ;;  %v5808_v5 = vld [vmem:[%s7274_s5 + $0x550] sm:$0xff]  ;;  %v5813_v12 = vld [vmem:[%s7274_s5 + $0x558] sm:$0xff] }
  0x8d   :  { %7845 = vst [vmem:[#allocation265_spill] sm:$0xff] %v5808_v5  ;;  %7846 = vst [vmem:[#allocation266_spill] sm:$0xff] %v5813_v12  ;;  %v5818_v13 = vld [vmem:[%s7274_s5 + $0x560] sm:$0xff]  ;;  %v5823_v4 = vld [vmem:[%s7274_s5 + $0x568] sm:$0xff] }
  0x8e   :  { %7847 = vst [vmem:[#allocation267_spill] sm:$0xff] %v5818_v13  ;;  %7848 = vst [vmem:[#allocation268_spill] sm:$0xff] %v5823_v4  ;;  %v5828_v7 = vld [vmem:[%s7274_s5 + $0x570] sm:$0xff]  ;;  %v5833_v5 = vld [vmem:[%s7274_s5 + $0x578] sm:$0xff] }
  0x8f   :  { %7849 = vst [vmem:[#allocation269_spill] sm:$0xff] %v5828_v7  ;;  %7850 = vst [vmem:[#allocation270_spill] sm:$0xff] %v5833_v5  ;;  %v5838_v12 = vld [vmem:[%s7274_s5 + $0x580] sm:$0xff]  ;;  %v5843_v13 = vld [vmem:[%s7274_s5 + $0x588] sm:$0xff] }
  0x90   :  { %7851 = vst [vmem:[#allocation271_spill] sm:$0xff] %v5838_v12  ;;  %7852 = vst [vmem:[#allocation272_spill] sm:$0xff] %v5843_v13  ;;  %v5848_v4 = vld [vmem:[%s7274_s5 + $0x590] sm:$0xff]  ;;  %v5853_v7 = vld [vmem:[%s7274_s5 + $0x598] sm:$0xff] }
  0x91   :  { %7853 = vst [vmem:[#allocation273_spill] sm:$0xff] %v5848_v4  ;;  %7854 = vst [vmem:[#allocation274_spill] sm:$0xff] %v5853_v7  ;;  %v5858_v5 = vld [vmem:[%s7274_s5 + $0x5a0] sm:$0xff]  ;;  %v5863_v12 = vld [vmem:[%s7274_s5 + $0x5a8] sm:$0xff] }
  0x92   :  { %7855 = vst [vmem:[#allocation275_spill] sm:$0xff] %v5858_v5  ;;  %7856 = vst [vmem:[#allocation276_spill] sm:$0xff] %v5863_v12  ;;  %v5868_v13 = vld [vmem:[%s7274_s5 + $0x5b0] sm:$0xff]  ;;  %v5873_v4 = vld [vmem:[%s7274_s5 + $0x5b8] sm:$0xff] }
  0x93   :  { %7857 = vst [vmem:[#allocation277_spill] sm:$0xff] %v5868_v13  ;;  %7858 = vst [vmem:[#allocation278_spill] sm:$0xff] %v5873_v4  ;;  %v5878_v7 = vld [vmem:[%s7274_s5 + $0x5c0] sm:$0xff]  ;;  %v5883_v5 = vld [vmem:[%s7274_s5 + $0x5c8] sm:$0xff] }
  0x94   :  { %7859 = vst [vmem:[#allocation279_spill] sm:$0xff] %v5878_v7  ;;  %7860 = vst [vmem:[#allocation280_spill] sm:$0xff] %v5883_v5  ;;  %v5888_v12 = vld [vmem:[%s7274_s5 + $0x5d0] sm:$0xff]  ;;  %v5893_v13 = vld [vmem:[%s7274_s5 + $0x5d8] sm:$0xff] }
  0x95   :  { %7861 = vst [vmem:[#allocation281_spill] sm:$0xff] %v5888_v12  ;;  %7862 = vst [vmem:[#allocation282_spill] sm:$0xff] %v5893_v13  ;;  %v5898_v4 = vld [vmem:[%s7274_s5 + $0x5e0] sm:$0xff]  ;;  %v5903_v7 = vld [vmem:[%s7274_s5 + $0x5e8] sm:$0xff] }
  0x96   :  { %7863 = vst [vmem:[#allocation283_spill] sm:$0xff] %v5898_v4  ;;  %7864 = vst [vmem:[#allocation284_spill] sm:$0xff] %v5903_v7  ;;  %v5908_v5 = vld [vmem:[%s7274_s5 + $0x5f0] sm:$0xff]  ;;  %v5913_v12 = vld [vmem:[%s7274_s5 + $0x5f8] sm:$0xff] }
  0x97   :  { %7865 = vst [vmem:[#allocation285_spill] sm:$0xff] %v5908_v5  ;;  %7866 = vst [vmem:[#allocation286_spill] sm:$0xff] %v5913_v12  ;;  %v5918_v13 = vld [vmem:[%s7274_s5 + $0x600] sm:$0xff]  ;;  %v5923_v4 = vld [vmem:[%s7274_s5 + $0x608] sm:$0xff] }
  0x98   :  { %7867 = vst [vmem:[#allocation287_spill] sm:$0xff] %v5918_v13  ;;  %7868 = vst [vmem:[#allocation288_spill] sm:$0xff] %v5923_v4  ;;  %v5928_v7 = vld [vmem:[%s7274_s5 + $0x610] sm:$0xff]  ;;  %v5933_v5 = vld [vmem:[%s7274_s5 + $0x618] sm:$0xff] }
  0x99   :  { %7869 = vst [vmem:[#allocation289_spill] sm:$0xff] %v5928_v7  ;;  %7870 = vst [vmem:[#allocation290_spill] sm:$0xff] %v5933_v5  ;;  %v5938_v12 = vld [vmem:[%s7274_s5 + $0x620] sm:$0xff]  ;;  %v5943_v13 = vld [vmem:[%s7274_s5 + $0x628] sm:$0xff] }
  0x9a   :  { %7871 = vst [vmem:[#allocation291_spill] sm:$0xff] %v5938_v12  ;;  %7872 = vst [vmem:[#allocation292_spill] sm:$0xff] %v5943_v13  ;;  %v5948_v4 = vld [vmem:[%s7274_s5 + $0x630] sm:$0xff]  ;;  %v5953_v7 = vld [vmem:[%s7274_s5 + $0x638] sm:$0xff] }
  0x9b   :  { %7873 = vst [vmem:[#allocation293_spill] sm:$0xff] %v5948_v4  ;;  %7874 = vst [vmem:[#allocation294_spill] sm:$0xff] %v5953_v7  ;;  %v5958_v5 = vld [vmem:[%s7274_s5 + $0x640] sm:$0xff]  ;;  %v5963_v12 = vld [vmem:[%s7274_s5 + $0x648] sm:$0xff] }
  0x9c   :  { %7875 = vst [vmem:[#allocation295_spill] sm:$0xff] %v5958_v5  ;;  %7876 = vst [vmem:[#allocation296_spill] sm:$0xff] %v5963_v12  ;;  %v5968_v13 = vld [vmem:[%s7274_s5 + $0x650] sm:$0xff]  ;;  %v5973_v4 = vld [vmem:[%s7274_s5 + $0x658] sm:$0xff] }
  0x9d   :  { %7877 = vst [vmem:[#allocation297_spill] sm:$0xff] %v5968_v13  ;;  %7878 = vst [vmem:[#allocation298_spill] sm:$0xff] %v5973_v4  ;;  %v5978_v7 = vld [vmem:[%s7274_s5 + $0x660] sm:$0xff]  ;;  %v5983_v5 = vld [vmem:[%s7274_s5 + $0x668] sm:$0xff] }
  0x9e   :  { %7879 = vst [vmem:[#allocation299_spill] sm:$0xff] %v5978_v7  ;;  %7880 = vst [vmem:[#allocation300_spill] sm:$0xff] %v5983_v5  ;;  %v5988_v12 = vld [vmem:[%s7274_s5 + $0x670] sm:$0xff]  ;;  %v5993_v13 = vld [vmem:[%s7274_s5 + $0x678] sm:$0xff] }
  0x9f   :  { %7881 = vst [vmem:[#allocation301_spill] sm:$0xff] %v5988_v12  ;;  %7882 = vst [vmem:[#allocation302_spill] sm:$0xff] %v5993_v13  ;;  %v5998_v4 = vld [vmem:[%s7274_s5 + $0x680] sm:$0xff]  ;;  %v6003_v7 = vld [vmem:[%s7274_s5 + $0x688] sm:$0xff] }
  0xa0   :  { %7883 = vst [vmem:[#allocation303_spill] sm:$0xff] %v5998_v4  ;;  %7884 = vst [vmem:[#allocation304_spill] sm:$0xff] %v6003_v7  ;;  %v6008_v5 = vld [vmem:[%s7274_s5 + $0x690] sm:$0xff]  ;;  %v6013_v12 = vld [vmem:[%s7274_s5 + $0x698] sm:$0xff] }
  0xa1   :  { %7885 = vst [vmem:[#allocation305_spill] sm:$0xff] %v6008_v5  ;;  %7886 = vst [vmem:[#allocation306_spill] sm:$0xff] %v6013_v12  ;;  %v6018_v13 = vld [vmem:[%s7274_s5 + $0x6a0] sm:$0xff]  ;;  %v6023_v4 = vld [vmem:[%s7274_s5 + $0x6a8] sm:$0xff] }
  0xa2   :  { %7887 = vst [vmem:[#allocation307_spill] sm:$0xff] %v6018_v13  ;;  %7888 = vst [vmem:[#allocation308_spill] sm:$0xff] %v6023_v4  ;;  %v6028_v7 = vld [vmem:[%s7274_s5 + $0x6b0] sm:$0xff]  ;;  %v6033_v5 = vld [vmem:[%s7274_s5 + $0x6b8] sm:$0xff] }
  0xa3   :  { %7889 = vst [vmem:[#allocation309_spill] sm:$0xff] %v6028_v7  ;;  %7890 = vst [vmem:[#allocation310_spill] sm:$0xff] %v6033_v5  ;;  %v6038_v12 = vld [vmem:[%s7274_s5 + $0x6c0] sm:$0xff]  ;;  %v6043_v13 = vld [vmem:[%s7274_s5 + $0x6c8] sm:$0xff] }
  0xa4   :  { %7891 = vst [vmem:[#allocation311_spill] sm:$0xff] %v6038_v12  ;;  %7892 = vst [vmem:[#allocation312_spill] sm:$0xff] %v6043_v13  ;;  %v6048_v4 = vld [vmem:[%s7274_s5 + $0x6d0] sm:$0xff]  ;;  %v6053_v7 = vld [vmem:[%s7274_s5 + $0x6d8] sm:$0xff] }
  0xa5   :  { %7893 = vst [vmem:[#allocation313_spill] sm:$0xff] %v6048_v4  ;;  %7894 = vst [vmem:[#allocation314_spill] sm:$0xff] %v6053_v7  ;;  %v6058_v5 = vld [vmem:[%s7274_s5 + $0x6e0] sm:$0xff]  ;;  %v6063_v12 = vld [vmem:[%s7274_s5 + $0x6e8] sm:$0xff] }
  0xa6   :  { %7895 = vst [vmem:[#allocation315_spill] sm:$0xff] %v6058_v5  ;;  %7896 = vst [vmem:[#allocation316_spill] sm:$0xff] %v6063_v12  ;;  %v6068_v13 = vld [vmem:[%s7274_s5 + $0x6f0] sm:$0xff]  ;;  %v6073_v4 = vld [vmem:[%s7274_s5 + $0x6f8] sm:$0xff] }
  0xa7   :  { %7897 = vst [vmem:[#allocation317_spill] sm:$0xff] %v6068_v13  ;;  %7898 = vst [vmem:[#allocation318_spill] sm:$0xff] %v6073_v4 }
  0xa8   :  { %808 = vsyncadd [#allocation4 + $0x1], 28672  ;;  %v4107_v7 = vld [vmem:[%s7270_s1] sm:$0xff]   ;;  %v4271_v5 = vmov 0.0   ;;  %vm827_vm0 = vcmask 1041408   ;;  %vm4272_vm1 = vmmov 0  }
  0xa9   :  { %4043 = vmatprep.subr.bf16.mxu0 %v4271_v5  ;;  %v4108_v12 = vld [vmem:[%s7270_s1 + $0x8] ss:$0 sps:$4 sm:$0x33]   ;;  %4047 = vmatprep.mubr.msk.bf16.mxu0 %vm4272_vm1, %v4271_v5  ;;  %v4109_v13 = vld [vmem:[%s7271_s2 + $0x4] ss:$8 sps:$4 sm:$0xff]   ;;  %vm823_vm2 = vcmask 162816  }
  0xaa   :  { %4044 = vmatpush3.bf16.msra.mxu0 %v4107_v7  ;;  %v829_v4 = vsel %vm827_vm0, %v4108_v12, 0  ;;  %v4111_v6 = vld [vmem:[%s7271_s2] ss:$8 sps:$4 sm:$0xff]   ;;  %983 = vmatprep.subr.bf16.mxu1 %v4109_v13  ;;  %v4112_v7 = vld [vmem:[%s7271_s2 + $0x14] ss:$8 sps:$4 sm:$0xff]  }
  0xab   :  { %4045 = vmatprep.subr.bf16.mxu0 %v4271_v5  ;;  %v809_v15 = vld [vmem:[%s7269_s0] sm:$0xf]  ;;  %984 = vmatpush1.bf16.msra.mxu1 %v4111_v6  ;;  %v4114_v5 = vld [vmem:[%s7271_s2 + $0x10] ss:$8 sps:$4 sm:$0xff]   ;;  %v4115_v12 = vld [vmem:[%s7271_s2 + $0x24] ss:$8 sps:$4 sm:$0xff]  }
  0xac   :  { %985 = vmatprep.subr.bf16.mxu1 %v4112_v7  ;;  %v4118_v6 = vld [vmem:[%s7271_s2 + $0x34] ss:$8 sps:$4 sm:$0xff]   ;;  %v4120_v13 = vld [vmem:[%s7271_s2 + $0x30] ss:$8 sps:$4 sm:$0xff]   ;;  %v4121_v7 = vld [vmem:[%s7271_s2 + $0x44] ss:$8 sps:$4 sm:$0xff]  }
  0xad   :  { %v4181_v30 = vld [vmem:[%s7272_s3 + $0x8] ss:$16 sps:$4 sm:$0xff]  }
  0xae   :  { %4046 = vmatpush3.bf16.msra.mxu0 %v829_v4  ;;  %v4117_v4 = vld [vmem:[%s7271_s2 + $0x20] ss:$8 sps:$4 sm:$0xff]  }
  0xaf   :  { %986 = vmatpush1.bf16.msra.mxu1 %v4114_v5  ;;  %v4124_v5 = vld [vmem:[%s7271_s2 + $0x54] ss:$8 sps:$4 sm:$0xff]  }
  0xb0   :  { %987 = vmatprep.subr.bf16.mxu1 %v4115_v12  ;;  %v4126_v12 = vld [vmem:[%s7271_s2 + $0x50] ss:$8 sps:$4 sm:$0xff]  }
  0xb1   :  { %4048 = vmatmul.mubr.msk.bf16.vlgmr.msra.gmra.mrb[0].mxu0 %vm823_vm2, %v809_v15  ;;  %v4123_v15 = vld [vmem:[%s7271_s2 + $0x40] ss:$8 sps:$4 sm:$0xff]  }
  0xb3   :  { %988 = vmatpush1.bf16.msra.mxu1 %v4117_v4  ;;  %v4127_v4 = vld [vmem:[%s7271_s2 + $0x64] ss:$8 sps:$4 sm:$0xff]  }
  0xb4   :  { %989 = vmatprep.subr.bf16.mxu1 %v4118_v6  ;;  %v4129_v6 = vld [vmem:[%s7271_s2 + $0x60] ss:$8 sps:$4 sm:$0xff]  }
  0xb7   :  { %990 = vmatpush1.bf16.msra.mxu1 %v4120_v13  ;;  %v4130_v13 = vld [vmem:[%s7271_s2 + $0x74] ss:$8 sps:$4 sm:$0xff]  }
  0xb8   :  { %991 = vmatprep.subr.bf16.mxu1 %v4121_v7  ;;  %v4132_v7 = vld [vmem:[%s7271_s2 + $0x70] ss:$8 sps:$4 sm:$0xff]  }
  0xbb   :  { %992 = vmatpush1.bf16.msra.mxu1 %v4123_v15  ;;  %v4273_v15 = vmov 0  }
  0xbc   :  { %993 = vmatprep.subr.bf16.mxu1 %v4124_v5  ;;  %1015 = vmatprep.mubr.bf16.mxu1 %v4273_v15  ;;  %v4135_v5 = vld [vmem:[%s7272_s3 + $0x4] ss:$16 sps:$4 sm:$0xff]  }
  0xbd   :  { %v4138_v15 = vld [vmem:[%s7272_s3 + $0x24] ss:$16 sps:$4 sm:$0xff]  }
  0xbf   :  { %994 = vmatpush1.bf16.msra.mxu1 %v4126_v12  ;;  %v813_v12 = vld [vmem:[%s7275_s6] ss:$0 sm:$0xff] }
  0xc0   :  { %995 = vmatprep.subr.bf16.mxu1 %v4127_v4 }
  0xc3   :  { %996 = vmatpush1.bf16.msra.mxu1 %v4129_v6 }
  0xc4   :  { %997 = vmatprep.subr.bf16.mxu1 %v4130_v13  ;;  %v4133_v13 = vld [vmem:[%s7272_s3] ss:$16 sps:$4 sm:$0xff]  }
  0xc7   :  { %998 = vmatpush1.bf16.msra.mxu1 %v4132_v7 }
  0xc8   :  { %1437 = vmatprep.subr.bf16.mxu1 %v4135_v5  ;;  %v4136_v5 = vld [vmem:[%s7272_s3 + $0x20] ss:$16 sps:$4 sm:$0xff]  }
 0x184   :  { %v865_v4 = vpop.f32.mrb[0].mxu0 }
 0x185   :  { %v866_v6 = vadd.f32 %v865_v4, %v813_v12  ;;  %v4049_v21 = vpop.f32.mrb[1].mxu0  ;;  %v4145_v12 = vld [vmem:[%s7272_s3 + $0x80] ss:$16 sps:$4 sm:$0xff]   ;;  %v4150_v4 = vld [vmem:[%s7272_s3 + $0xa4] ss:$16 sps:$4 sm:$0xff]  }
 0x186   :  { %v868_v20 = vpop.f32.mrb[2].mxu0  ;;  %v4144_v21 = vld [vmem:[%s7272_s3 + $0x64] ss:$16 sps:$4 sm:$0xff]  }
 0x187   :  { %v871_v14 = vmul.f32 0.2, %v866_v6  ;;  %v4050_v23 = vpop.f32.mrb[3].mxu0  ;;  %v4139_v20 = vld [vmem:[%s7272_s3 + $0x40] ss:$16 sps:$4 sm:$0xff]  }
 0x188   :  { %v4142_v23 = vld [vmem:[%s7272_s3 + $0x60] ss:$16 sps:$4 sm:$0xff]  }
 0x189   :  { %v872_v29 = vmax.f32 %v866_v6, %v871_v14  ;;  %v4141_v14 = vld [vmem:[%s7272_s3 + $0x44] ss:$16 sps:$4 sm:$0xff]   ;;  %v4148_v6 = vld [vmem:[%s7272_s3 + $0xa0] ss:$16 sps:$4 sm:$0xff]  }
 0x18b   :  { %v873_v7 = vpack.c.bf16 %v872_v29, %v872_v29  ;;  %v4147_v29 = vld [vmem:[%s7272_s3 + $0x84] ss:$16 sps:$4 sm:$0xff]  }
 0x18d   :  { %1016 = vmatmul.mubr.bf16.vlgmr.msra.gmra.mrb[0].mxu1 %v873_v7  ;;  %v4151_v7 = vld [vmem:[%s7272_s3 + $0xc0] ss:$16 sps:$4 sm:$0xff]  }
 0x18e   :  { %1438 = vmatpush1.bf16.msra.mxu1 %v4133_v13  ;;  %v4153_v13 = vld [vmem:[%s7272_s3 + $0xc4] ss:$16 sps:$4 sm:$0xff]  }
 0x18f   :  { %1439 = vmatprep.subr.bf16.mxu1 %v4138_v15  ;;  %v4156_v15 = vld [vmem:[%s7272_s3 + $0xe4] ss:$16 sps:$4 sm:$0xff]  }
 0x192   :  { %1440 = vmatpush1.bf16.msra.mxu1 %v4136_v5  ;;  %v4154_v5 = vld [vmem:[%s7272_s3 + $0xe0] ss:$16 sps:$4 sm:$0xff]  }
 0x193   :  { %1441 = vmatprep.subr.bf16.mxu1 %v4141_v14  ;;  %v4159_v14 = vld [vmem:[%s7272_s3 + $0x104] ss:$16 sps:$4 sm:$0xff]  }
 0x196   :  { %1442 = vmatpush1.bf16.msra.mxu1 %v4139_v20  ;;  %v4157_v20 = vld [vmem:[%s7272_s3 + $0x100] ss:$16 sps:$4 sm:$0xff]  }
 0x197   :  { %1443 = vmatprep.subr.bf16.mxu1 %v4144_v21  ;;  %v4162_v21 = vld [vmem:[%s7272_s3 + $0x124] ss:$16 sps:$4 sm:$0xff]  }
 0x19a   :  { %1444 = vmatpush1.bf16.msra.mxu1 %v4142_v23  ;;  %v4160_v23 = vld [vmem:[%s7272_s3 + $0x120] ss:$16 sps:$4 sm:$0xff]  }
 0x19b   :  { %1445 = vmatprep.subr.bf16.mxu1 %v4147_v29  ;;  %v4165_v29 = vld [vmem:[%s7272_s3 + $0x144] ss:$16 sps:$4 sm:$0xff]  }
 0x19e   :  { %1446 = vmatpush1.bf16.msra.mxu1 %v4145_v12  ;;  %v4163_v12 = vld [vmem:[%s7272_s3 + $0x140] ss:$16 sps:$4 sm:$0xff]  }
 0x19f   :  { %1447 = vmatprep.subr.bf16.mxu1 %v4150_v4  ;;  %v4168_v4 = vld [vmem:[%s7272_s3 + $0x164] ss:$16 sps:$4 sm:$0xff]  }
 0x1a2   :  { %1448 = vmatpush1.bf16.msra.mxu1 %v4148_v6  ;;  %v4166_v6 = vld [vmem:[%s7272_s3 + $0x160] ss:$16 sps:$4 sm:$0xff]  }
 0x1a3   :  { %1449 = vmatprep.subr.bf16.mxu1 %v4153_v13  ;;  %v4171_v13 = vld [vmem:[%s7272_s3 + $0x184] ss:$16 sps:$4 sm:$0xff]  }
 0x1a6   :  { %1450 = vmatpush1.bf16.msra.mxu1 %v4151_v7  ;;  %v4169_v7 = vld [vmem:[%s7272_s3 + $0x180] ss:$16 sps:$4 sm:$0xff]  }
 0x1a7   :  { %1451 = vmatprep.subr.bf16.mxu1 %v4156_v15  ;;  %v4174_v15 = vld [vmem:[%s7272_s3 + $0x1a4] ss:$16 sps:$4 sm:$0xff]  }
 0x1aa   :  { %1452 = vmatpush1.bf16.msra.mxu1 %v4154_v5  ;;  %v4172_v5 = vld [vmem:[%s7272_s3 + $0x1a0] ss:$16 sps:$4 sm:$0xff]  }
 0x1ab   :  { %1453 = vmatprep.subr.bf16.mxu1 %v4159_v14  ;;  %v4177_v14 = vld [vmem:[%s7272_s3 + $0x1c4] ss:$16 sps:$4 sm:$0xff]  }
 0x1ae   :  { %1454 = vmatpush1.bf16.msra.mxu1 %v4157_v20  ;;  %v4175_v20 = vld [vmem:[%s7272_s3 + $0x1c0] ss:$16 sps:$4 sm:$0xff]  }
 0x1af   :  { %1455 = vmatprep.subr.bf16.mxu1 %v4162_v21  ;;  %v4180_v21 = vld [vmem:[%s7272_s3 + $0x1e4] ss:$16 sps:$4 sm:$0xff]  }
 0x1b2   :  { %1456 = vmatpush1.bf16.msra.mxu1 %v4160_v23  ;;  %v4178_v23 = vld [vmem:[%s7272_s3 + $0x1e0] ss:$16 sps:$4 sm:$0xff]  }
 0x1b3   :  { %1457 = vmatprep.subr.bf16.mxu1 %v4165_v29  ;;  %v4183_v29 = vld [vmem:[%s7272_s3 + $0xc] ss:$16 sps:$4 sm:$0xff]  }
 0x1b6   :  { %1458 = vmatpush1.bf16.msra.mxu1 %v4163_v12  ;;  %v893_v12 = vlaneseq }
 0x1b7   :  { %1459 = vmatprep.subr.bf16.mxu1 %v4168_v4 }
 0x1b8   :  { %v6234_v4 = vshrl.u32 %v893_v12, 7 }
 0x1ba   :  { %1460 = vmatpush1.bf16.msra.mxu1 %v4166_v6  ;;  %7899 = vst [vmem:[#allocation319_spill] sm:$0xff] %v6234_v4  ;;  %v6237_v6 = vsub.s32 0, %v6234_v4 }
 0x1bb   :  { %1461 = vmatprep.subr.bf16.mxu1 %v4171_v13  ;;  %v3860_v13 = vld [vmem:[%s7275_s6 + $0x1] ss:$8 sm:$0x3] }
 0x1bc   :  { %7900 = vst [vmem:[#allocation320_spill] sm:$0xff] %v6237_v6 }
 0x1be   :  { %1462 = vmatpush1.bf16.msra.mxu1 %v4169_v7  ;;  %v6243_v7 = vsub.s32 1, %v6234_v4 }
 0x1bf   :  { %1463 = vmatprep.subr.bf16.mxu1 %v4174_v15  ;;  %v896_v15 = vrot.slane %v3860_v13, %v6237_v6 }
 0x1c0   :  { %7901 = vst [vmem:[#allocation321_spill] sm:$0xff] %v6243_v7 }
 0x1c2   :  { %1464 = vmatpush1.bf16.msra.mxu1 %v4172_v5  ;;  %v900_v5 = vrot.slane %v3860_v13, %v6243_v7  ;;  %v4186_v13 = vld [vmem:[%s7272_s3 + $0x2c] ss:$16 sps:$4 sm:$0xff]  }
 0x1c3   :  { %1465 = vmatprep.subr.bf16.mxu1 %v4177_v14 }
 0x1c6   :  { %1466 = vmatpush1.bf16.msra.mxu1 %v4175_v20 }
 0x1c7   :  { %1467 = vmatprep.subr.bf16.mxu1 %v4180_v21 }
 0x1ca   :  { %1468 = vmatpush1.bf16.msra.mxu1 %v4178_v23 }
 0x1cb   :  { %1478 = vmatprep.subr.bf16.mxu1 %v4183_v29 }
 0x260   :  { %v1017_v14 = vpop.f32.mrb[0].mxu1 }
 0x261   :  { %v1018_v20 = vadd.f32 %v1017_v14, %v896_v15  ;;  %v1019_v21 = vpop.f32.mrb[1].mxu1  ;;  %v4193_v15 = vld [vmem:[%s7272_s3 + $0x88] ss:$16 sps:$4 sm:$0xff]  }
 0x262   :  { %v1020_v23 = vadd.f32 %v1019_v21, %v900_v5  ;;  %v1021_v29 = vpop.f32.mrb[2].mxu1  ;;  %v4198_v5 = vld [vmem:[%s7272_s3 + $0xac] ss:$16 sps:$4 sm:$0xff]   ;;  %v4196_v14 = vld [vmem:[%s7272_s3 + $0xa8] ss:$16 sps:$4 sm:$0xff]  }
 0x263   :  { %v1024_v12 = vmul.f32 0.2, %v1018_v20  ;;  %v1022_v28 = vpop.f32.mrb[3].mxu1  ;;  %v4199_v21 = vld [vmem:[%s7272_s3 + $0xc8] ss:$16 sps:$4 sm:$0xff]  }
 0x264   :  { %v1025_v22 = vmul.f32 0.2, %v1020_v23  ;;  %v4189_v28 = vld [vmem:[%s7272_s3 + $0x4c] ss:$16 sps:$4 sm:$0xff]   ;;  %v4202_v29 = vld [vmem:[%s7272_s3 + $0xe8] ss:$16 sps:$4 sm:$0xff]  }
 0x265   :  { %v1026_v31 = vmax.f32 %v1018_v20, %v1024_v12  ;;  %v4201_v20 = vld [vmem:[%s7272_s3 + $0xcc] ss:$16 sps:$4 sm:$0xff]  }
 0x266   :  { %v1027_v37 = vmax.f32 %v1020_v23, %v1025_v22  ;;  %v4184_v22 = vld [vmem:[%s7272_s3 + $0x28] ss:$16 sps:$4 sm:$0xff]   ;;  %v4204_v23 = vld [vmem:[%s7272_s3 + $0xec] ss:$16 sps:$4 sm:$0xff]  }
 0x267   :  { %v6250_v39 = vpack.c.bf16 %v1026_v31, %v1026_v31  ;;  %v4187_v31 = vld [vmem:[%s7272_s3 + $0x48] ss:$16 sps:$4 sm:$0xff]   ;;  %v4207_v12 = vld [vmem:[%s7272_s3 + $0x10c] ss:$16 sps:$4 sm:$0xff]  }
 0x268   :  { %v1029_v36 = vpack.c.bf16 %v1027_v37, %v1027_v37  ;;  %v4195_v37 = vld [vmem:[%s7272_s3 + $0x8c] ss:$16 sps:$4 sm:$0xff]  }
 0x26a   :  { %1469 = vmatprep.mubr.bf16.mxu1 %v1029_v36 }
 0x26b   :  { %1470 = vmatmul.mubr.bf16.vlgmr.msra.gmra.mrb[4].mxu1 %v6250_v39 }
 0x26c   :  { %1479 = vmatpush1.bf16.msra.mxu1 %v4181_v30  ;;  %1510 = vmatprep.mubr.bf16.mxu1 %v1029_v36  ;;  %v4192_v30 = vld [vmem:[%s7272_s3 + $0x6c] ss:$16 sps:$4 sm:$0xff]   ;;  %v4190_v36 = vld [vmem:[%s7272_s3 + $0x68] ss:$16 sps:$4 sm:$0xff]  }
 0x26d   :  { %1480 = vmatprep.subr.bf16.mxu1 %v4186_v13  ;;  %v4205_v13 = vld [vmem:[%s7272_s3 + $0x108] ss:$16 sps:$4 sm:$0xff]  }
 0x270   :  { %1481 = vmatpush1.bf16.msra.mxu1 %v4184_v22  ;;  %v4210_v22 = vld [vmem:[%s7272_s3 + $0x12c] ss:$16 sps:$4 sm:$0xff]  }
 0x271   :  { %1482 = vmatprep.subr.bf16.mxu1 %v4189_v28  ;;  %v4208_v28 = vld [vmem:[%s7272_s3 + $0x128] ss:$16 sps:$4 sm:$0xff]  }
 0x274   :  { %1483 = vmatpush1.bf16.msra.mxu1 %v4187_v31  ;;  %v4213_v31 = vld [vmem:[%s7272_s3 + $0x14c] ss:$16 sps:$4 sm:$0xff]  }
 0x275   :  { %1484 = vmatprep.subr.bf16.mxu1 %v4192_v30  ;;  %v4211_v30 = vld [vmem:[%s7272_s3 + $0x148] ss:$16 sps:$4 sm:$0xff]  }
 0x278   :  { %1485 = vmatpush1.bf16.msra.mxu1 %v4190_v36  ;;  %v4216_v36 = vld [vmem:[%s7272_s3 + $0x16c] ss:$16 sps:$4 sm:$0xff]  }
 0x279   :  { %1486 = vmatprep.subr.bf16.mxu1 %v4195_v37  ;;  %v4214_v37 = vld [vmem:[%s7272_s3 + $0x168] ss:$16 sps:$4 sm:$0xff]  }
 0x27c   :  { %1487 = vmatpush1.bf16.msra.mxu1 %v4193_v15  ;;  %v4219_v15 = vld [vmem:[%s7272_s3 + $0x18c] ss:$16 sps:$4 sm:$0xff]  }
 0x27d   :  { %1488 = vmatprep.subr.bf16.mxu1 %v4198_v5  ;;  %v4217_v5 = vld [vmem:[%s7272_s3 + $0x188] ss:$16 sps:$4 sm:$0xff]  }
 0x280   :  { %1489 = vmatpush1.bf16.msra.mxu1 %v4196_v14  ;;  %v4222_v14 = vld [vmem:[%s7272_s3 + $0x1ac] ss:$16 sps:$4 sm:$0xff]  }
 0x281   :  { %1490 = vmatprep.subr.bf16.mxu1 %v4201_v20  ;;  %v4220_v20 = vld [vmem:[%s7272_s3 + $0x1a8] ss:$16 sps:$4 sm:$0xff]  }
 0x284   :  { %1491 = vmatpush1.bf16.msra.mxu1 %v4199_v21  ;;  %v4225_v21 = vld [vmem:[%s7272_s3 + $0x1cc] ss:$16 sps:$4 sm:$0xff]  }
 0x285   :  { %1492 = vmatprep.subr.bf16.mxu1 %v4204_v23  ;;  %v4223_v23 = vld [vmem:[%s7272_s3 + $0x1c8] ss:$16 sps:$4 sm:$0xff]  }
 0x288   :  { %1493 = vmatpush1.bf16.msra.mxu1 %v4202_v29  ;;  %v4228_v29 = vld [vmem:[%s7272_s3 + $0x1ec] ss:$16 sps:$4 sm:$0xff]  }
 0x289   :  { %1494 = vmatprep.subr.bf16.mxu1 %v4207_v12  ;;  %v4226_v12 = vld [vmem:[%s7272_s3 + $0x1e8] ss:$16 sps:$4 sm:$0xff]  }
 0x28c   :  { %1495 = vmatpush1.bf16.msra.mxu1 %v4205_v13  ;;  %v3877_v13 = vld [vmem:[%s7275_s6 + $0x2] ss:$8 sm:$0xf] }
 0x28d   :  { %1496 = vmatprep.subr.bf16.mxu1 %v4210_v22  ;;  %v1100_v22 = vrot.slane %v3877_v13, %v6237_v6 }
 0x290   :  { %1497 = vmatpush1.bf16.msra.mxu1 %v4208_v28  ;;  %v1104_v28 = vrot.slane %v3877_v13, %v6243_v7 }
 0x291   :  { %1498 = vmatprep.subr.bf16.mxu1 %v4213_v31 }
 0x294   :  { %1499 = vmatpush1.bf16.msra.mxu1 %v4211_v30 }
 0x295   :  { %1500 = vmatprep.subr.bf16.mxu1 %v4216_v36 }
 0x298   :  { %1501 = vmatpush1.bf16.msra.mxu1 %v4214_v37 }
 0x299   :  { %1502 = vmatprep.subr.bf16.mxu1 %v4219_v15 }
 0x29c   :  { %1503 = vmatpush1.bf16.msra.mxu1 %v4217_v5 }
 0x29d   :  { %1504 = vmatprep.subr.bf16.mxu1 %v4222_v14 }
 0x2a0   :  { %1505 = vmatpush1.bf16.msra.mxu1 %v4220_v20 }
 0x2a1   :  { %1506 = vmatprep.subr.bf16.mxu1 %v4225_v21 }
 0x2a4   :  { %1507 = vmatpush1.bf16.msra.mxu1 %v4223_v23 }
 0x2a5   :  { %1508 = vmatprep.subr.bf16.mxu1 %v4228_v29  ;;  %v6355_v29 = vsub.s32 3, %v6234_v4 }
 0x2a7   :  { %v1112_v7 = vrot.slane %v3877_v13, %v6355_v29 }
 0x2a8   :  { %1509 = vmatpush1.bf16.msra.mxu1 %v4226_v12 }
 0x2ab   :  { %1511 = vmatmul.mubr.bf16.vlgmr.msra.gmra.mrb[8].mxu1 %v6250_v39  ;;  %v6352_v39 = vsub.s32 2, %v6234_v4  ;;  %v1662_v4 = vunpack.c.l.s8.bf16 %v4333_v3 }
 0x2ad   :  { %7902 = vst [vmem:[#allocation322_spill] sm:$0xff] %v6352_v39  ;;  %v1108_v12 = vrot.slane %v3877_v13, %v6352_v39  ;;  %v1659_v39 = vunpack.c.l.s8.bf16 %v4318_v0  ;;  %v1661_v13 = vunpack.c.l.s8.bf16 %v4328_v2 }
 0x33e   :  { %v1471_v31 = vpop.f32.mrb[4].mxu1 }
 0x33f   :  { %v1472_v30 = vadd.f32 %v1471_v31, %v1100_v22  ;;  %v1473_v36 = vpop.f32.mrb[5].mxu1 }
 0x340   :  { %v1474_v37 = vadd.f32 %v1473_v36, %v1104_v28  ;;  %v1475_v15 = vpop.f32.mrb[6].mxu1 }
 0x341   :  { %v1519_v5 = vmul.f32 0.2, %v1472_v30  ;;  %v1476_v14 = vpop.f32.mrb[7].mxu1 }
 0x342   :  { %v1520_v20 = vmul.f32 0.2, %v1474_v37 }
 0x343   :  { %v6349_v21 = vmax.f32 %v1472_v30, %v1519_v5 }
 0x344   :  { %v1524_v23 = vmax.f32 %v1474_v37, %v1520_v20  ;;  %v1660_v20 = vunpack.c.l.s8.bf16 %v4323_v1 }
 0x37e   :  { %v1512_v22 = vpop.f32.mrb[8].mxu1 }
 0x37f   :  { %v1513_v31 = vadd.f32 %v1512_v22, %v1108_v12  ;;  %v1514_v28 = vpop.f32.mrb[9].mxu1 }
 0x380   :  { %v1515_v36 = vadd.f32 %v1514_v28, %v1112_v7  ;;  %v1516_v15 = vpop.f32.mrb[10].mxu1 }
 0x381   :  { %v1521_v14 = vmul.f32 0.2, %v1513_v31  ;;  %v1517_v6 = vpop.f32.mrb[11].mxu1 }
 0x382   :  { %v1522_v30 = vmul.f32 0.2, %v1515_v36 }
 0x383   :  { %v6359_v5 = vmax.f32 %v1513_v31, %v1521_v14 }
 0x384   :  { %v6361_v37 = vmax.f32 %v1515_v36, %v1522_v30 }
 0x385   :  { %4265 = dma.done.wait [#allocation4], 16384 }
 0x386   :  { %4266 = vsyncadd [#allocation4], 4294950912  ;;  %v1668_v7 = vunpack.c.h.s8.bf16 %v4323_v1  ;;  %v1670_v12 = vunpack.c.h.s8.bf16 %v4333_v3  ;;  %1919 = vmatprep.subr.bf16.mxu0 %v1660_v20  ;;  %2001 = vmatprep.subr.bf16.mxu1 %v1662_v4  ;;  %v1667_v6 = vunpack.c.h.s8.bf16 %v4318_v0  ;;  %v1669_v22 = vunpack.c.h.s8.bf16 %v4328_v2 }
 0x387   :  { %1920 = vmatpush1.bf16.msra.mxu0 %v1659_v39  ;;  %2002 = vmatpush1.bf16.msra.mxu1 %v1661_v13  ;;  %v1676_v31 = vunpack.c.l.s8.bf16 %v4363_v9  ;;  %v1678_v28 = vunpack.c.l.s8.bf16 %v4373_v11  ;;  %v1675_v1 = vunpack.c.l.s8.bf16 %v4358_v8  ;;  %v1677_v3 = vunpack.c.l.s8.bf16 %v4368_v10 }
 0x388   :  { %1921 = vmatprep.subr.bf16.mxu0 %v1668_v7  ;;  %2003 = vmatprep.subr.bf16.mxu1 %v1670_v12  ;;  %v1684_v4 = vunpack.c.h.s8.bf16 %v4363_v9  ;;  %v1686_v0 = vunpack.c.h.s8.bf16 %v4373_v11  ;;  %v1683_v2 = vunpack.c.h.s8.bf16 %v4358_v8  ;;  %v1685_v39 = vunpack.c.h.s8.bf16 %v4368_v10 }
 0x389   :  { %v1692_v36 = vunpack.c.l.s8.bf16 %v4403_v17  ;;  %v1694_v15 = vunpack.c.l.s8.bf16 %v4413_v19  ;;  %v1691_v14 = vunpack.c.l.s8.bf16 %v4398_v16  ;;  %v1693_v9 = vunpack.c.l.s8.bf16 %v4408_v18 }
 0x38a   :  { %v1700_v11 = vunpack.c.h.s8.bf16 %v4403_v17  ;;  %v1702_v8 = vunpack.c.h.s8.bf16 %v4413_v19  ;;  %v6385_v30 = vpack.c.bf16 %v1524_v23, %v1524_v23  ;;  %v1699_v10 = vunpack.c.h.s8.bf16 %v4398_v16 }
 0x38b   :  { %1922 = vmatpush1.bf16.msra.mxu0 %v1667_v6  ;;  %2004 = vmatpush1.bf16.msra.mxu1 %v1669_v22  ;;  %v1701_v20 = vunpack.c.h.s8.bf16 %v4408_v18  ;;  %v1708_v13 = vunpack.c.l.s8.bf16 %v4443_v25  ;;  %v1710_v17 = vunpack.c.l.s8.bf16 %v4453_v27  ;;  %v1707_v19 = vunpack.c.l.s8.bf16 %v4438_v24 }
 0x38c   :  { %1923 = vmatprep.subr.bf16.mxu0 %v1676_v31  ;;  %2005 = vmatprep.subr.bf16.mxu1 %v1678_v28  ;;  %v1709_v23 = vunpack.c.l.s8.bf16 %v4448_v26  ;;  %v1716_v7 = vunpack.c.h.s8.bf16 %v4443_v25  ;;  %v1718_v16 = vunpack.c.h.s8.bf16 %v4453_v27  ;;  %v1715_v18 = vunpack.c.h.s8.bf16 %v4438_v24 }
 0x38d   :  { %1951 = vmatprep.mubr.bf16.mxu0 %v6385_v30  ;;  %2033 = vmatprep.mubr.bf16.mxu1 %v6385_v30  ;;  %v1717_v12 = vunpack.c.h.s8.bf16 %v4448_v26  ;;  %v1724_v6 = vunpack.c.l.s8.bf16 %v4483_v33  ;;  %v1726_v22 = vunpack.c.l.s8.bf16 %v4493_v35  ;;  %v1723_v31 = vunpack.c.l.s8.bf16 %v4478_v32 }
 0x38e   :  { %v1725_v25 = vunpack.c.l.s8.bf16 %v4488_v34  ;;  %v1732_v27 = vunpack.c.h.s8.bf16 %v4483_v33  ;;  %v1734_v24 = vunpack.c.h.s8.bf16 %v4493_v35  ;;  %v1731_v26 = vunpack.c.h.s8.bf16 %v4478_v32 }
 0x38f   :  { %1924 = vmatpush1.bf16.msra.mxu0 %v1675_v1  ;;  %2006 = vmatpush1.bf16.msra.mxu1 %v1677_v3  ;;  %v1733_v28 = vunpack.c.h.s8.bf16 %v4488_v34  ;;  %v1740_v1 = vunpack.c.l.s8.bf16 %v4523_v41  ;;  %v1742_v3 = vunpack.c.l.s8.bf16 %v4533_v43  ;;  %v1741_v33 = vunpack.c.l.s8.bf16 %v4528_v42 }
 0x390   :  { %1925 = vmatprep.subr.bf16.mxu0 %v1684_v4  ;;  %2007 = vmatprep.subr.bf16.mxu1 %v1686_v0  ;;  %v1739_v4 = vunpack.c.l.s8.bf16 %v4518_v40  ;;  %v1748_v35 = vunpack.c.h.s8.bf16 %v4523_v41  ;;  %v1750_v32 = vunpack.c.h.s8.bf16 %v4533_v43  ;;  %v1747_v34 = vunpack.c.h.s8.bf16 %v4518_v40 }
 0x391   :  { %v1749_v0 = vunpack.c.h.s8.bf16 %v4528_v42  ;;  %v1757_v41 = vunpack.c.l.s8.bf16 %v4568_v50  ;;  %v1764_v43 = vunpack.c.h.s8.bf16 %v4563_v49  ;;  %v1766_v40 = vunpack.c.h.s8.bf16 %v4573_v51 }
 0x392   :  { %v1763_v42 = vunpack.c.h.s8.bf16 %v4558_v48 }
 0x393   :  { %1926 = vmatpush1.bf16.msra.mxu0 %v1683_v2  ;;  %2008 = vmatpush1.bf16.msra.mxu1 %v1685_v39  ;;  %v1756_v2 = vunpack.c.l.s8.bf16 %v4563_v49  ;;  %v1758_v39 = vunpack.c.l.s8.bf16 %v4573_v51  ;;  %v1773_v49 = vunpack.c.l.s8.bf16 %v4608_v58  ;;  %v1780_v51 = vunpack.c.h.s8.bf16 %v4603_v57 }
 0x394   :  { %1927 = vmatprep.subr.bf16.mxu0 %v1692_v36  ;;  %2009 = vmatprep.subr.bf16.mxu1 %v1694_v15  ;;  %v1755_v36 = vunpack.c.l.s8.bf16 %v4558_v48  ;;  %v1765_v15 = vunpack.c.h.s8.bf16 %v4568_v50  ;;  %v1782_v48 = vunpack.c.h.s8.bf16 %v4613_v59  ;;  %v1779_v50 = vunpack.c.h.s8.bf16 %v4598_v56 }
 0x397   :  { %1928 = vmatpush1.bf16.msra.mxu0 %v1691_v14  ;;  %2010 = vmatpush1.bf16.msra.mxu1 %v1693_v9  ;;  %v1772_v14 = vunpack.c.l.s8.bf16 %v4603_v57  ;;  %v1774_v9 = vunpack.c.l.s8.bf16 %v4613_v59  ;;  %v1787_v57 = vunpack.c.l.s8.bf16 %v4638_v54  ;;  %v1789_v59 = vunpack.c.l.s8.bf16 %v4648_v61 }
 0x398   :  { %1929 = vmatprep.subr.bf16.mxu0 %v1700_v11  ;;  %2011 = vmatprep.subr.bf16.mxu1 %v1702_v8  ;;  %v1771_v11 = vunpack.c.l.s8.bf16 %v4598_v56  ;;  %v1781_v8 = vunpack.c.h.s8.bf16 %v4608_v58  ;;  %v1796_v56 = vunpack.c.h.s8.bf16 %v4643_v60  ;;  %v1798_v58 = vunpack.c.h.s8.bf16 %v4653_v62 }
 0x39b   :  { %1930 = vmatpush1.bf16.msra.mxu0 %v1699_v10  ;;  %2012 = vmatpush1.bf16.msra.mxu1 %v1701_v20  ;;  %v1788_v10 = vunpack.c.l.s8.bf16 %v4643_v60  ;;  %v1790_v20 = vunpack.c.l.s8.bf16 %v4653_v62  ;;  %v1804_v60 = vunpack.c.l.s8.bf16 %v4683_v63  ;;  %v1806_v62 = vunpack.c.l.s8.bf16 %v4693_v55 }
 0x39c   :  { %1931 = vmatprep.subr.bf16.mxu0 %v1708_v13  ;;  %2013 = vmatprep.subr.bf16.mxu1 %v1710_v17  ;;  %v6435_v13 = vpack.c.bf16 %v6349_v21, %v6349_v21  ;;  %v6443_v17 = vpack.c.bf16 %v6361_v37, %v6361_v37  ;;  %v1795_v21 = vunpack.c.h.s8.bf16 %v4638_v54  ;;  %v1803_v37 = vunpack.c.l.s8.bf16 %v4678_v46 }
 0x39d   :  { %v1812_v54 = vunpack.c.h.s8.bf16 %v4683_v63  ;;  %v1821_v63 = vunpack.c.l.s8.bf16 %v4728_v44 }
 0x39f   :  { %1932 = vmatpush1.bf16.msra.mxu0 %v1707_v19  ;;  %2014 = vmatpush1.bf16.msra.mxu1 %v1709_v23  ;;  %v1797_v19 = vunpack.c.h.s8.bf16 %v4648_v61  ;;  %v1805_v23 = vunpack.c.l.s8.bf16 %v4688_v52  ;;  %v1814_v61 = vunpack.c.h.s8.bf16 %v4693_v55  ;;  %v1828_v55 = vunpack.c.h.s8.bf16 %v4723_v53 }
 0x3a0   :  { %1933 = vmatprep.subr.bf16.mxu0 %v1716_v7  ;;  %2015 = vmatprep.subr.bf16.mxu1 %v1718_v16  ;;  %v1811_v7 = vunpack.c.h.s8.bf16 %v4678_v46  ;;  %v1813_v16 = vunpack.c.h.s8.bf16 %v4688_v52  ;;  %v1830_v46 = vunpack.c.h.s8.bf16 %v4733_v47  ;;  %v1827_v52 = vunpack.c.h.s8.bf16 %v4718_v38 }
 0x3a3   :  { %1934 = vmatpush1.bf16.msra.mxu0 %v1715_v18  ;;  %2016 = vmatpush1.bf16.msra.mxu1 %v1717_v12  ;;  %v1820_v18 = vunpack.c.l.s8.bf16 %v4723_v53  ;;  %v1822_v12 = vunpack.c.l.s8.bf16 %v4733_v47  ;;  %v1844_v47 = vunpack.c.h.s8.bf16 %v4763_v45 }
 0x3a4   :  { %1935 = vmatprep.subr.bf16.mxu0 %v1724_v6  ;;  %2017 = vmatprep.subr.bf16.mxu1 %v1726_v22  ;;  %v1819_v6 = vunpack.c.l.s8.bf16 %v4718_v38  ;;  %v1829_v22 = vunpack.c.h.s8.bf16 %v4728_v44 }
 0x3a7   :  { %1936 = vmatpush1.bf16.msra.mxu0 %v1723_v31  ;;  %2018 = vmatpush1.bf16.msra.mxu1 %v1725_v25  ;;  %v1836_v31 = vunpack.c.l.s8.bf16 %v4763_v45  ;;  %v7903_v25 = vld [vmem:[#allocation58_spill] sm:$0xff] }
 0x3a8   :  { %1937 = vmatprep.subr.bf16.mxu0 %v1732_v27  ;;  %2019 = vmatprep.subr.bf16.mxu1 %v1734_v24  ;;  %v1838_v27 = vunpack.c.l.s8.bf16 %v7903_v25  ;;  %v7904_v24 = vld [vmem:[#allocation56_spill] sm:$0xff]  ;;  %v1846_v38 = vunpack.c.h.s8.bf16 %v7903_v25 }
 0x3a9   :  { %v1843_v44 = vunpack.c.h.s8.bf16 %v7904_v24 }
 0x3ab   :  { %1938 = vmatpush1.bf16.msra.mxu0 %v1731_v26  ;;  %2020 = vmatpush1.bf16.msra.mxu1 %v1733_v28  ;;  %v1835_v26 = vunpack.c.l.s8.bf16 %v7904_v24  ;;  %v7905_v28 = vld [vmem:[#allocation57_spill] sm:$0xff] }
 0x3ac   :  { %1939 = vmatprep.subr.bf16.mxu0 %v1740_v1  ;;  %2021 = vmatprep.subr.bf16.mxu1 %v1742_v3  ;;  %v1837_v53 = vunpack.c.l.s8.bf16 %v7905_v28  ;;  %v1845_v1 = vunpack.c.h.s8.bf16 %v7905_v28  ;;  %v7906_v3 = vld [vmem:[#allocation64_spill] sm:$0xff] }
 0x3ad   :  { %v7924_v28 = vld [vmem:[#allocation12_spill] sm:$0xff] }
 0x3af   :  { %1940 = vmatpush1.bf16.msra.mxu0 %v1739_v4  ;;  %2022 = vmatpush1.bf16.msra.mxu1 %v1741_v33  ;;  %v1852_v4 = vunpack.c.l.s8.bf16 %v7906_v3  ;;  %v7907_v33 = vld [vmem:[#allocation66_spill] sm:$0xff] }
 0x3b0   :  { %1941 = vmatprep.subr.bf16.mxu0 %v1748_v35  ;;  %2023 = vmatprep.subr.bf16.mxu1 %v1750_v32  ;;  %v1854_v35 = vunpack.c.l.s8.bf16 %v7907_v33  ;;  %v7908_v32 = vld [vmem:[#allocation63_spill] sm:$0xff] }
 0x3b3   :  { %1942 = vmatpush1.bf16.msra.mxu0 %v1747_v34  ;;  %2024 = vmatpush1.bf16.msra.mxu1 %v1749_v0  ;;  %v1851_v34 = vunpack.c.l.s8.bf16 %v7908_v32  ;;  %v7909_v0 = vld [vmem:[#allocation65_spill] sm:$0xff] }
 0x3b4   :  { %1943 = vmatprep.subr.bf16.mxu0 %v1756_v2  ;;  %2025 = vmatprep.subr.bf16.mxu1 %v1758_v39  ;;  %v1853_v45 = vunpack.c.l.s8.bf16 %v7909_v0  ;;  %v1860_v2 = vunpack.c.h.s8.bf16 %v7906_v3  ;;  %v1862_v39 = vunpack.c.h.s8.bf16 %v7907_v33 }
 0x3b7   :  { %1944 = vmatpush1.bf16.msra.mxu0 %v1755_v36  ;;  %2026 = vmatpush1.bf16.msra.mxu1 %v1757_v41  ;;  %v1859_v36 = vunpack.c.h.s8.bf16 %v7908_v32  ;;  %v1861_v41 = vunpack.c.h.s8.bf16 %v7909_v0 }
 0x3b8   :  { %1945 = vmatprep.subr.bf16.mxu0 %v1764_v43  ;;  %2027 = vmatprep.subr.bf16.mxu1 %v1766_v40  ;;  %v7910_v43 = vld [vmem:[#allocation72_spill] sm:$0xff] }
 0x3b9   :  { %v1868_v40 = vunpack.c.l.s8.bf16 %v7910_v43 }
 0x3bb   :  { %1946 = vmatpush1.bf16.msra.mxu0 %v1763_v42  ;;  %2028 = vmatpush1.bf16.msra.mxu1 %v1765_v15  ;;  %v7911_v42 = vld [vmem:[#allocation74_spill] sm:$0xff] }
 0x3bc   :  { %1947 = vmatprep.subr.bf16.mxu0 %v1772_v14  ;;  %2029 = vmatprep.subr.bf16.mxu1 %v1774_v9  ;;  %v1870_v15 = vunpack.c.l.s8.bf16 %v7911_v42  ;;  %v7912_v14 = vld [vmem:[#allocation71_spill] sm:$0xff] }
 0x3bd   :  { %v1867_v9 = vunpack.c.l.s8.bf16 %v7912_v14 }
 0x3bf   :  { %1948 = vmatpush1.bf16.msra.mxu0 %v1771_v11  ;;  %2030 = vmatpush1.bf16.msra.mxu1 %v1773_v49  ;;  %v7913_v11 = vld [vmem:[#allocation73_spill] sm:$0xff] }
 0x3c0   :  { %1949 = vmatprep.subr.bf16.mxu0 %v1780_v51  ;;  %2031 = vmatprep.subr.bf16.mxu1 %v1782_v48  ;;  %v1869_v49 = vunpack.c.l.s8.bf16 %v7913_v11  ;;  %v1876_v51 = vunpack.c.h.s8.bf16 %v7910_v43  ;;  %v1878_v48 = vunpack.c.h.s8.bf16 %v7911_v42  ;;  %v7931_v42 = vld [vmem:[#allocation23_spill] sm:$0xff] }
 0x3c3   :  { %1950 = vmatpush1.bf16.msra.mxu0 %v1779_v50  ;;  %2032 = vmatpush1.bf16.msra.mxu1 %v1781_v8  ;;  %v1875_v50 = vunpack.c.h.s8.bf16 %v7912_v14  ;;  %v1877_v8 = vunpack.c.h.s8.bf16 %v7913_v11  ;;  %v7932_v14 = vld [vmem:[#allocation20_spill] sm:$0xff]  ;;  %v7933_v11 = vld [vmem:[#allocation22_spill] sm:$0xff] }
 0x3c4   :  { %1960 = vmatprep.subr.bf16.mxu0 %v1788_v10  ;;  %2042 = vmatprep.subr.bf16.mxu1 %v1790_v20  ;;  %v7914_v10 = vld [vmem:[#allocation80_spill] sm:$0xff] }
 0x3c5   :  { %v1884_v20 = vunpack.c.l.s8.bf16 %v7914_v10 }
 0x3c6   :  { %1952 = vmatmul.mubr.bf16.vlgmr.msra.gmra.mrb[4].mxu0 %v6435_v13  ;;  %2034 = vmatmul.mubr.bf16.vlgmr.msra.gmra.mrb[12].mxu1 %v6435_v13 }
 0x3c7   :  { %1961 = vmatpush1.bf16.msra.mxu0 %v1787_v57  ;;  %2043 = vmatpush1.bf16.msra.mxu1 %v1789_v59  ;;  %v7915_v57 = vld [vmem:[#allocation82_spill] sm:$0xff] }
 0x3c8   :  { %1962 = vmatprep.subr.bf16.mxu0 %v1796_v56  ;;  %2044 = vmatprep.subr.bf16.mxu1 %v1798_v58  ;;  %v1886_v59 = vunpack.c.l.s8.bf16 %v7915_v57  ;;  %v7916_v56 = vld [vmem:[#allocation79_spill] sm:$0xff] }
 0x3c9   :  { %1992 = vmatprep.mubr.bf16.mxu0 %v6443_v17  ;;  %2074 = vmatprep.mubr.bf16.mxu1 %v6443_v17  ;;  %v1883_v58 = vunpack.c.l.s8.bf16 %v7916_v56 }
 0x3cb   :  { %1963 = vmatpush1.bf16.msra.mxu0 %v1795_v21  ;;  %2045 = vmatpush1.bf16.msra.mxu1 %v1797_v19  ;;  %v7917_v21 = vld [vmem:[#allocation81_spill] sm:$0xff] }
 0x3cc   :  { %1964 = vmatprep.subr.bf16.mxu0 %v1804_v60  ;;  %2046 = vmatprep.subr.bf16.mxu1 %v1806_v62  ;;  %v1885_v19 = vunpack.c.l.s8.bf16 %v7917_v21  ;;  %v1892_v60 = vunpack.c.h.s8.bf16 %v7914_v10  ;;  %v1894_v62 = vunpack.c.h.s8.bf16 %v7915_v57  ;;  %v7934_v10 = vld [vmem:[#allocation25_spill] sm:$0xff]  ;;  %v7935_v57 = vld [vmem:[#allocation27_spill] sm:$0xff] }
 0x3cf   :  { %1965 = vmatpush1.bf16.msra.mxu0 %v1803_v37  ;;  %2047 = vmatpush1.bf16.msra.mxu1 %v1805_v23  ;;  %v1891_v37 = vunpack.c.h.s8.bf16 %v7916_v56  ;;  %v1893_v23 = vunpack.c.h.s8.bf16 %v7917_v21  ;;  %v7936_v56 = vld [vmem:[#allocation24_spill] sm:$0xff]  ;;  %v7937_v21 = vld [vmem:[#allocation26_spill] sm:$0xff] }
 0x3d0   :  { %1966 = vmatprep.subr.bf16.mxu0 %v1812_v54  ;;  %2048 = vmatprep.subr.bf16.mxu1 %v1814_v61  ;;  %v7918_v54 = vld [vmem:[#allocation88_spill] sm:$0xff] }
 0x3d1   :  { %v1900_v61 = vunpack.c.l.s8.bf16 %v7918_v54 }
 0x3d3   :  { %1967 = vmatpush1.bf16.msra.mxu0 %v1811_v7  ;;  %2049 = vmatpush1.bf16.msra.mxu1 %v1813_v16  ;;  %v7919_v7 = vld [vmem:[#allocation90_spill] sm:$0xff] }
 0x3d4   :  { %1968 = vmatprep.subr.bf16.mxu0 %v1820_v18  ;;  %2050 = vmatprep.subr.bf16.mxu1 %v1822_v12  ;;  %v1902_v16 = vunpack.c.l.s8.bf16 %v7919_v7  ;;  %v7920_v18 = vld [vmem:[#allocation87_spill] sm:$0xff] }
 0x3d5   :  { %v1899_v12 = vunpack.c.l.s8.bf16 %v7920_v18 }
 0x3d7   :  { %1969 = vmatpush1.bf16.msra.mxu0 %v1819_v6  ;;  %2051 = vmatpush1.bf16.msra.mxu1 %v1821_v63  ;;  %v7921_v6 = vld [vmem:[#allocation89_spill] sm:$0xff] }
 0x3d8   :  { %1970 = vmatprep.subr.bf16.mxu0 %v1828_v55  ;;  %2052 = vmatprep.subr.bf16.mxu1 %v1830_v46  ;;  %v1901_v63 = vunpack.c.l.s8.bf16 %v7921_v6  ;;  %v1908_v55 = vunpack.c.h.s8.bf16 %v7918_v54  ;;  %v1910_v46 = vunpack.c.h.s8.bf16 %v7919_v7  ;;  %v7938_v54 = vld [vmem:[#allocation29_spill] sm:$0xff]  ;;  %v7939_v7 = vld [vmem:[#allocation31_spill] sm:$0xff] }
 0x3db   :  { %1971 = vmatpush1.bf16.msra.mxu0 %v1827_v52  ;;  %2053 = vmatpush1.bf16.msra.mxu1 %v1829_v22  ;;  %v1907_v52 = vunpack.c.h.s8.bf16 %v7920_v18  ;;  %v1909_v22 = vunpack.c.h.s8.bf16 %v7921_v6  ;;  %v7940_v18 = vld [vmem:[#allocation28_spill] sm:$0xff]  ;;  %v7941_v6 = vld [vmem:[#allocation30_spill] sm:$0xff] }
 0x3dc   :  { %1972 = vmatprep.subr.bf16.mxu0 %v1836_v31  ;;  %2054 = vmatprep.subr.bf16.mxu1 %v1838_v27  ;;  %v7922_v31 = vld [vmem:[#allocation13_spill] sm:$0xff]  ;;  %v7923_v27 = vld [vmem:[#allocation15_spill] sm:$0xff] }
 0x3dd   :  { %v1664_v25 = vunpack.c.l.s8.bf16 %v7922_v31  ;;  %v1666_v24 = vunpack.c.l.s8.bf16 %v7923_v27 }
 0x3df   :  { %1973 = vmatpush1.bf16.msra.mxu0 %v1835_v26  ;;  %2055 = vmatpush1.bf16.msra.mxu1 %v1837_v53  ;;  %v6511_v26 = vpack.c.bf16 %v6359_v5, %v6359_v5  ;;  %v1663_v53 = vunpack.c.l.s8.bf16 %v7924_v28  ;;  %v1671_v5 = vunpack.c.h.s8.bf16 %v7924_v28  ;;  %v7944_v28 = vld [vmem:[#allocation32_spill] sm:$0xff] }
 0x3e0   :  { %1974 = vmatprep.subr.bf16.mxu0 %v1844_v47  ;;  %2056 = vmatprep.subr.bf16.mxu1 %v1846_v38  ;;  %v7925_v47 = vld [vmem:[#allocation14_spill] sm:$0xff] }
 0x3e1   :  { %v1665_v38 = vunpack.c.l.s8.bf16 %v7925_v47  ;;  %v1673_v3 = vunpack.c.h.s8.bf16 %v7925_v47  ;;  %v7945_v47 = vld [vmem:[#allocation34_spill] sm:$0xff] }
 0x3e3   :  { %1975 = vmatpush1.bf16.msra.mxu0 %v1843_v44  ;;  %2057 = vmatpush1.bf16.msra.mxu1 %v1845_v1  ;;  %v1672_v44 = vunpack.c.h.s8.bf16 %v7922_v31  ;;  %v1674_v1 = vunpack.c.h.s8.bf16 %v7923_v27  ;;  %v7942_v31 = vld [vmem:[#allocation33_spill] sm:$0xff]  ;;  %v7943_v27 = vld [vmem:[#allocation35_spill] sm:$0xff] }
 0x3e4   :  { %1976 = vmatprep.subr.bf16.mxu0 %v1852_v4  ;;  %2058 = vmatprep.subr.bf16.mxu1 %v1854_v35  ;;  %v7926_v4 = vld [vmem:[#allocation17_spill] sm:$0xff]  ;;  %v7927_v35 = vld [vmem:[#allocation19_spill] sm:$0xff] }
 0x3e5   :  { %v1680_v33 = vunpack.c.l.s8.bf16 %v7926_v4  ;;  %v1682_v32 = vunpack.c.l.s8.bf16 %v7927_v35 }
 0x3e7   :  { %1977 = vmatpush1.bf16.msra.mxu0 %v1851_v34  ;;  %2059 = vmatpush1.bf16.msra.mxu1 %v1853_v45  ;;  %v7928_v34 = vld [vmem:[#allocation16_spill] sm:$0xff]  ;;  %v7929_v45 = vld [vmem:[#allocation18_spill] sm:$0xff] }
 0x3e8   :  { %1978 = vmatprep.subr.bf16.mxu0 %v1860_v2  ;;  %2060 = vmatprep.subr.bf16.mxu1 %v1862_v39  ;;  %v1679_v0 = vunpack.c.l.s8.bf16 %v7928_v34  ;;  %v1681_v2 = vunpack.c.l.s8.bf16 %v7929_v45  ;;  %v1688_v39 = vunpack.c.h.s8.bf16 %v7926_v4  ;;  %v1689_v43 = vunpack.c.h.s8.bf16 %v7929_v45  ;;  %v7946_v4 = vld [vmem:[#allocation37_spill] sm:$0xff]  ;;  %v7949_v45 = vld [vmem:[#allocation38_spill] sm:$0xff] }
 0x3eb   :  { %1979 = vmatpush1.bf16.msra.mxu0 %v1859_v36  ;;  %2061 = vmatpush1.bf16.msra.mxu1 %v1861_v41  ;;  %v1690_v36 = vunpack.c.h.s8.bf16 %v7927_v35  ;;  %v1687_v41 = vunpack.c.h.s8.bf16 %v7928_v34  ;;  %v7947_v35 = vld [vmem:[#allocation39_spill] sm:$0xff]  ;;  %v7948_v34 = vld [vmem:[#allocation36_spill] sm:$0xff] }
 0x3ec   :  { %1980 = vmatprep.subr.bf16.mxu0 %v1868_v40  ;;  %2062 = vmatprep.subr.bf16.mxu1 %v1870_v15  ;;  %v1698_v15 = vunpack.c.l.s8.bf16 %v7931_v42 }
 0x3ef   :  { %1981 = vmatpush1.bf16.msra.mxu0 %v1867_v9  ;;  %2063 = vmatpush1.bf16.msra.mxu1 %v1869_v49  ;;  %v1695_v9 = vunpack.c.l.s8.bf16 %v7932_v14  ;;  %v1697_v49 = vunpack.c.l.s8.bf16 %v7933_v11 }
 0x3f0   :  { %1982 = vmatprep.subr.bf16.mxu0 %v1876_v51  ;;  %2064 = vmatprep.subr.bf16.mxu1 %v1878_v48  ;;  %v1706_v48 = vunpack.c.h.s8.bf16 %v7931_v42  ;;  %v7951_v42 = vld [vmem:[#allocation43_spill] sm:$0xff] }
 0x3f3   :  { %1983 = vmatpush1.bf16.msra.mxu0 %v1875_v50  ;;  %2065 = vmatpush1.bf16.msra.mxu1 %v1877_v8  ;;  %v1703_v50 = vunpack.c.h.s8.bf16 %v7932_v14  ;;  %v1705_v8 = vunpack.c.h.s8.bf16 %v7933_v11  ;;  %v7952_v14 = vld [vmem:[#allocation40_spill] sm:$0xff]  ;;  %v7953_v11 = vld [vmem:[#allocation42_spill] sm:$0xff] }
 0x3f4   :  { %1984 = vmatprep.subr.bf16.mxu0 %v1884_v20  ;;  %2066 = vmatprep.subr.bf16.mxu1 %v1886_v59  ;;  %v1712_v20 = vunpack.c.l.s8.bf16 %v7934_v10  ;;  %v1714_v59 = vunpack.c.l.s8.bf16 %v7935_v57 }
 0x3f7   :  { %1985 = vmatpush1.bf16.msra.mxu0 %v1883_v58  ;;  %2067 = vmatpush1.bf16.msra.mxu1 %v1885_v19  ;;  %v1711_v58 = vunpack.c.l.s8.bf16 %v7936_v56  ;;  %v1713_v19 = vunpack.c.l.s8.bf16 %v7937_v21 }
 0x3f8   :  { %1986 = vmatprep.subr.bf16.mxu0 %v1892_v60  ;;  %2068 = vmatprep.subr.bf16.mxu1 %v1894_v62  ;;  %v1720_v60 = vunpack.c.h.s8.bf16 %v7934_v10  ;;  %v1722_v62 = vunpack.c.h.s8.bf16 %v7935_v57  ;;  %v7954_v10 = vld [vmem:[#allocation45_spill] sm:$0xff]  ;;  %v7955_v57 = vld [vmem:[#allocation47_spill] sm:$0xff] }
 0x3fb   :  { %1987 = vmatpush1.bf16.msra.mxu0 %v1891_v37  ;;  %2069 = vmatpush1.bf16.msra.mxu1 %v1893_v23  ;;  %v1719_v37 = vunpack.c.h.s8.bf16 %v7936_v56  ;;  %v1721_v23 = vunpack.c.h.s8.bf16 %v7937_v21  ;;  %v7956_v56 = vld [vmem:[#allocation44_spill] sm:$0xff]  ;;  %v7957_v21 = vld [vmem:[#allocation46_spill] sm:$0xff] }
 0x3fc   :  { %1988 = vmatprep.subr.bf16.mxu0 %v1900_v61  ;;  %2070 = vmatprep.subr.bf16.mxu1 %v1902_v16  ;;  %v1728_v61 = vunpack.c.l.s8.bf16 %v7938_v54  ;;  %v1730_v16 = vunpack.c.l.s8.bf16 %v7939_v7 }
 0x3ff   :  { %1989 = vmatpush1.bf16.msra.mxu0 %v1899_v12  ;;  %2071 = vmatpush1.bf16.msra.mxu1 %v1901_v63  ;;  %v1727_v12 = vunpack.c.l.s8.bf16 %v7940_v18  ;;  %v1729_v63 = vunpack.c.l.s8.bf16 %v7941_v6 }
 0x400   :  { %1990 = vmatprep.subr.bf16.mxu0 %v1908_v55  ;;  %2072 = vmatprep.subr.bf16.mxu1 %v1910_v46  ;;  %v1736_v55 = vunpack.c.h.s8.bf16 %v7938_v54  ;;  %v1738_v46 = vunpack.c.h.s8.bf16 %v7939_v7  ;;  %v7958_v54 = vld [vmem:[#allocation49_spill] sm:$0xff]  ;;  %v7959_v7 = vld [vmem:[#allocation51_spill] sm:$0xff] }
 0x403   :  { %1991 = vmatpush1.bf16.msra.mxu0 %v1907_v52  ;;  %2073 = vmatpush1.bf16.msra.mxu1 %v1909_v22  ;;  %v1735_v52 = vunpack.c.h.s8.bf16 %v7940_v18  ;;  %v1737_v22 = vunpack.c.h.s8.bf16 %v7941_v6  ;;  %v7960_v18 = vld [vmem:[#allocation48_spill] sm:$0xff] }
 0x404   :  { %2083 = vmatprep.subr.bf16.mxu0 %v1664_v25  ;;  %2165 = vmatprep.subr.bf16.mxu1 %v1666_v24  ;;  %v1744_v25 = vunpack.c.l.s8.bf16 %v7942_v31  ;;  %v1746_v24 = vunpack.c.l.s8.bf16 %v7943_v27 }
 0x406   :  { %1993 = vmatmul.mubr.bf16.vlgmr.msra.gmra.mrb[4].mxu0 %v6511_v26  ;;  %2075 = vmatmul.mubr.bf16.vlgmr.msra.gmra.mrb[12].mxu1 %v6511_v26 }
 0x407   :  { %2084 = vmatpush1.bf16.msra.mxu0 %v1663_v53  ;;  %2166 = vmatpush1.bf16.msra.mxu1 %v1665_v38  ;;  %v1743_v53 = vunpack.c.l.s8.bf16 %v7944_v28  ;;  %v1745_v38 = vunpack.c.l.s8.bf16 %v7945_v47 }
 0x408   :  { %2085 = vmatprep.subr.bf16.mxu0 %v1672_v44  ;;  %2167 = vmatprep.subr.bf16.mxu1 %v1674_v1  ;;  %v1752_v44 = vunpack.c.h.s8.bf16 %v7942_v31  ;;  %v1754_v1 = vunpack.c.h.s8.bf16 %v7943_v27  ;;  %v7963_v31 = vld [vmem:[#allocation55_spill] sm:$0xff]  ;;  %v7964_v27 = vld [vmem:[#allocation52_spill] sm:$0xff] }
 0x409   :  { %2115 = vmatprep.mubr.bf16.mxu0 %v6385_v30  ;;  %2197 = vmatprep.mubr.bf16.mxu1 %v6385_v30  ;;  %v7930_v30 = vld [vmem:[#allocation21_spill] sm:$0xff] }
 0x40a   :  { %v1696_v40 = vunpack.c.l.s8.bf16 %v7930_v30  ;;  %v1704_v51 = vunpack.c.h.s8.bf16 %v7930_v30  ;;  %v7950_v30 = vld [vmem:[#allocation41_spill] sm:$0xff] }
 0x40b   :  { %2086 = vmatpush1.bf16.msra.mxu0 %v1671_v5  ;;  %2168 = vmatpush1.bf16.msra.mxu1 %v1673_v3  ;;  %v1751_v5 = vunpack.c.h.s8.bf16 %v7944_v28  ;;  %v1753_v3 = vunpack.c.h.s8.bf16 %v7945_v47  ;;  %v7965_v28 = vld [vmem:[#allocation54_spill] sm:$0xff] }
 0x40c   :  { %2087 = vmatprep.subr.bf16.mxu0 %v1680_v33  ;;  %2169 = vmatprep.subr.bf16.mxu1 %v1682_v32  ;;  %v1760_v33 = vunpack.c.l.s8.bf16 %v7946_v4  ;;  %v1762_v32 = vunpack.c.l.s8.bf16 %v7947_v35 }
 0x40f   :  { %2088 = vmatpush1.bf16.msra.mxu0 %v1679_v0  ;;  %2170 = vmatpush1.bf16.msra.mxu1 %v1681_v2  ;;  %v1759_v0 = vunpack.c.l.s8.bf16 %v7948_v34  ;;  %v1761_v2 = vunpack.c.l.s8.bf16 %v7949_v45 }
 0x410   :  { %2089 = vmatprep.subr.bf16.mxu0 %v1688_v39  ;;  %2171 = vmatprep.subr.bf16.mxu1 %v1690_v36  ;;  %v1768_v39 = vunpack.c.h.s8.bf16 %v7946_v4  ;;  %v1770_v36 = vunpack.c.h.s8.bf16 %v7947_v35  ;;  %v7967_v4 = vld [vmem:[#allocation62_spill] sm:$0xff]  ;;  %v7968_v35 = vld [vmem:[#allocation59_spill] sm:$0xff] }
 0x413   :  { %2090 = vmatpush1.bf16.msra.mxu0 %v1687_v41  ;;  %2172 = vmatpush1.bf16.msra.mxu1 %v1689_v43  ;;  %v1767_v41 = vunpack.c.h.s8.bf16 %v7948_v34  ;;  %v1769_v43 = vunpack.c.h.s8.bf16 %v7949_v45  ;;  %v7969_v34 = vld [vmem:[#allocation61_spill] sm:$0xff] }
 0x414   :  { %2091 = vmatprep.subr.bf16.mxu0 %v1696_v40  ;;  %2173 = vmatprep.subr.bf16.mxu1 %v1698_v15  ;;  %v1776_v40 = vunpack.c.l.s8.bf16 %v7950_v30  ;;  %v1778_v15 = vunpack.c.l.s8.bf16 %v7951_v42 }
 0x417   :  { %2092 = vmatpush1.bf16.msra.mxu0 %v1695_v9  ;;  %2174 = vmatpush1.bf16.msra.mxu1 %v1697_v49  ;;  %v1775_v9 = vunpack.c.l.s8.bf16 %v7952_v14  ;;  %v1777_v49 = vunpack.c.l.s8.bf16 %v7953_v11 }
 0x418   :  { %2093 = vmatprep.subr.bf16.mxu0 %v1704_v51  ;;  %2175 = vmatprep.subr.bf16.mxu1 %v1706_v48  ;;  %v1784_v51 = vunpack.c.h.s8.bf16 %v7950_v30  ;;  %v1786_v48 = vunpack.c.h.s8.bf16 %v7951_v42  ;;  %v7971_v30 = vld [vmem:[#allocation70_spill] sm:$0xff]  ;;  %v7972_v42 = vld [vmem:[#allocation67_spill] sm:$0xff] }
 0x41b   :  { %2094 = vmatpush1.bf16.msra.mxu0 %v1703_v50  ;;  %2176 = vmatpush1.bf16.msra.mxu1 %v1705_v8  ;;  %v1783_v50 = vunpack.c.h.s8.bf16 %v7952_v14  ;;  %v1785_v8 = vunpack.c.h.s8.bf16 %v7953_v11  ;;  %v7973_v14 = vld [vmem:[#allocation69_spill] sm:$0xff] }
 0x41c   :  { %2095 = vmatprep.subr.bf16.mxu0 %v1712_v20  ;;  %2177 = vmatprep.subr.bf16.mxu1 %v1714_v59  ;;  %v1792_v20 = vunpack.c.l.s8.bf16 %v7954_v10  ;;  %v1794_v59 = vunpack.c.l.s8.bf16 %v7955_v57 }
 0x41f   :  { %2096 = vmatpush1.bf16.msra.mxu0 %v1711_v58  ;;  %2178 = vmatpush1.bf16.msra.mxu1 %v1713_v19  ;;  %v1791_v58 = vunpack.c.l.s8.bf16 %v7956_v56  ;;  %v1793_v19 = vunpack.c.l.s8.bf16 %v7957_v21 }
 0x420   :  { %2097 = vmatprep.subr.bf16.mxu0 %v1720_v60  ;;  %2179 = vmatprep.subr.bf16.mxu1 %v1722_v62  ;;  %v1800_v60 = vunpack.c.h.s8.bf16 %v7954_v10  ;;  %v1802_v62 = vunpack.c.h.s8.bf16 %v7955_v57  ;;  %v7975_v10 = vld [vmem:[#allocation78_spill] sm:$0xff]  ;;  %v7976_v57 = vld [vmem:[#allocation75_spill] sm:$0xff] }
 0x423   :  { %2098 = vmatpush1.bf16.msra.mxu0 %v1719_v37  ;;  %2180 = vmatpush1.bf16.msra.mxu1 %v1721_v23  ;;  %v1799_v37 = vunpack.c.h.s8.bf16 %v7956_v56  ;;  %v1801_v23 = vunpack.c.h.s8.bf16 %v7957_v21  ;;  %v7977_v56 = vld [vmem:[#allocation77_spill] sm:$0xff] }
 0x424   :  { %2099 = vmatprep.subr.bf16.mxu0 %v1728_v61  ;;  %2181 = vmatprep.subr.bf16.mxu1 %v1730_v16  ;;  %v1808_v61 = vunpack.c.l.s8.bf16 %v7958_v54  ;;  %v1810_v16 = vunpack.c.l.s8.bf16 %v7959_v7 }
 0x427   :  { %2100 = vmatpush1.bf16.msra.mxu0 %v1727_v12  ;;  %2182 = vmatpush1.bf16.msra.mxu1 %v1729_v63  ;;  %v7961_v12 = vld [vmem:[#allocation50_spill] sm:$0xff]  ;;  %v1816_v63 = vunpack.c.h.s8.bf16 %v7958_v54 }
 0x428   :  { %2101 = vmatprep.subr.bf16.mxu0 %v1736_v55  ;;  %2183 = vmatprep.subr.bf16.mxu1 %v1738_v46  ;;  %v1809_v6 = vunpack.c.l.s8.bf16 %v7961_v12  ;;  %v1818_v55 = vunpack.c.h.s8.bf16 %v7959_v7  ;;  %v1815_v46 = vunpack.c.h.s8.bf16 %v7960_v18  ;;  %v7979_v54 = vld [vmem:[#allocation86_spill] sm:$0xff]  ;;  %v7980_v7 = vld [vmem:[#allocation83_spill] sm:$0xff] }
 0x42b   :  { %2102 = vmatpush1.bf16.msra.mxu0 %v1735_v52  ;;  %2184 = vmatpush1.bf16.msra.mxu1 %v1737_v22  ;;  %v1817_v52 = vunpack.c.h.s8.bf16 %v7961_v12 }
 0x42c   :  { %2103 = vmatprep.subr.bf16.mxu0 %v1744_v25  ;;  %2185 = vmatprep.subr.bf16.mxu1 %v1746_v24  ;;  %v1826_v25 = vunpack.c.l.s8.bf16 %v7963_v31  ;;  %v1823_v24 = vunpack.c.l.s8.bf16 %v7964_v27 }
 0x42f   :  { %2104 = vmatpush1.bf16.msra.mxu0 %v1743_v53  ;;  %2186 = vmatpush1.bf16.msra.mxu1 %v1745_v38  ;;  %v1825_v53 = vunpack.c.l.s8.bf16 %v7965_v28  ;;  %v1834_v38 = vunpack.c.h.s8.bf16 %v7963_v31  ;;  %v7984_v31 = vld [vmem:[#allocation91_spill] sm:$0xff] }
 0x430   :  { %2105 = vmatprep.subr.bf16.mxu0 %v1752_v44  ;;  %2187 = vmatprep.subr.bf16.mxu1 %v1754_v1  ;;  %v1831_v44 = vunpack.c.h.s8.bf16 %v7964_v27  ;;  %v1833_v1 = vunpack.c.h.s8.bf16 %v7965_v28  ;;  %v7985_v27 = vld [vmem:[#allocation93_spill] sm:$0xff] }
 0x433   :  { %2106 = vmatpush1.bf16.msra.mxu0 %v1751_v5  ;;  %2188 = vmatpush1.bf16.msra.mxu1 %v1753_v3  ;;  %v7966_v5 = vld [vmem:[#allocation60_spill] sm:$0xff] }
 0x434   :  { %2107 = vmatprep.subr.bf16.mxu0 %v1760_v33  ;;  %2189 = vmatprep.subr.bf16.mxu1 %v1762_v32  ;;  %v1840_v3 = vunpack.c.l.s8.bf16 %v7966_v5  ;;  %v1842_v33 = vunpack.c.l.s8.bf16 %v7967_v4  ;;  %v1839_v32 = vunpack.c.l.s8.bf16 %v7968_v35  ;;  %v1848_v45 = vunpack.c.h.s8.bf16 %v7966_v5  ;;  %v3944_v5 = vld [vmem:[%s7275_s6 + $0x3] ss:$8 sm:$0xf] }
 0x437   :  { %2108 = vmatpush1.bf16.msra.mxu0 %v1759_v0  ;;  %2190 = vmatpush1.bf16.msra.mxu1 %v1761_v2  ;;  %v1841_v0 = vunpack.c.l.s8.bf16 %v7969_v34  ;;  %v1850_v2 = vunpack.c.h.s8.bf16 %v7967_v4 }
 0x438   :  { %2109 = vmatprep.subr.bf16.mxu0 %v1768_v39  ;;  %2191 = vmatprep.subr.bf16.mxu1 %v1770_v36  ;;  %v1847_v39 = vunpack.c.h.s8.bf16 %v7968_v35  ;;  %v1849_v36 = vunpack.c.h.s8.bf16 %v7969_v34  ;;  %v7986_v35 = vld [vmem:[#allocation320_spill] sm:$0xff] }
 0x43b   :  { %2110 = vmatpush1.bf16.msra.mxu0 %v1767_v41  ;;  %2192 = vmatpush1.bf16.msra.mxu1 %v1769_v43  ;;  %v7970_v41 = vld [vmem:[#allocation68_spill] sm:$0xff] }
 0x43c   :  { %2111 = vmatprep.subr.bf16.mxu0 %v1776_v40  ;;  %2193 = vmatprep.subr.bf16.mxu1 %v1778_v15  ;;  %v1856_v43 = vunpack.c.l.s8.bf16 %v7970_v41  ;;  %v1858_v40 = vunpack.c.l.s8.bf16 %v7971_v30  ;;  %v1855_v15 = vunpack.c.l.s8.bf16 %v7972_v42  ;;  %v1864_v11 = vunpack.c.h.s8.bf16 %v7970_v41 }
 0x43f   :  { %2112 = vmatpush1.bf16.msra.mxu0 %v1775_v9  ;;  %2194 = vmatpush1.bf16.msra.mxu1 %v1777_v49  ;;  %v1857_v9 = vunpack.c.l.s8.bf16 %v7973_v14  ;;  %v1866_v49 = vunpack.c.h.s8.bf16 %v7971_v30 }
 0x440   :  { %2113 = vmatprep.subr.bf16.mxu0 %v1784_v51  ;;  %2195 = vmatprep.subr.bf16.mxu1 %v1786_v48  ;;  %v1863_v51 = vunpack.c.h.s8.bf16 %v7972_v42  ;;  %v1865_v48 = vunpack.c.h.s8.bf16 %v7973_v14 }
 0x443   :  { %2114 = vmatpush1.bf16.msra.mxu0 %v1783_v50  ;;  %2196 = vmatpush1.bf16.msra.mxu1 %v1785_v8  ;;  %v7974_v50 = vld [vmem:[#allocation76_spill] sm:$0xff] }
 0x444   :  { %2124 = vmatprep.subr.bf16.mxu0 %v1792_v20  ;;  %2206 = vmatprep.subr.bf16.mxu1 %v1794_v59  ;;  %v1872_v8 = vunpack.c.l.s8.bf16 %v7974_v50  ;;  %v1874_v20 = vunpack.c.l.s8.bf16 %v7975_v10  ;;  %v1871_v59 = vunpack.c.l.s8.bf16 %v7976_v57  ;;  %v1880_v21 = vunpack.c.h.s8.bf16 %v7974_v50 }
 0x446   :  { %2116 = vmatmul.mubr.bf16.vlgmr.msra.gmra.mrb[8].mxu0 %v6435_v13  ;;  %2198 = vmatmul.mubr.bf16.vlgmr.msra.gmra.mrb[16].mxu1 %v6435_v13  ;;  %v1807_v13 = vunpack.c.l.s8.bf16 %v7960_v18  ;;  %v7981_v18 = vld [vmem:[#allocation85_spill] sm:$0xff] }
 0x447   :  { %2125 = vmatpush1.bf16.msra.mxu0 %v1791_v58  ;;  %2207 = vmatpush1.bf16.msra.mxu1 %v1793_v19  ;;  %v1873_v58 = vunpack.c.l.s8.bf16 %v7977_v56  ;;  %v1882_v19 = vunpack.c.h.s8.bf16 %v7975_v10 }
 0x448   :  { %2126 = vmatprep.subr.bf16.mxu0 %v1800_v60  ;;  %2208 = vmatprep.subr.bf16.mxu1 %v1802_v62  ;;  %v1879_v60 = vunpack.c.h.s8.bf16 %v7976_v57  ;;  %v1881_v62 = vunpack.c.h.s8.bf16 %v7977_v56 }
 0x449   :  { %2156 = vmatprep.mubr.bf16.mxu0 %v6443_v17  ;;  %2238 = vmatprep.mubr.bf16.mxu1 %v6443_v17  ;;  %v7962_v17 = vld [vmem:[#allocation53_spill] sm:$0xff] }
 0x44a   :  { %v1824_v22 = vunpack.c.l.s8.bf16 %v7962_v17  ;;  %v1832_v47 = vunpack.c.h.s8.bf16 %v7962_v17  ;;  %v7983_v17 = vld [vmem:[#allocation94_spill] sm:$0xff] }
 0x44b   :  { %2127 = vmatpush1.bf16.msra.mxu0 %v1799_v37  ;;  %2209 = vmatpush1.bf16.msra.mxu1 %v1801_v23  ;;  %v7978_v37 = vld [vmem:[#allocation84_spill] sm:$0xff] }
 0x44c   :  { %2128 = vmatprep.subr.bf16.mxu0 %v1808_v61  ;;  %2210 = vmatprep.subr.bf16.mxu1 %v1810_v16  ;;  %v1888_v23 = vunpack.c.l.s8.bf16 %v7978_v37  ;;  %v1890_v61 = vunpack.c.l.s8.bf16 %v7979_v54  ;;  %v1887_v16 = vunpack.c.l.s8.bf16 %v7980_v7  ;;  %v1896_v12 = vunpack.c.h.s8.bf16 %v7978_v37 }
 0x44f   :  { %2129 = vmatpush1.bf16.msra.mxu0 %v1807_v13  ;;  %2211 = vmatpush1.bf16.msra.mxu1 %v1809_v6  ;;  %v1889_v13 = vunpack.c.l.s8.bf16 %v7981_v18  ;;  %v1898_v6 = vunpack.c.h.s8.bf16 %v7979_v54  ;;  %v7989_v54 = vld [vmem:[#allocation319_spill] sm:$0xff] }
 0x450   :  { %2130 = vmatprep.subr.bf16.mxu0 %v1816_v63  ;;  %2212 = vmatprep.subr.bf16.mxu1 %v1818_v55  ;;  %v1895_v63 = vunpack.c.h.s8.bf16 %v7980_v7  ;;  %v1897_v55 = vunpack.c.h.s8.bf16 %v7981_v18  ;;  %v6681_v7 = vsub.s32 6, %v7989_v54  ;;  %v2282_v18 = vsub.s32 7, %v7989_v54 }
 0x453   :  { %2131 = vmatpush1.bf16.msra.mxu0 %v1815_v46  ;;  %2213 = vmatpush1.bf16.msra.mxu1 %v1817_v52  ;;  %v7982_v46 = vld [vmem:[#allocation92_spill] sm:$0xff] }
 0x454   :  { %2132 = vmatprep.subr.bf16.mxu0 %v1824_v22  ;;  %2214 = vmatprep.subr.bf16.mxu1 %v1826_v25  ;;  %v1904_v52 = vunpack.c.l.s8.bf16 %v7982_v46  ;;  %v1906_v22 = vunpack.c.l.s8.bf16 %v7983_v17  ;;  %v1903_v25 = vunpack.c.l.s8.bf16 %v7984_v31  ;;  %v1912_v28 = vunpack.c.h.s8.bf16 %v7982_v46 }
 0x457   :  { %2133 = vmatpush1.bf16.msra.mxu0 %v1823_v24  ;;  %2215 = vmatpush1.bf16.msra.mxu1 %v1825_v53  ;;  %v1905_v24 = vunpack.c.l.s8.bf16 %v7985_v27  ;;  %v1914_v53 = vunpack.c.h.s8.bf16 %v7983_v17 }
 0x458   :  { %2134 = vmatprep.subr.bf16.mxu0 %v1832_v47  ;;  %2216 = vmatprep.subr.bf16.mxu1 %v1834_v38  ;;  %v1911_v47 = vunpack.c.h.s8.bf16 %v7984_v31  ;;  %v1913_v38 = vunpack.c.h.s8.bf16 %v7985_v27 }
 0x45b   :  { %2135 = vmatpush1.bf16.msra.mxu0 %v1831_v44  ;;  %2217 = vmatpush1.bf16.msra.mxu1 %v1833_v1  ;;  %v3942_v44 = vld [vmem:[%s7275_s6 + $0x5] ss:$8 sm:$0xf] }
 0x45c   :  { %2136 = vmatprep.subr.bf16.mxu0 %v1840_v3  ;;  %2218 = vmatprep.subr.bf16.mxu1 %v1842_v33  ;;  %v3943_v1 = vld [vmem:[%s7275_s6 + $0x5] ss:$8 sm:$0xf0]  ;;  %v3945_v3 = vld [vmem:[%s7275_s6 + $0x3] ss:$8 sm:$0xf0] }
 0x45d   :  { %v2250_v4 = vor.u32 %v3943_v1, %v3942_v44  ;;  %v2303_v33 = vor.u32 %v3945_v3, %v3944_v5 }
 0x45f   :  { %2137 = vmatpush1.bf16.msra.mxu0 %v1839_v32  ;;  %2219 = vmatpush1.bf16.msra.mxu1 %v1841_v0  ;;  %v7987_v32 = vld [vmem:[#allocation322_spill] sm:$0xff]  ;;  %v7988_v0 = vld [vmem:[#allocation321_spill] sm:$0xff]  ;;  %v2332_v46 = vrot.slane %v2303_v33, %v6681_v7  ;;  %v2336_v31 = vrot.slane %v2303_v33, %v2282_v18 }
 0x460   :  { %2138 = vmatprep.subr.bf16.mxu0 %v1848_v45  ;;  %2220 = vmatprep.subr.bf16.mxu1 %v1850_v2  ;;  %v2263_v34 = vrot.slane %v2250_v4, %v7987_v32  ;;  %v2259_v45 = vrot.slane %v2250_v4, %v7988_v0  ;;  %v2267_v2 = vrot.slane %v2250_v4, %v6355_v29 }
 0x461   :  { %v2312_v30 = vrot.slane %v2303_v33, %v7988_v0 }
 0x463   :  { %2139 = vmatpush1.bf16.msra.mxu0 %v1847_v39  ;;  %2221 = vmatpush1.bf16.msra.mxu1 %v1849_v36  ;;  %v2308_v39 = vrot.slane %v2303_v33, %v7986_v35  ;;  %v2316_v36 = vrot.slane %v2303_v33, %v7987_v32 }
 0x464   :  { %2140 = vmatprep.subr.bf16.mxu0 %v1856_v43  ;;  %2222 = vmatprep.subr.bf16.mxu1 %v1858_v40  ;;  %v2320_v40 = vrot.slane %v2303_v33, %v6355_v29 }
 0x467   :  { %2141 = vmatpush1.bf16.msra.mxu0 %v1855_v15  ;;  %2223 = vmatpush1.bf16.msra.mxu1 %v1857_v9 }
 0x468   :  { %2142 = vmatprep.subr.bf16.mxu0 %v1864_v11  ;;  %2224 = vmatprep.subr.bf16.mxu1 %v1866_v49 }
 0x46b   :  { %2143 = vmatpush1.bf16.msra.mxu0 %v1863_v51  ;;  %2225 = vmatpush1.bf16.msra.mxu1 %v1865_v48 }
 0x46c   :  { %2144 = vmatprep.subr.bf16.mxu0 %v1872_v8  ;;  %2226 = vmatprep.subr.bf16.mxu1 %v1874_v20 }
 0x46f   :  { %2145 = vmatpush1.bf16.msra.mxu0 %v1871_v59  ;;  %2227 = vmatpush1.bf16.msra.mxu1 %v1873_v58 }
 0x470   :  { %2146 = vmatprep.subr.bf16.mxu0 %v1880_v21  ;;  %2228 = vmatprep.subr.bf16.mxu1 %v1882_v19 }
 0x473   :  { %2147 = vmatpush1.bf16.msra.mxu0 %v1879_v60  ;;  %2229 = vmatpush1.bf16.msra.mxu1 %v1881_v62 }
 0x474   :  { %2148 = vmatprep.subr.bf16.mxu0 %v1888_v23  ;;  %2230 = vmatprep.subr.bf16.mxu1 %v1890_v61  ;;  %v6678_v61 = vsub.s32 4, %v7989_v54 }
 0x477   :  { %2149 = vmatpush1.bf16.msra.mxu0 %v1887_v16  ;;  %2231 = vmatpush1.bf16.msra.mxu1 %v1889_v13  ;;  %v6684_v16 = vsub.s32 5, %v7989_v54  ;;  %v2271_v13 = vrot.slane %v2250_v4, %v6678_v61 }
 0x478   :  { %2150 = vmatprep.subr.bf16.mxu0 %v1896_v12  ;;  %2232 = vmatprep.subr.bf16.mxu1 %v1898_v6  ;;  %v2279_v12 = vrot.slane %v2250_v4, %v6681_v7 }
 0x479   :  { %v2275_v6 = vrot.slane %v2250_v4, %v6684_v16 }
 0x47b   :  { %2151 = vmatpush1.bf16.msra.mxu0 %v1895_v63  ;;  %2233 = vmatpush1.bf16.msra.mxu1 %v1897_v55  ;;  %v2283_v63 = vrot.slane %v2250_v4, %v2282_v18  ;;  %v2324_v55 = vrot.slane %v2303_v33, %v6678_v61 }
 0x47c   :  { %2152 = vmatprep.subr.bf16.mxu0 %v1904_v52  ;;  %2234 = vmatprep.subr.bf16.mxu1 %v1906_v22  ;;  %v2328_v22 = vrot.slane %v2303_v33, %v6684_v16 }
 0x47f   :  { %2153 = vmatpush1.bf16.msra.mxu0 %v1903_v25  ;;  %2235 = vmatpush1.bf16.msra.mxu1 %v1905_v24 }
 0x480   :  { %2154 = vmatprep.subr.bf16.mxu0 %v1912_v28  ;;  %2236 = vmatprep.subr.bf16.mxu1 %v1914_v53 }
 0x483   :  { %2155 = vmatpush1.bf16.msra.mxu0 %v1911_v47  ;;  %2237 = vmatpush1.bf16.msra.mxu1 %v1913_v38 }
 0x486   :  { %2157 = vmatmul.mubr.bf16.vlgmr.msra.gmra.mrb[8].mxu0 %v6511_v26  ;;  %2239 = vmatmul.mubr.bf16.vlgmr.msra.gmra.mrb[16].mxu1 %v6511_v26  ;;  %v2255_v26 = vrot.slane %v2250_v4, %v7986_v35 }
 0x4d9   :  { %v1994_v41 = vpop.f32.mrb[4].mxu0  ;;  %v2076_v43 = vpop.f32.mrb[12].mxu1 }
 0x4da   :  { %v2292_v42 = vmul.f32 %v2255_v26, %v1994_v41  ;;  %v2294_v15 = vmul.f32 %v2263_v34, %v2076_v43  ;;  %v1996_v14 = vpop.f32.mrb[5].mxu0  ;;  %v2078_v9 = vpop.f32.mrb[13].mxu1 }
 0x4db   :  { %v2293_v11 = vmul.f32 %v2259_v45, %v1996_v14  ;;  %v2295_v49 = vmul.f32 %v2267_v2, %v2078_v9  ;;  %v1998_v51 = vpop.f32.mrb[6].mxu0  ;;  %v2080_v48 = vpop.f32.mrb[14].mxu1  ;;  %v7992_v9 = vld [vmem:[#allocation95_spill] sm:$0xff] }
 0x4dc   :  { %v2345_v50 = vadd.f32 %v2308_v39, %v2292_v42  ;;  %v2347_v8 = vadd.f32 %v2316_v36, %v2294_v15  ;;  %v1999_v10 = vpop.f32.mrb[7].mxu0  ;;  %v2081_v20 = vpop.f32.mrb[15].mxu1  ;;  %v7991_v15 = vld [vmem:[#allocation98_spill] sm:$0xff] }
 0x4dd   :  { %v2346_v57 = vadd.f32 %v2312_v30, %v2293_v11  ;;  %v2348_v59 = vadd.f32 %v2320_v40, %v2295_v49  ;;  %v7990_v40 = vld [vmem:[#allocation96_spill] sm:$0xff]  ;;  %v2600_v14 = vunpack.c.l.s8.bf16 %v7991_v15  ;;  %v2597_v11 = vunpack.c.l.s8.bf16 %v7992_v9  ;;  %v7993_v49 = vld [vmem:[#allocation97_spill] sm:$0xff] }
 0x4de   :  { %v2353_v56 = vmul.f32 0.2, %v2345_v50  ;;  %v2355_v58 = vmul.f32 0.2, %v2347_v8  ;;  %v2598_v42 = vunpack.c.l.s8.bf16 %v7990_v40  ;;  %v2599_v51 = vunpack.c.l.s8.bf16 %v7993_v49 }
 0x4df   :  { %v2354_v21 = vmul.f32 0.2, %v2346_v57  ;;  %v2356_v19 = vmul.f32 0.2, %v2348_v59 }
 0x4e0   :  { %v6669_v60 = vmax.f32 %v2345_v50, %v2353_v56  ;;  %v6671_v62 = vmax.f32 %v2347_v8, %v2355_v58 }
 0x4e1   :  { %v6673_v37 = vmax.f32 %v2346_v57, %v2354_v21  ;;  %v6675_v23 = vmax.f32 %v2348_v59, %v2356_v19 }
 0x559   :  { %v2158_v52 = vpop.f32.mrb[8].mxu0  ;;  %v2240_v17 = vpop.f32.mrb[16].mxu1 }
 0x55a   :  { %v2296_v25 = vmul.f32 %v2271_v13, %v2158_v52  ;;  %v2298_v27 = vmul.f32 %v2279_v12, %v2240_v17  ;;  %v2160_v24 = vpop.f32.mrb[9].mxu0  ;;  %v2242_v28 = vpop.f32.mrb[17].mxu1 }
 0x55b   :  { %v2297_v53 = vmul.f32 %v2275_v6, %v2160_v24  ;;  %v2299_v47 = vmul.f32 %v2283_v63, %v2242_v28  ;;  %v2162_v38 = vpop.f32.mrb[10].mxu0  ;;  %v2244_v44 = vpop.f32.mrb[18].mxu1 }
 0x55c   :  { %v2349_v1 = vadd.f32 %v2324_v55, %v2296_v25  ;;  %v2351_v5 = vadd.f32 %v2332_v46, %v2298_v27  ;;  %v2163_v3 = vpop.f32.mrb[11].mxu0  ;;  %v2245_v4 = vpop.f32.mrb[19].mxu1 }
 0x55d   :  { %v2350_v26 = vadd.f32 %v2328_v22, %v2297_v53  ;;  %v2352_v34 = vadd.f32 %v2336_v31, %v2299_v47 }
 0x55e   :  { %v2357_v45 = vmul.f32 0.2, %v2349_v1  ;;  %v2359_v2 = vmul.f32 0.2, %v2351_v5 }
 0x55f   :  { %v2358_v39 = vmul.f32 0.2, %v2350_v26  ;;  %v2360_v36 = vmul.f32 0.2, %v2352_v34 }
 0x560   :  { %v6693_v41 = vmax.f32 %v2349_v1, %v2357_v45  ;;  %v6695_v33 = vmax.f32 %v2351_v5, %v2359_v2 }
 0x561   :  { %v6697_v43 = vmax.f32 %v2350_v26, %v2358_v39  ;;  %v6699_v30 = vmax.f32 %v2352_v34, %v2360_v36 }
 0x562   :  { %4267 = dma.done.wait [#allocation4 + $0x1], 28672 }
 0x563   :  { %4268 = vsyncadd [#allocation4 + $0x1], 4294938624  ;;  %v2605_v48 = vunpack.c.h.s8.bf16 %v7990_v40  ;;  %v2607_v50 = vunpack.c.h.s8.bf16 %v7991_v15  ;;  %3053 = vmatprep.subr.bf16.mxu0 %v2598_v42  ;;  %3217 = vmatprep.subr.bf16.mxu1 %v2600_v14  ;;  %v2604_v8 = vunpack.c.h.s8.bf16 %v7992_v9  ;;  %v2606_v10 = vunpack.c.h.s8.bf16 %v7993_v49  ;;  %v7994_v20 = vld [vmem:[#allocation103_spill] sm:$0xff]  ;;  %v7995_v59 = vld [vmem:[#allocation105_spill] sm:$0xff] }
 0x564   :  { %3054 = vmatpush1.bf16.msra.mxu0 %v2597_v11  ;;  %3218 = vmatpush1.bf16.msra.mxu1 %v2599_v51  ;;  %v2612_v57 = vunpack.c.l.s8.bf16 %v7994_v20  ;;  %v2614_v56 = vunpack.c.l.s8.bf16 %v7995_v59  ;;  %v7996_v58 = vld [vmem:[#allocation102_spill] sm:$0xff]  ;;  %v7997_v19 = vld [vmem:[#allocation104_spill] sm:$0xff]  ;;  %v2619_v18 = vunpack.c.h.s8.bf16 %v7994_v20  ;;  %v2621_v13 = vunpack.c.h.s8.bf16 %v7995_v59  ;;  %v8000_v17 = vld [vmem:[#allocation109_spill] sm:$0xff] }
 0x565   :  { %3055 = vmatprep.subr.bf16.mxu0 %v2605_v48  ;;  %3219 = vmatprep.subr.bf16.mxu1 %v2607_v50  ;;  %v2611_v21 = vunpack.c.l.s8.bf16 %v7996_v58  ;;  %v2613_v54 = vunpack.c.l.s8.bf16 %v7997_v19  ;;  %v2618_v12 = vunpack.c.h.s8.bf16 %v7996_v58  ;;  %v2620_v6 = vunpack.c.h.s8.bf16 %v7997_v19  ;;  %v7998_v63 = vld [vmem:[#allocation110_spill] sm:$0xff]  ;;  %v7999_v46 = vld [vmem:[#allocation112_spill] sm:$0xff]  ;;  %v8001_v31 = vld [vmem:[#allocation111_spill] sm:$0xff] }
 0x566   :  { %v2626_v55 = vunpack.c.l.s8.bf16 %v7998_v63  ;;  %v2628_v52 = vunpack.c.l.s8.bf16 %v7999_v46  ;;  %v2625_v22 = vunpack.c.l.s8.bf16 %v8000_v17  ;;  %v2627_v25 = vunpack.c.l.s8.bf16 %v8001_v31  ;;  %v8002_v38 = vld [vmem:[#allocation117_spill] sm:$0xff]  ;;  %v8003_v1 = vld [vmem:[#allocation119_spill] sm:$0xff]  ;;  %v8005_v4 = vld [vmem:[#allocation118_spill] sm:$0xff] }
 0x567   :  { %v2633_v27 = vunpack.c.h.s8.bf16 %v7998_v63  ;;  %v2635_v24 = vunpack.c.h.s8.bf16 %v7999_v46  ;;  %v6725_v28 = vpack.c.bf16 %v6673_v37, %v6673_v37  ;;  %v2632_v53 = vunpack.c.h.s8.bf16 %v8000_v17  ;;  %v8004_v37 = vld [vmem:[#allocation116_spill] sm:$0xff]  ;;  %v8007_v42 = vld [vmem:[#allocation126_spill] sm:$0xff]  ;;  %v8008_v14 = vld [vmem:[#allocation123_spill] sm:$0xff] }
 0x568   :  { %3056 = vmatpush1.bf16.msra.mxu0 %v2604_v8  ;;  %3220 = vmatpush1.bf16.msra.mxu1 %v2606_v10  ;;  %v2634_v47 = vunpack.c.h.s8.bf16 %v8001_v31  ;;  %v2640_v44 = vunpack.c.l.s8.bf16 %v8002_v38  ;;  %v2642_v5 = vunpack.c.l.s8.bf16 %v8003_v1  ;;  %v2639_v3 = vunpack.c.l.s8.bf16 %v8004_v37  ;;  %v8006_v36 = vld [vmem:[#allocation124_spill] sm:$0xff]  ;;  %v8009_v11 = vld [vmem:[#allocation125_spill] sm:$0xff]  ;;  %v8010_v10 = vld [vmem:[#allocation131_spill] sm:$0xff] }
 0x569   :  { %3057 = vmatprep.subr.bf16.mxu0 %v2612_v57  ;;  %3221 = vmatprep.subr.bf16.mxu1 %v2614_v56  ;;  %v2641_v26 = vunpack.c.l.s8.bf16 %v8005_v4  ;;  %v2647_v34 = vunpack.c.h.s8.bf16 %v8002_v38  ;;  %v2649_v45 = vunpack.c.h.s8.bf16 %v8003_v1  ;;  %v2646_v2 = vunpack.c.h.s8.bf16 %v8004_v37  ;;  %v8011_v57 = vld [vmem:[#allocation133_spill] sm:$0xff]  ;;  %v8012_v56 = vld [vmem:[#allocation130_spill] sm:$0xff] }
 0x56a   :  { %3085 = vmatprep.mubr.bf16.mxu0 %v6725_v28  ;;  %3249 = vmatprep.mubr.bf16.mxu1 %v6725_v28  ;;  %v2648_v39 = vunpack.c.h.s8.bf16 %v8005_v4  ;;  %v2654_v40 = vunpack.c.l.s8.bf16 %v8006_v36  ;;  %v2656_v15 = vunpack.c.l.s8.bf16 %v8007_v42  ;;  %v2653_v9 = vunpack.c.l.s8.bf16 %v8008_v14 }
 0x56b   :  { %v2655_v49 = vunpack.c.l.s8.bf16 %v8009_v11  ;;  %v2661_v51 = vunpack.c.h.s8.bf16 %v8006_v36  ;;  %v2663_v48 = vunpack.c.h.s8.bf16 %v8007_v42  ;;  %v2660_v50 = vunpack.c.h.s8.bf16 %v8008_v14  ;;  %v8024_v14 = vld [vmem:[#allocation151_spill] sm:$0xff] }
 0x56c   :  { %3058 = vmatpush1.bf16.msra.mxu0 %v2611_v21  ;;  %3222 = vmatpush1.bf16.msra.mxu1 %v2613_v54  ;;  %v2662_v8 = vunpack.c.h.s8.bf16 %v8009_v11  ;;  %v2668_v20 = vunpack.c.l.s8.bf16 %v8010_v10  ;;  %v2670_v59 = vunpack.c.l.s8.bf16 %v8011_v57  ;;  %v2667_v58 = vunpack.c.l.s8.bf16 %v8012_v56  ;;  %v8013_v21 = vld [vmem:[#allocation132_spill] sm:$0xff]  ;;  %v8025_v11 = vld [vmem:[#allocation153_spill] sm:$0xff] }
 0x56d   :  { %3059 = vmatprep.subr.bf16.mxu0 %v2619_v18  ;;  %3223 = vmatprep.subr.bf16.mxu1 %v2621_v13  ;;  %v2669_v19 = vunpack.c.l.s8.bf16 %v8013_v21  ;;  %v2675_v54 = vunpack.c.h.s8.bf16 %v8010_v10  ;;  %v2677_v18 = vunpack.c.h.s8.bf16 %v8011_v57  ;;  %v2674_v13 = vunpack.c.h.s8.bf16 %v8012_v56  ;;  %v8026_v10 = vld [vmem:[#allocation159_spill] sm:$0xff]  ;;  %v8027_v57 = vld [vmem:[#allocation161_spill] sm:$0xff] }
 0x56e   :  { %vm3812_vm3 = vcmask 130048  }
 0x570   :  { %3060 = vmatpush1.bf16.msra.mxu0 %v2618_v12  ;;  %3224 = vmatpush1.bf16.msra.mxu1 %v2620_v6  ;;  %v2676_v12 = vunpack.c.h.s8.bf16 %v8013_v21  ;;  %v8014_v6 = vld [vmem:[#allocation138_spill] sm:$0xff] }
 0x571   :  { %3061 = vmatprep.subr.bf16.mxu0 %v2626_v55  ;;  %3225 = vmatprep.subr.bf16.mxu1 %v2628_v52  ;;  %v2682_v63 = vunpack.c.l.s8.bf16 %v8014_v6  ;;  %v8015_v55 = vld [vmem:[#allocation140_spill] sm:$0xff]  ;;  %v8016_v52 = vld [vmem:[#allocation137_spill] sm:$0xff] }
 0x572   :  { %v2684_v46 = vunpack.c.l.s8.bf16 %v8015_v55  ;;  %v2681_v17 = vunpack.c.l.s8.bf16 %v8016_v52 }
 0x574   :  { %3062 = vmatpush1.bf16.msra.mxu0 %v2625_v22  ;;  %3226 = vmatpush1.bf16.msra.mxu1 %v2627_v25  ;;  %v8017_v22 = vld [vmem:[#allocation139_spill] sm:$0xff]  ;;  %v2689_v25 = vunpack.c.h.s8.bf16 %v8014_v6 }
 0x575   :  { %3063 = vmatprep.subr.bf16.mxu0 %v2633_v27  ;;  %3227 = vmatprep.subr.bf16.mxu1 %v2635_v24  ;;  %v2683_v31 = vunpack.c.l.s8.bf16 %v8017_v22  ;;  %v2691_v27 = vunpack.c.h.s8.bf16 %v8015_v55  ;;  %v2688_v24 = vunpack.c.h.s8.bf16 %v8016_v52 }
 0x578   :  { %3064 = vmatpush1.bf16.msra.mxu0 %v2632_v53  ;;  %3228 = vmatpush1.bf16.msra.mxu1 %v2634_v47  ;;  %v2690_v53 = vunpack.c.h.s8.bf16 %v8017_v22  ;;  %v8018_v47 = vld [vmem:[#allocation145_spill] sm:$0xff] }
 0x579   :  { %3065 = vmatprep.subr.bf16.mxu0 %v2640_v44  ;;  %3229 = vmatprep.subr.bf16.mxu1 %v2642_v5  ;;  %v2696_v38 = vunpack.c.l.s8.bf16 %v8018_v47  ;;  %v8019_v44 = vld [vmem:[#allocation147_spill] sm:$0xff]  ;;  %v8020_v5 = vld [vmem:[#allocation144_spill] sm:$0xff] }
 0x57a   :  { %v2698_v1 = vunpack.c.l.s8.bf16 %v8019_v44  ;;  %v2695_v37 = vunpack.c.l.s8.bf16 %v8020_v5 }
 0x57c   :  { %3066 = vmatpush1.bf16.msra.mxu0 %v2639_v3  ;;  %3230 = vmatpush1.bf16.msra.mxu1 %v2641_v26  ;;  %v8021_v3 = vld [vmem:[#allocation146_spill] sm:$0xff]  ;;  %v2703_v26 = vunpack.c.h.s8.bf16 %v8018_v47 }
 0x57d   :  { %3067 = vmatprep.subr.bf16.mxu0 %v2647_v34  ;;  %3231 = vmatprep.subr.bf16.mxu1 %v2649_v45  ;;  %v2697_v4 = vunpack.c.l.s8.bf16 %v8021_v3  ;;  %v2705_v34 = vunpack.c.h.s8.bf16 %v8019_v44  ;;  %v2702_v45 = vunpack.c.h.s8.bf16 %v8020_v5 }
 0x580   :  { %3068 = vmatpush1.bf16.msra.mxu0 %v2646_v2  ;;  %3232 = vmatpush1.bf16.msra.mxu1 %v2648_v39  ;;  %v2704_v2 = vunpack.c.h.s8.bf16 %v8021_v3  ;;  %v8022_v39 = vld [vmem:[#allocation152_spill] sm:$0xff] }
 0x581   :  { %3069 = vmatprep.subr.bf16.mxu0 %v2654_v40  ;;  %3233 = vmatprep.subr.bf16.mxu1 %v2656_v15  ;;  %v2710_v36 = vunpack.c.l.s8.bf16 %v8022_v39  ;;  %v8023_v40 = vld [vmem:[#allocation154_spill] sm:$0xff]  ;;  %v6775_v15 = vpack.c.bf16 %v6669_v60, %v6669_v60  ;;  %v2716_v60 = vunpack.c.h.s8.bf16 %v8024_v14 }
 0x582   :  { %v2712_v42 = vunpack.c.l.s8.bf16 %v8023_v40 }
 0x584   :  { %3070 = vmatpush1.bf16.msra.mxu0 %v2653_v9  ;;  %3234 = vmatpush1.bf16.msra.mxu1 %v2655_v49  ;;  %v2709_v9 = vunpack.c.l.s8.bf16 %v8024_v14  ;;  %v2711_v49 = vunpack.c.l.s8.bf16 %v8025_v11 }
 0x585   :  { %3071 = vmatprep.subr.bf16.mxu0 %v2661_v51  ;;  %3235 = vmatprep.subr.bf16.mxu1 %v2663_v48  ;;  %v2717_v51 = vunpack.c.h.s8.bf16 %v8022_v39  ;;  %v2719_v48 = vunpack.c.h.s8.bf16 %v8023_v40 }
 0x588   :  { %3072 = vmatpush1.bf16.msra.mxu0 %v2660_v50  ;;  %3236 = vmatpush1.bf16.msra.mxu1 %v2662_v8  ;;  %v6783_v50 = vpack.c.bf16 %v6675_v23, %v6675_v23  ;;  %v2718_v8 = vunpack.c.h.s8.bf16 %v8025_v11  ;;  %v8028_v23 = vld [vmem:[#allocation158_spill] sm:$0xff] }
 0x589   :  { %3073 = vmatprep.subr.bf16.mxu0 %v2668_v20  ;;  %3237 = vmatprep.subr.bf16.mxu1 %v2670_v59  ;;  %v2724_v20 = vunpack.c.l.s8.bf16 %v8026_v10  ;;  %v2726_v59 = vunpack.c.l.s8.bf16 %v8027_v57  ;;  %v2723_v56 = vunpack.c.l.s8.bf16 %v8028_v23 }
 0x58c   :  { %3074 = vmatpush1.bf16.msra.mxu0 %v2667_v58  ;;  %3238 = vmatpush1.bf16.msra.mxu1 %v2669_v19  ;;  %v8029_v58 = vld [vmem:[#allocation160_spill] sm:$0xff]  ;;  %v2731_v19 = vunpack.c.h.s8.bf16 %v8026_v10 }
 0x58d   :  { %3075 = vmatprep.subr.bf16.mxu0 %v2675_v54  ;;  %3239 = vmatprep.subr.bf16.mxu1 %v2677_v18  ;;  %v2725_v21 = vunpack.c.l.s8.bf16 %v8029_v58  ;;  %v2733_v54 = vunpack.c.h.s8.bf16 %v8027_v57  ;;  %v2730_v18 = vunpack.c.h.s8.bf16 %v8028_v23 }
 0x590   :  { %3076 = vmatpush1.bf16.msra.mxu0 %v2674_v13  ;;  %3240 = vmatpush1.bf16.msra.mxu1 %v2676_v12  ;;  %v2732_v13 = vunpack.c.h.s8.bf16 %v8029_v58  ;;  %v8030_v12 = vld [vmem:[#allocation166_spill] sm:$0xff] }
 0x591   :  { %3077 = vmatprep.subr.bf16.mxu0 %v2682_v63  ;;  %3241 = vmatprep.subr.bf16.mxu1 %v2684_v46  ;;  %v2738_v6 = vunpack.c.l.s8.bf16 %v8030_v12  ;;  %v8031_v63 = vld [vmem:[#allocation168_spill] sm:$0xff]  ;;  %v8032_v46 = vld [vmem:[#allocation165_spill] sm:$0xff] }
 0x592   :  { %v2740_v55 = vunpack.c.l.s8.bf16 %v8031_v63  ;;  %v2737_v52 = vunpack.c.l.s8.bf16 %v8032_v46 }
 0x594   :  { %3078 = vmatpush1.bf16.msra.mxu0 %v2681_v17  ;;  %3242 = vmatpush1.bf16.msra.mxu1 %v2683_v31  ;;  %v8033_v17 = vld [vmem:[#allocation167_spill] sm:$0xff]  ;;  %v2745_v31 = vunpack.c.h.s8.bf16 %v8030_v12 }
 0x595   :  { %3079 = vmatprep.subr.bf16.mxu0 %v2689_v25  ;;  %3243 = vmatprep.subr.bf16.mxu1 %v2691_v27  ;;  %v2739_v22 = vunpack.c.l.s8.bf16 %v8033_v17  ;;  %v2747_v25 = vunpack.c.h.s8.bf16 %v8031_v63  ;;  %v2744_v27 = vunpack.c.h.s8.bf16 %v8032_v46 }
 0x598   :  { %3080 = vmatpush1.bf16.msra.mxu0 %v2688_v24  ;;  %3244 = vmatpush1.bf16.msra.mxu1 %v2690_v53  ;;  %v2746_v24 = vunpack.c.h.s8.bf16 %v8033_v17  ;;  %v8034_v53 = vld [vmem:[#allocation173_spill] sm:$0xff] }
 0x599   :  { %3081 = vmatprep.subr.bf16.mxu0 %v2696_v38  ;;  %3245 = vmatprep.subr.bf16.mxu1 %v2698_v1  ;;  %v2752_v47 = vunpack.c.l.s8.bf16 %v8034_v53  ;;  %v8035_v38 = vld [vmem:[#allocation175_spill] sm:$0xff]  ;;  %v8036_v1 = vld [vmem:[#allocation172_spill] sm:$0xff] }
 0x59a   :  { %v2754_v44 = vunpack.c.l.s8.bf16 %v8035_v38  ;;  %v2751_v5 = vunpack.c.l.s8.bf16 %v8036_v1 }
 0x59c   :  { %3082 = vmatpush1.bf16.msra.mxu0 %v2695_v37  ;;  %3246 = vmatpush1.bf16.msra.mxu1 %v2697_v4  ;;  %v8037_v37 = vld [vmem:[#allocation174_spill] sm:$0xff]  ;;  %v2759_v4 = vunpack.c.h.s8.bf16 %v8034_v53 }
 0x59d   :  { %3083 = vmatprep.subr.bf16.mxu0 %v2703_v26  ;;  %3247 = vmatprep.subr.bf16.mxu1 %v2705_v34  ;;  %v2753_v3 = vunpack.c.l.s8.bf16 %v8037_v37  ;;  %v2761_v26 = vunpack.c.h.s8.bf16 %v8035_v38  ;;  %v2758_v34 = vunpack.c.h.s8.bf16 %v8036_v1 }
 0x5a0   :  { %3084 = vmatpush1.bf16.msra.mxu0 %v2702_v45  ;;  %3248 = vmatpush1.bf16.msra.mxu1 %v2704_v2  ;;  %v2760_v45 = vunpack.c.h.s8.bf16 %v8037_v37  ;;  %v8038_v2 = vld [vmem:[#allocation180_spill] sm:$0xff] }
 0x5a1   :  { %3094 = vmatprep.subr.bf16.mxu0 %v2710_v36  ;;  %3258 = vmatprep.subr.bf16.mxu1 %v2712_v42  ;;  %v2766_v39 = vunpack.c.l.s8.bf16 %v8038_v2  ;;  %v8039_v36 = vld [vmem:[#allocation182_spill] sm:$0xff]  ;;  %v8040_v42 = vld [vmem:[#allocation179_spill] sm:$0xff] }
 0x5a2   :  { %v2768_v40 = vunpack.c.l.s8.bf16 %v8039_v36  ;;  %v2765_v14 = vunpack.c.l.s8.bf16 %v8040_v42 }
 0x5a3   :  { %3086 = vmatmul.mubr.bf16.vlgmr.msra.gmra.mrb[12].mxu0 %v6775_v15  ;;  %3250 = vmatmul.mubr.bf16.vlgmr.msra.gmra.mrb[20].mxu1 %v6775_v15 }
 0x5a4   :  { %3095 = vmatpush1.bf16.msra.mxu0 %v2709_v9  ;;  %3259 = vmatpush1.bf16.msra.mxu1 %v2711_v49  ;;  %v8041_v9 = vld [vmem:[#allocation181_spill] sm:$0xff]  ;;  %v2773_v49 = vunpack.c.h.s8.bf16 %v8038_v2 }
 0x5a5   :  { %3096 = vmatprep.subr.bf16.mxu0 %v2717_v51  ;;  %3260 = vmatprep.subr.bf16.mxu1 %v2719_v48  ;;  %v2767_v11 = vunpack.c.l.s8.bf16 %v8041_v9  ;;  %v2775_v51 = vunpack.c.h.s8.bf16 %v8039_v36  ;;  %v2772_v48 = vunpack.c.h.s8.bf16 %v8040_v42  ;;  %v8056_v42 = vld [vmem:[#allocation207_spill] sm:$0xff] }
 0x5a6   :  { %3126 = vmatprep.mubr.bf16.mxu0 %v6783_v50  ;;  %3290 = vmatprep.mubr.bf16.mxu1 %v6783_v50 }
 0x5a8   :  { %3097 = vmatpush1.bf16.msra.mxu0 %v2716_v60  ;;  %3261 = vmatpush1.bf16.msra.mxu1 %v2718_v8  ;;  %v2774_v60 = vunpack.c.h.s8.bf16 %v8041_v9  ;;  %v8042_v8 = vld [vmem:[#allocation187_spill] sm:$0xff]  ;;  %v8057_v9 = vld [vmem:[#allocation209_spill] sm:$0xff] }
 0x5a9   :  { %3098 = vmatprep.subr.bf16.mxu0 %v2724_v20  ;;  %3262 = vmatprep.subr.bf16.mxu1 %v2726_v59  ;;  %v2780_v10 = vunpack.c.l.s8.bf16 %v8042_v8  ;;  %v8043_v20 = vld [vmem:[#allocation189_spill] sm:$0xff]  ;;  %v8044_v59 = vld [vmem:[#allocation186_spill] sm:$0xff] }
 0x5aa   :  { %v2782_v57 = vunpack.c.l.s8.bf16 %v8043_v20  ;;  %v2779_v23 = vunpack.c.l.s8.bf16 %v8044_v59 }
 0x5ac   :  { %3099 = vmatpush1.bf16.msra.mxu0 %v2723_v56  ;;  %3263 = vmatpush1.bf16.msra.mxu1 %v2725_v21  ;;  %v8045_v56 = vld [vmem:[#allocation188_spill] sm:$0xff]  ;;  %v2787_v21 = vunpack.c.h.s8.bf16 %v8042_v8  ;;  %v8058_v8 = vld [vmem:[#allocation215_spill] sm:$0xff] }
 0x5ad   :  { %3100 = vmatprep.subr.bf16.mxu0 %v2731_v19  ;;  %3264 = vmatprep.subr.bf16.mxu1 %v2733_v54  ;;  %v2781_v58 = vunpack.c.l.s8.bf16 %v8045_v56  ;;  %v2789_v19 = vunpack.c.h.s8.bf16 %v8043_v20  ;;  %v2786_v54 = vunpack.c.h.s8.bf16 %v8044_v59  ;;  %v8059_v20 = vld [vmem:[#allocation217_spill] sm:$0xff] }
 0x5b0   :  { %3101 = vmatpush1.bf16.msra.mxu0 %v2730_v18  ;;  %3265 = vmatpush1.bf16.msra.mxu1 %v2732_v13  ;;  %v2788_v18 = vunpack.c.h.s8.bf16 %v8045_v56  ;;  %v8046_v13 = vld [vmem:[#allocation194_spill] sm:$0xff] }
 0x5b1   :  { %3102 = vmatprep.subr.bf16.mxu0 %v2738_v6  ;;  %3266 = vmatprep.subr.bf16.mxu1 %v2740_v55  ;;  %v2794_v12 = vunpack.c.l.s8.bf16 %v8046_v13  ;;  %v8047_v6 = vld [vmem:[#allocation196_spill] sm:$0xff]  ;;  %v8048_v55 = vld [vmem:[#allocation193_spill] sm:$0xff] }
 0x5b2   :  { %v2796_v63 = vunpack.c.l.s8.bf16 %v8047_v6  ;;  %v2793_v46 = vunpack.c.l.s8.bf16 %v8048_v55 }
 0x5b4   :  { %3103 = vmatpush1.bf16.msra.mxu0 %v2737_v52  ;;  %3267 = vmatpush1.bf16.msra.mxu1 %v2739_v22  ;;  %v8049_v52 = vld [vmem:[#allocation195_spill] sm:$0xff]  ;;  %v2801_v22 = vunpack.c.h.s8.bf16 %v8046_v13 }
 0x5b5   :  { %3104 = vmatprep.subr.bf16.mxu0 %v2745_v31  ;;  %3268 = vmatprep.subr.bf16.mxu1 %v2747_v25  ;;  %v2795_v17 = vunpack.c.l.s8.bf16 %v8049_v52  ;;  %v2803_v31 = vunpack.c.h.s8.bf16 %v8047_v6  ;;  %v2800_v25 = vunpack.c.h.s8.bf16 %v8048_v55 }
 0x5b8   :  { %3105 = vmatpush1.bf16.msra.mxu0 %v2744_v27  ;;  %3269 = vmatpush1.bf16.msra.mxu1 %v2746_v24  ;;  %v2802_v27 = vunpack.c.h.s8.bf16 %v8049_v52  ;;  %v8050_v24 = vld [vmem:[#allocation201_spill] sm:$0xff] }
 0x5b9   :  { %3106 = vmatprep.subr.bf16.mxu0 %v2752_v47  ;;  %3270 = vmatprep.subr.bf16.mxu1 %v2754_v44  ;;  %v2808_v53 = vunpack.c.l.s8.bf16 %v8050_v24  ;;  %v8051_v47 = vld [vmem:[#allocation203_spill] sm:$0xff]  ;;  %v8052_v44 = vld [vmem:[#allocation200_spill] sm:$0xff] }
 0x5ba   :  { %v2810_v38 = vunpack.c.l.s8.bf16 %v8051_v47  ;;  %v2807_v1 = vunpack.c.l.s8.bf16 %v8052_v44 }
 0x5bc   :  { %3107 = vmatpush1.bf16.msra.mxu0 %v2751_v5  ;;  %3271 = vmatpush1.bf16.msra.mxu1 %v2753_v3  ;;  %v8053_v5 = vld [vmem:[#allocation202_spill] sm:$0xff]  ;;  %v2815_v3 = vunpack.c.h.s8.bf16 %v8050_v24 }
 0x5bd   :  { %3108 = vmatprep.subr.bf16.mxu0 %v2759_v4  ;;  %3272 = vmatprep.subr.bf16.mxu1 %v2761_v26  ;;  %v2809_v37 = vunpack.c.l.s8.bf16 %v8053_v5  ;;  %v2817_v4 = vunpack.c.h.s8.bf16 %v8051_v47  ;;  %v2814_v26 = vunpack.c.h.s8.bf16 %v8052_v44 }
 0x5c0   :  { %3109 = vmatpush1.bf16.msra.mxu0 %v2758_v34  ;;  %3273 = vmatpush1.bf16.msra.mxu1 %v2760_v45  ;;  %v2816_v34 = vunpack.c.h.s8.bf16 %v8053_v5  ;;  %v8054_v45 = vld [vmem:[#allocation208_spill] sm:$0xff] }
 0x5c1   :  { %3110 = vmatprep.subr.bf16.mxu0 %v2766_v39  ;;  %3274 = vmatprep.subr.bf16.mxu1 %v2768_v40  ;;  %v2822_v2 = vunpack.c.l.s8.bf16 %v8054_v45  ;;  %v8055_v39 = vld [vmem:[#allocation210_spill] sm:$0xff]  ;;  %v6851_v40 = vpack.c.bf16 %v6671_v62, %v6671_v62  ;;  %v2828_v62 = vunpack.c.h.s8.bf16 %v8056_v42 }
 0x5c2   :  { %v2824_v36 = vunpack.c.l.s8.bf16 %v8055_v39 }
 0x5c4   :  { %3111 = vmatpush1.bf16.msra.mxu0 %v2765_v14  ;;  %3275 = vmatpush1.bf16.msra.mxu1 %v2767_v11  ;;  %v2821_v14 = vunpack.c.l.s8.bf16 %v8056_v42  ;;  %v2823_v11 = vunpack.c.l.s8.bf16 %v8057_v9 }
 0x5c5   :  { %3112 = vmatprep.subr.bf16.mxu0 %v2773_v49  ;;  %3276 = vmatprep.subr.bf16.mxu1 %v2775_v51  ;;  %v2829_v49 = vunpack.c.h.s8.bf16 %v8054_v45  ;;  %v2831_v51 = vunpack.c.h.s8.bf16 %v8055_v39 }
 0x5c8   :  { %3113 = vmatpush1.bf16.msra.mxu0 %v2772_v48  ;;  %3277 = vmatpush1.bf16.msra.mxu1 %v2774_v60  ;;  %v6859_v48 = vpack.c.bf16 %v6697_v43, %v6697_v43  ;;  %v2830_v60 = vunpack.c.h.s8.bf16 %v8057_v9  ;;  %v8060_v43 = vld [vmem:[#allocation214_spill] sm:$0xff] }
 0x5c9   :  { %3114 = vmatprep.subr.bf16.mxu0 %v2780_v10  ;;  %3278 = vmatprep.subr.bf16.mxu1 %v2782_v57  ;;  %v2836_v10 = vunpack.c.l.s8.bf16 %v8058_v8  ;;  %v2838_v57 = vunpack.c.l.s8.bf16 %v8059_v20  ;;  %v2835_v59 = vunpack.c.l.s8.bf16 %v8060_v43 }
 0x5cc   :  { %3115 = vmatpush1.bf16.msra.mxu0 %v2779_v23  ;;  %3279 = vmatpush1.bf16.msra.mxu1 %v2781_v58  ;;  %v8061_v23 = vld [vmem:[#allocation216_spill] sm:$0xff]  ;;  %v2843_v58 = vunpack.c.h.s8.bf16 %v8058_v8 }
 0x5cd   :  { %3116 = vmatprep.subr.bf16.mxu0 %v2787_v21  ;;  %3280 = vmatprep.subr.bf16.mxu1 %v2789_v19  ;;  %v2837_v56 = vunpack.c.l.s8.bf16 %v8061_v23  ;;  %v2845_v21 = vunpack.c.h.s8.bf16 %v8059_v20  ;;  %v2842_v19 = vunpack.c.h.s8.bf16 %v8060_v43 }
 0x5d0   :  { %3117 = vmatpush1.bf16.msra.mxu0 %v2786_v54  ;;  %3281 = vmatpush1.bf16.msra.mxu1 %v2788_v18  ;;  %v2844_v54 = vunpack.c.h.s8.bf16 %v8061_v23  ;;  %v8062_v18 = vld [vmem:[#allocation222_spill] sm:$0xff] }
 0x5d1   :  { %3118 = vmatprep.subr.bf16.mxu0 %v2794_v12  ;;  %3282 = vmatprep.subr.bf16.mxu1 %v2796_v63  ;;  %v2850_v13 = vunpack.c.l.s8.bf16 %v8062_v18  ;;  %v8063_v12 = vld [vmem:[#allocation224_spill] sm:$0xff]  ;;  %v8064_v63 = vld [vmem:[#allocation221_spill] sm:$0xff] }
 0x5d2   :  { %v2852_v6 = vunpack.c.l.s8.bf16 %v8063_v12  ;;  %v2849_v55 = vunpack.c.l.s8.bf16 %v8064_v63 }
 0x5d4   :  { %3119 = vmatpush1.bf16.msra.mxu0 %v2793_v46  ;;  %3283 = vmatpush1.bf16.msra.mxu1 %v2795_v17  ;;  %v8065_v46 = vld [vmem:[#allocation223_spill] sm:$0xff]  ;;  %v2857_v17 = vunpack.c.h.s8.bf16 %v8062_v18 }
 0x5d5   :  { %3120 = vmatprep.subr.bf16.mxu0 %v2801_v22  ;;  %3284 = vmatprep.subr.bf16.mxu1 %v2803_v31  ;;  %v2851_v52 = vunpack.c.l.s8.bf16 %v8065_v46  ;;  %v2859_v22 = vunpack.c.h.s8.bf16 %v8063_v12  ;;  %v2856_v31 = vunpack.c.h.s8.bf16 %v8064_v63 }
 0x5d8   :  { %3121 = vmatpush1.bf16.msra.mxu0 %v2800_v25  ;;  %3285 = vmatpush1.bf16.msra.mxu1 %v2802_v27  ;;  %v2858_v25 = vunpack.c.h.s8.bf16 %v8065_v46  ;;  %v8066_v27 = vld [vmem:[#allocation229_spill] sm:$0xff] }
 0x5d9   :  { %3122 = vmatprep.subr.bf16.mxu0 %v2808_v53  ;;  %3286 = vmatprep.subr.bf16.mxu1 %v2810_v38  ;;  %v2864_v24 = vunpack.c.l.s8.bf16 %v8066_v27  ;;  %v8067_v53 = vld [vmem:[#allocation231_spill] sm:$0xff]  ;;  %v8068_v38 = vld [vmem:[#allocation228_spill] sm:$0xff] }
 0x5da   :  { %v2866_v47 = vunpack.c.l.s8.bf16 %v8067_v53  ;;  %v2863_v44 = vunpack.c.l.s8.bf16 %v8068_v38 }
 0x5dc   :  { %3123 = vmatpush1.bf16.msra.mxu0 %v2807_v1  ;;  %3287 = vmatpush1.bf16.msra.mxu1 %v2809_v37  ;;  %v8069_v1 = vld [vmem:[#allocation230_spill] sm:$0xff]  ;;  %v2871_v37 = vunpack.c.h.s8.bf16 %v8066_v27 }
 0x5dd   :  { %3124 = vmatprep.subr.bf16.mxu0 %v2815_v3  ;;  %3288 = vmatprep.subr.bf16.mxu1 %v2817_v4  ;;  %v2865_v5 = vunpack.c.l.s8.bf16 %v8069_v1  ;;  %v2873_v3 = vunpack.c.h.s8.bf16 %v8067_v53  ;;  %v2870_v4 = vunpack.c.h.s8.bf16 %v8068_v38 }
 0x5e0   :  { %3125 = vmatpush1.bf16.msra.mxu0 %v2814_v26  ;;  %3289 = vmatpush1.bf16.msra.mxu1 %v2816_v34  ;;  %v2872_v26 = vunpack.c.h.s8.bf16 %v8069_v1  ;;  %v8070_v34 = vld [vmem:[#allocation236_spill] sm:$0xff] }
 0x5e1   :  { %3135 = vmatprep.subr.bf16.mxu0 %v2822_v2  ;;  %3299 = vmatprep.subr.bf16.mxu1 %v2824_v36  ;;  %v2878_v45 = vunpack.c.l.s8.bf16 %v8070_v34  ;;  %v8071_v2 = vld [vmem:[#allocation238_spill] sm:$0xff]  ;;  %v8072_v36 = vld [vmem:[#allocation235_spill] sm:$0xff] }
 0x5e2   :  { %v2880_v39 = vunpack.c.l.s8.bf16 %v8071_v2  ;;  %v2877_v42 = vunpack.c.l.s8.bf16 %v8072_v36 }
 0x5e3   :  { %3127 = vmatmul.mubr.bf16.vlgmr.msra.gmra.mrb[12].mxu0 %v6851_v40  ;;  %3291 = vmatmul.mubr.bf16.vlgmr.msra.gmra.mrb[20].mxu1 %v6851_v40 }
 0x5e4   :  { %3136 = vmatpush1.bf16.msra.mxu0 %v2821_v14  ;;  %3300 = vmatpush1.bf16.msra.mxu1 %v2823_v11  ;;  %v8073_v14 = vld [vmem:[#allocation237_spill] sm:$0xff]  ;;  %v2885_v11 = vunpack.c.h.s8.bf16 %v8070_v34 }
 0x5e5   :  { %3137 = vmatprep.subr.bf16.mxu0 %v2829_v49  ;;  %3301 = vmatprep.subr.bf16.mxu1 %v2831_v51  ;;  %v2879_v9 = vunpack.c.l.s8.bf16 %v8073_v14  ;;  %v2887_v49 = vunpack.c.h.s8.bf16 %v8071_v2  ;;  %v2884_v51 = vunpack.c.h.s8.bf16 %v8072_v36  ;;  %v8088_v36 = vld [vmem:[#allocation263_spill] sm:$0xff] }
 0x5e6   :  { %3167 = vmatprep.mubr.bf16.mxu0 %v6859_v48  ;;  %3331 = vmatprep.mubr.bf16.mxu1 %v6859_v48 }
 0x5e8   :  { %3138 = vmatpush1.bf16.msra.mxu0 %v2828_v62  ;;  %3302 = vmatpush1.bf16.msra.mxu1 %v2830_v60  ;;  %v2886_v62 = vunpack.c.h.s8.bf16 %v8073_v14  ;;  %v8074_v60 = vld [vmem:[#allocation243_spill] sm:$0xff]  ;;  %v8089_v14 = vld [vmem:[#allocation265_spill] sm:$0xff] }
 0x5e9   :  { %3139 = vmatprep.subr.bf16.mxu0 %v2836_v10  ;;  %3303 = vmatprep.subr.bf16.mxu1 %v2838_v57  ;;  %v2892_v8 = vunpack.c.l.s8.bf16 %v8074_v60  ;;  %v8075_v10 = vld [vmem:[#allocation245_spill] sm:$0xff]  ;;  %v8076_v57 = vld [vmem:[#allocation242_spill] sm:$0xff] }
 0x5ea   :  { %v2894_v20 = vunpack.c.l.s8.bf16 %v8075_v10  ;;  %v2891_v43 = vunpack.c.l.s8.bf16 %v8076_v57 }
 0x5ec   :  { %3140 = vmatpush1.bf16.msra.mxu0 %v2835_v59  ;;  %3304 = vmatpush1.bf16.msra.mxu1 %v2837_v56  ;;  %v8077_v59 = vld [vmem:[#allocation244_spill] sm:$0xff]  ;;  %v2899_v56 = vunpack.c.h.s8.bf16 %v8074_v60  ;;  %v8090_v60 = vld [vmem:[#allocation271_spill] sm:$0xff] }
 0x5ed   :  { %3141 = vmatprep.subr.bf16.mxu0 %v2843_v58  ;;  %3305 = vmatprep.subr.bf16.mxu1 %v2845_v21  ;;  %v2893_v23 = vunpack.c.l.s8.bf16 %v8077_v59  ;;  %v2901_v58 = vunpack.c.h.s8.bf16 %v8075_v10  ;;  %v2898_v21 = vunpack.c.h.s8.bf16 %v8076_v57  ;;  %v8091_v10 = vld [vmem:[#allocation273_spill] sm:$0xff] }
 0x5f0   :  { %3142 = vmatpush1.bf16.msra.mxu0 %v2842_v19  ;;  %3306 = vmatpush1.bf16.msra.mxu1 %v2844_v54  ;;  %v2900_v19 = vunpack.c.h.s8.bf16 %v8077_v59  ;;  %v8078_v54 = vld [vmem:[#allocation250_spill] sm:$0xff] }
 0x5f1   :  { %3143 = vmatprep.subr.bf16.mxu0 %v2850_v13  ;;  %3307 = vmatprep.subr.bf16.mxu1 %v2852_v6  ;;  %v2906_v18 = vunpack.c.l.s8.bf16 %v8078_v54  ;;  %v8079_v13 = vld [vmem:[#allocation252_spill] sm:$0xff]  ;;  %v8080_v6 = vld [vmem:[#allocation249_spill] sm:$0xff] }
 0x5f2   :  { %v2908_v12 = vunpack.c.l.s8.bf16 %v8079_v13  ;;  %v2905_v63 = vunpack.c.l.s8.bf16 %v8080_v6 }
 0x5f4   :  { %3144 = vmatpush1.bf16.msra.mxu0 %v2849_v55  ;;  %3308 = vmatpush1.bf16.msra.mxu1 %v2851_v52  ;;  %v8081_v55 = vld [vmem:[#allocation251_spill] sm:$0xff]  ;;  %v2913_v52 = vunpack.c.h.s8.bf16 %v8078_v54 }
 0x5f5   :  { %3145 = vmatprep.subr.bf16.mxu0 %v2857_v17  ;;  %3309 = vmatprep.subr.bf16.mxu1 %v2859_v22  ;;  %v2907_v46 = vunpack.c.l.s8.bf16 %v8081_v55  ;;  %v2915_v17 = vunpack.c.h.s8.bf16 %v8079_v13  ;;  %v2912_v22 = vunpack.c.h.s8.bf16 %v8080_v6 }
 0x5f8   :  { %3146 = vmatpush1.bf16.msra.mxu0 %v2856_v31  ;;  %3310 = vmatpush1.bf16.msra.mxu1 %v2858_v25  ;;  %v2914_v31 = vunpack.c.h.s8.bf16 %v8081_v55  ;;  %v8082_v25 = vld [vmem:[#allocation257_spill] sm:$0xff] }
 0x5f9   :  { %3147 = vmatprep.subr.bf16.mxu0 %v2864_v24  ;;  %3311 = vmatprep.subr.bf16.mxu1 %v2866_v47  ;;  %v2920_v27 = vunpack.c.l.s8.bf16 %v8082_v25  ;;  %v8083_v24 = vld [vmem:[#allocation259_spill] sm:$0xff]  ;;  %v8084_v47 = vld [vmem:[#allocation256_spill] sm:$0xff] }
 0x5fa   :  { %v2922_v53 = vunpack.c.l.s8.bf16 %v8083_v24  ;;  %v2919_v38 = vunpack.c.l.s8.bf16 %v8084_v47 }
 0x5fc   :  { %3148 = vmatpush1.bf16.msra.mxu0 %v2863_v44  ;;  %3312 = vmatpush1.bf16.msra.mxu1 %v2865_v5  ;;  %v8085_v44 = vld [vmem:[#allocation258_spill] sm:$0xff]  ;;  %v2927_v5 = vunpack.c.h.s8.bf16 %v8082_v25 }
 0x5fd   :  { %3149 = vmatprep.subr.bf16.mxu0 %v2871_v37  ;;  %3313 = vmatprep.subr.bf16.mxu1 %v2873_v3  ;;  %v2921_v1 = vunpack.c.l.s8.bf16 %v8085_v44  ;;  %v2929_v37 = vunpack.c.h.s8.bf16 %v8083_v24  ;;  %v2926_v3 = vunpack.c.h.s8.bf16 %v8084_v47 }
 0x600   :  { %3150 = vmatpush1.bf16.msra.mxu0 %v2870_v4  ;;  %3314 = vmatpush1.bf16.msra.mxu1 %v2872_v26  ;;  %v2928_v4 = vunpack.c.h.s8.bf16 %v8085_v44  ;;  %v8086_v26 = vld [vmem:[#allocation264_spill] sm:$0xff] }
 0x601   :  { %3151 = vmatprep.subr.bf16.mxu0 %v2878_v45  ;;  %3315 = vmatprep.subr.bf16.mxu1 %v2880_v39  ;;  %v2934_v34 = vunpack.c.l.s8.bf16 %v8086_v26  ;;  %v8087_v45 = vld [vmem:[#allocation266_spill] sm:$0xff]  ;;  %v6927_v39 = vpack.c.bf16 %v6693_v41, %v6693_v41  ;;  %v2940_v41 = vunpack.c.h.s8.bf16 %v8088_v36 }
 0x602   :  { %v2936_v2 = vunpack.c.l.s8.bf16 %v8087_v45 }
 0x604   :  { %3152 = vmatpush1.bf16.msra.mxu0 %v2877_v42  ;;  %3316 = vmatpush1.bf16.msra.mxu1 %v2879_v9  ;;  %v2933_v42 = vunpack.c.l.s8.bf16 %v8088_v36  ;;  %v2935_v9 = vunpack.c.l.s8.bf16 %v8089_v14 }
 0x605   :  { %3153 = vmatprep.subr.bf16.mxu0 %v2885_v11  ;;  %3317 = vmatprep.subr.bf16.mxu1 %v2887_v49  ;;  %v2941_v11 = vunpack.c.h.s8.bf16 %v8086_v26  ;;  %v2943_v49 = vunpack.c.h.s8.bf16 %v8087_v45 }
 0x608   :  { %3154 = vmatpush1.bf16.msra.mxu0 %v2884_v51  ;;  %3318 = vmatpush1.bf16.msra.mxu1 %v2886_v62  ;;  %v6935_v51 = vpack.c.bf16 %v6699_v30, %v6699_v30  ;;  %v2942_v62 = vunpack.c.h.s8.bf16 %v8089_v14  ;;  %v8092_v30 = vld [vmem:[#allocation270_spill] sm:$0xff] }
 0x609   :  { %3155 = vmatprep.subr.bf16.mxu0 %v2892_v8  ;;  %3319 = vmatprep.subr.bf16.mxu1 %v2894_v20  ;;  %v2948_v8 = vunpack.c.l.s8.bf16 %v8090_v60  ;;  %v2950_v20 = vunpack.c.l.s8.bf16 %v8091_v10  ;;  %v2947_v57 = vunpack.c.l.s8.bf16 %v8092_v30 }
 0x60c   :  { %3156 = vmatpush1.bf16.msra.mxu0 %v2891_v43  ;;  %3320 = vmatpush1.bf16.msra.mxu1 %v2893_v23  ;;  %v8093_v43 = vld [vmem:[#allocation272_spill] sm:$0xff]  ;;  %v2955_v23 = vunpack.c.h.s8.bf16 %v8090_v60 }
 0x60d   :  { %3157 = vmatprep.subr.bf16.mxu0 %v2899_v56  ;;  %3321 = vmatprep.subr.bf16.mxu1 %v2901_v58  ;;  %v2949_v59 = vunpack.c.l.s8.bf16 %v8093_v43  ;;  %v2957_v56 = vunpack.c.h.s8.bf16 %v8091_v10  ;;  %v2954_v58 = vunpack.c.h.s8.bf16 %v8092_v30 }
 0x610   :  { %3158 = vmatpush1.bf16.msra.mxu0 %v2898_v21  ;;  %3322 = vmatpush1.bf16.msra.mxu1 %v2900_v19  ;;  %v2956_v21 = vunpack.c.h.s8.bf16 %v8093_v43  ;;  %v8094_v19 = vld [vmem:[#allocation278_spill] sm:$0xff] }
 0x611   :  { %3159 = vmatprep.subr.bf16.mxu0 %v2906_v18  ;;  %3323 = vmatprep.subr.bf16.mxu1 %v2908_v12  ;;  %v2962_v54 = vunpack.c.l.s8.bf16 %v8094_v19  ;;  %v8095_v18 = vld [vmem:[#allocation280_spill] sm:$0xff]  ;;  %v8096_v12 = vld [vmem:[#allocation277_spill] sm:$0xff] }
 0x612   :  { %v2964_v13 = vunpack.c.l.s8.bf16 %v8095_v18  ;;  %v2961_v6 = vunpack.c.l.s8.bf16 %v8096_v12 }
 0x614   :  { %3160 = vmatpush1.bf16.msra.mxu0 %v2905_v63  ;;  %3324 = vmatpush1.bf16.msra.mxu1 %v2907_v46  ;;  %v8097_v63 = vld [vmem:[#allocation279_spill] sm:$0xff]  ;;  %v2969_v46 = vunpack.c.h.s8.bf16 %v8094_v19 }
 0x615   :  { %3161 = vmatprep.subr.bf16.mxu0 %v2913_v52  ;;  %3325 = vmatprep.subr.bf16.mxu1 %v2915_v17  ;;  %v2963_v55 = vunpack.c.l.s8.bf16 %v8097_v63  ;;  %v2971_v52 = vunpack.c.h.s8.bf16 %v8095_v18  ;;  %v2968_v17 = vunpack.c.h.s8.bf16 %v8096_v12 }
 0x618   :  { %3162 = vmatpush1.bf16.msra.mxu0 %v2912_v22  ;;  %3326 = vmatpush1.bf16.msra.mxu1 %v2914_v31  ;;  %v2970_v22 = vunpack.c.h.s8.bf16 %v8097_v63  ;;  %v8098_v31 = vld [vmem:[#allocation285_spill] sm:$0xff] }
 0x619   :  { %3163 = vmatprep.subr.bf16.mxu0 %v2920_v27  ;;  %3327 = vmatprep.subr.bf16.mxu1 %v2922_v53  ;;  %v2976_v25 = vunpack.c.l.s8.bf16 %v8098_v31  ;;  %v8099_v27 = vld [vmem:[#allocation287_spill] sm:$0xff]  ;;  %v8100_v53 = vld [vmem:[#allocation284_spill] sm:$0xff] }
 0x61a   :  { %v2978_v24 = vunpack.c.l.s8.bf16 %v8099_v27  ;;  %v2975_v47 = vunpack.c.l.s8.bf16 %v8100_v53 }
 0x61c   :  { %3164 = vmatpush1.bf16.msra.mxu0 %v2919_v38  ;;  %3328 = vmatpush1.bf16.msra.mxu1 %v2921_v1  ;;  %v8101_v38 = vld [vmem:[#allocation286_spill] sm:$0xff]  ;;  %v2983_v1 = vunpack.c.h.s8.bf16 %v8098_v31 }
 0x61d   :  { %3165 = vmatprep.subr.bf16.mxu0 %v2927_v5  ;;  %3329 = vmatprep.subr.bf16.mxu1 %v2929_v37  ;;  %v2977_v44 = vunpack.c.l.s8.bf16 %v8101_v38  ;;  %v2985_v5 = vunpack.c.h.s8.bf16 %v8099_v27  ;;  %v2982_v37 = vunpack.c.h.s8.bf16 %v8100_v53 }
 0x620   :  { %3166 = vmatpush1.bf16.msra.mxu0 %v2926_v3  ;;  %3330 = vmatpush1.bf16.msra.mxu1 %v2928_v4  ;;  %v2984_v3 = vunpack.c.h.s8.bf16 %v8101_v38  ;;  %v8102_v4 = vld [vmem:[#allocation292_spill] sm:$0xff] }
 0x621   :  { %3176 = vmatprep.subr.bf16.mxu0 %v2934_v34  ;;  %3340 = vmatprep.subr.bf16.mxu1 %v2936_v2  ;;  %v2990_v26 = vunpack.c.l.s8.bf16 %v8102_v4  ;;  %v8103_v34 = vld [vmem:[#allocation294_spill] sm:$0xff]  ;;  %v8104_v2 = vld [vmem:[#allocation291_spill] sm:$0xff] }
 0x622   :  { %v2992_v45 = vunpack.c.l.s8.bf16 %v8103_v34  ;;  %v2989_v36 = vunpack.c.l.s8.bf16 %v8104_v2 }
 0x623   :  { %3168 = vmatmul.mubr.bf16.vlgmr.msra.gmra.mrb[12].mxu0 %v6927_v39  ;;  %3332 = vmatmul.mubr.bf16.vlgmr.msra.gmra.mrb[20].mxu1 %v6927_v39 }
 0x624   :  { %3177 = vmatpush1.bf16.msra.mxu0 %v2933_v42  ;;  %3341 = vmatpush1.bf16.msra.mxu1 %v2935_v9  ;;  %v8105_v42 = vld [vmem:[#allocation293_spill] sm:$0xff]  ;;  %v2997_v9 = vunpack.c.h.s8.bf16 %v8102_v4 }
 0x625   :  { %3178 = vmatprep.subr.bf16.mxu0 %v2941_v11  ;;  %3342 = vmatprep.subr.bf16.mxu1 %v2943_v49  ;;  %v2991_v14 = vunpack.c.l.s8.bf16 %v8105_v42  ;;  %v2999_v11 = vunpack.c.h.s8.bf16 %v8103_v34  ;;  %v2996_v49 = vunpack.c.h.s8.bf16 %v8104_v2  ;;  %v8120_v2 = vld [vmem:[#allocation99_spill] sm:$0xff] }
 0x626   :  { %3208 = vmatprep.mubr.bf16.mxu0 %v6935_v51  ;;  %3372 = vmatprep.mubr.bf16.mxu1 %v6935_v51 }
 0x628   :  { %3179 = vmatpush1.bf16.msra.mxu0 %v2940_v41  ;;  %3343 = vmatpush1.bf16.msra.mxu1 %v2942_v62  ;;  %v2998_v41 = vunpack.c.h.s8.bf16 %v8105_v42  ;;  %v8106_v62 = vld [vmem:[#allocation299_spill] sm:$0xff]  ;;  %v8121_v42 = vld [vmem:[#allocation101_spill] sm:$0xff] }
 0x629   :  { %3180 = vmatprep.subr.bf16.mxu0 %v2948_v8  ;;  %3344 = vmatprep.subr.bf16.mxu1 %v2950_v20  ;;  %v3004_v60 = vunpack.c.l.s8.bf16 %v8106_v62  ;;  %v8107_v8 = vld [vmem:[#allocation301_spill] sm:$0xff]  ;;  %v8108_v20 = vld [vmem:[#allocation298_spill] sm:$0xff] }
 0x62a   :  { %v3006_v10 = vunpack.c.l.s8.bf16 %v8107_v8  ;;  %v3003_v30 = vunpack.c.l.s8.bf16 %v8108_v20 }
 0x62c   :  { %3181 = vmatpush1.bf16.msra.mxu0 %v2947_v57  ;;  %3345 = vmatpush1.bf16.msra.mxu1 %v2949_v59  ;;  %v8109_v57 = vld [vmem:[#allocation300_spill] sm:$0xff]  ;;  %v3011_v59 = vunpack.c.h.s8.bf16 %v8106_v62 }
 0x62d   :  { %3182 = vmatprep.subr.bf16.mxu0 %v2955_v23  ;;  %3346 = vmatprep.subr.bf16.mxu1 %v2957_v56  ;;  %v3005_v43 = vunpack.c.l.s8.bf16 %v8109_v57  ;;  %v3013_v23 = vunpack.c.h.s8.bf16 %v8107_v8  ;;  %v3010_v56 = vunpack.c.h.s8.bf16 %v8108_v20 }
 0x630   :  { %3183 = vmatpush1.bf16.msra.mxu0 %v2954_v58  ;;  %3347 = vmatpush1.bf16.msra.mxu1 %v2956_v21  ;;  %v3012_v58 = vunpack.c.h.s8.bf16 %v8109_v57  ;;  %v8110_v21 = vld [vmem:[#allocation306_spill] sm:$0xff] }
 0x631   :  { %3184 = vmatprep.subr.bf16.mxu0 %v2962_v54  ;;  %3348 = vmatprep.subr.bf16.mxu1 %v2964_v13  ;;  %v3018_v19 = vunpack.c.l.s8.bf16 %v8110_v21  ;;  %v8111_v54 = vld [vmem:[#allocation308_spill] sm:$0xff]  ;;  %v8112_v13 = vld [vmem:[#allocation305_spill] sm:$0xff] }
 0x632   :  { %v3020_v18 = vunpack.c.l.s8.bf16 %v8111_v54  ;;  %v3017_v12 = vunpack.c.l.s8.bf16 %v8112_v13 }
 0x634   :  { %3185 = vmatpush1.bf16.msra.mxu0 %v2961_v6  ;;  %3349 = vmatpush1.bf16.msra.mxu1 %v2963_v55  ;;  %v8113_v6 = vld [vmem:[#allocation307_spill] sm:$0xff]  ;;  %v3025_v55 = vunpack.c.h.s8.bf16 %v8110_v21 }
 0x635   :  { %3186 = vmatprep.subr.bf16.mxu0 %v2969_v46  ;;  %3350 = vmatprep.subr.bf16.mxu1 %v2971_v52  ;;  %v3019_v63 = vunpack.c.l.s8.bf16 %v8113_v6  ;;  %v3027_v46 = vunpack.c.h.s8.bf16 %v8111_v54  ;;  %v3024_v52 = vunpack.c.h.s8.bf16 %v8112_v13  ;;  %v8127_v21 = vld [vmem:[#allocation143_spill] sm:$0xff]  ;;  %v8128_v54 = vld [vmem:[#allocation113_spill] sm:$0xff] }
 0x636   :  { %v8129_v13 = vld [vmem:[#allocation115_spill] sm:$0xff] }
 0x638   :  { %3187 = vmatpush1.bf16.msra.mxu0 %v2968_v17  ;;  %3351 = vmatpush1.bf16.msra.mxu1 %v2970_v22  ;;  %v3026_v17 = vunpack.c.h.s8.bf16 %v8113_v6  ;;  %v8114_v22 = vld [vmem:[#allocation313_spill] sm:$0xff] }
 0x639   :  { %3188 = vmatprep.subr.bf16.mxu0 %v2976_v25  ;;  %3352 = vmatprep.subr.bf16.mxu1 %v2978_v24  ;;  %v3032_v31 = vunpack.c.l.s8.bf16 %v8114_v22  ;;  %v8115_v25 = vld [vmem:[#allocation315_spill] sm:$0xff]  ;;  %v8116_v24 = vld [vmem:[#allocation312_spill] sm:$0xff] }
 0x63a   :  { %v3034_v27 = vunpack.c.l.s8.bf16 %v8115_v25  ;;  %v3031_v53 = vunpack.c.l.s8.bf16 %v8116_v24 }
 0x63c   :  { %3189 = vmatpush1.bf16.msra.mxu0 %v2975_v47  ;;  %3353 = vmatpush1.bf16.msra.mxu1 %v2977_v44  ;;  %v8117_v47 = vld [vmem:[#allocation314_spill] sm:$0xff]  ;;  %v3039_v44 = vunpack.c.h.s8.bf16 %v8114_v22 }
 0x63d   :  { %3190 = vmatprep.subr.bf16.mxu0 %v2983_v1  ;;  %3354 = vmatprep.subr.bf16.mxu1 %v2985_v5  ;;  %v3033_v38 = vunpack.c.l.s8.bf16 %v8117_v47  ;;  %v3041_v1 = vunpack.c.h.s8.bf16 %v8115_v25  ;;  %v3038_v5 = vunpack.c.h.s8.bf16 %v8116_v24  ;;  %v8131_v22 = vld [vmem:[#allocation150_spill] sm:$0xff]  ;;  %v8132_v25 = vld [vmem:[#allocation120_spill] sm:$0xff] }
 0x63e   :  { %v8133_v24 = vld [vmem:[#allocation122_spill] sm:$0xff] }
 0x640   :  { %3191 = vmatpush1.bf16.msra.mxu0 %v2982_v37  ;;  %3355 = vmatpush1.bf16.msra.mxu1 %v2984_v3  ;;  %v3040_v37 = vunpack.c.h.s8.bf16 %v8117_v47  ;;  %v8118_v3 = vld [vmem:[#allocation100_spill] sm:$0xff] }
 0x641   :  { %3192 = vmatprep.subr.bf16.mxu0 %v2990_v26  ;;  %3356 = vmatprep.subr.bf16.mxu1 %v2992_v45  ;;  %v2602_v4 = vunpack.c.l.s8.bf16 %v8118_v3  ;;  %v8119_v26 = vld [vmem:[#allocation129_spill] sm:$0xff]  ;;  %v7003_v45 = vpack.c.bf16 %v6695_v33, %v6695_v33  ;;  %v2608_v33 = vunpack.c.h.s8.bf16 %v8120_v2 }
 0x642   :  { %v2659_v34 = vunpack.c.l.s8.bf16 %v8119_v26 }
 0x644   :  { %3193 = vmatpush1.bf16.msra.mxu0 %v2989_v36  ;;  %3357 = vmatpush1.bf16.msra.mxu1 %v2991_v14  ;;  %v2601_v36 = vunpack.c.l.s8.bf16 %v8120_v2  ;;  %v2603_v14 = vunpack.c.l.s8.bf16 %v8121_v42  ;;  %v8137_v2 = vld [vmem:[#allocation157_spill] sm:$0xff] }
 0x645   :  { %3194 = vmatprep.subr.bf16.mxu0 %v2997_v9  ;;  %3358 = vmatprep.subr.bf16.mxu1 %v2999_v11  ;;  %v2609_v9 = vunpack.c.h.s8.bf16 %v8118_v3  ;;  %v2666_v11 = vunpack.c.h.s8.bf16 %v8119_v26  ;;  %v8135_v3 = vld [vmem:[#allocation185_spill] sm:$0xff]  ;;  %v8136_v26 = vld [vmem:[#allocation127_spill] sm:$0xff] }
 0x648   :  { %3195 = vmatpush1.bf16.msra.mxu0 %v2996_v49  ;;  %3359 = vmatpush1.bf16.msra.mxu1 %v2998_v41  ;;  %v2610_v49 = vunpack.c.h.s8.bf16 %v8121_v42  ;;  %v8122_v41 = vld [vmem:[#allocation107_spill] sm:$0xff] }
 0x649   :  { %3196 = vmatprep.subr.bf16.mxu0 %v3004_v60  ;;  %3360 = vmatprep.subr.bf16.mxu1 %v3006_v10  ;;  %v2616_v62 = vunpack.c.l.s8.bf16 %v8122_v41  ;;  %v8123_v60 = vld [vmem:[#allocation136_spill] sm:$0xff]  ;;  %v8124_v10 = vld [vmem:[#allocation106_spill] sm:$0xff] }
 0x64a   :  { %v2673_v8 = vunpack.c.l.s8.bf16 %v8123_v60  ;;  %v2615_v20 = vunpack.c.l.s8.bf16 %v8124_v10 }
 0x64c   :  { %3197 = vmatpush1.bf16.msra.mxu0 %v3003_v30  ;;  %3361 = vmatpush1.bf16.msra.mxu1 %v3005_v43  ;;  %v8125_v30 = vld [vmem:[#allocation108_spill] sm:$0xff]  ;;  %v2623_v43 = vunpack.c.h.s8.bf16 %v8122_v41 }
 0x64d   :  { %3198 = vmatprep.subr.bf16.mxu0 %v3011_v59  ;;  %3362 = vmatprep.subr.bf16.mxu1 %v3013_v23  ;;  %v2617_v57 = vunpack.c.l.s8.bf16 %v8125_v30  ;;  %v2680_v59 = vunpack.c.h.s8.bf16 %v8123_v60  ;;  %v2622_v23 = vunpack.c.h.s8.bf16 %v8124_v10  ;;  %v8139_v41 = vld [vmem:[#allocation192_spill] sm:$0xff]  ;;  %v8140_v60 = vld [vmem:[#allocation134_spill] sm:$0xff] }
 0x64e   :  { %v8141_v10 = vld [vmem:[#allocation164_spill] sm:$0xff] }
 0x650   :  { %3199 = vmatpush1.bf16.msra.mxu0 %v3010_v56  ;;  %3363 = vmatpush1.bf16.msra.mxu1 %v3012_v58  ;;  %v2624_v56 = vunpack.c.h.s8.bf16 %v8125_v30 }
 0x651   :  { %3200 = vmatprep.subr.bf16.mxu0 %v3018_v19  ;;  %3364 = vmatprep.subr.bf16.mxu1 %v3020_v18  ;;  %v2687_v19 = vunpack.c.l.s8.bf16 %v8127_v21  ;;  %v2629_v18 = vunpack.c.l.s8.bf16 %v8128_v54 }
 0x654   :  { %3201 = vmatpush1.bf16.msra.mxu0 %v3017_v12  ;;  %3365 = vmatpush1.bf16.msra.mxu1 %v3019_v63  ;;  %v2631_v12 = vunpack.c.l.s8.bf16 %v8129_v13  ;;  %v2694_v63 = vunpack.c.h.s8.bf16 %v8127_v21  ;;  %v8144_v21 = vld [vmem:[#allocation141_spill] sm:$0xff] }
 0x655   :  { %3202 = vmatprep.subr.bf16.mxu0 %v3025_v55  ;;  %3366 = vmatprep.subr.bf16.mxu1 %v3027_v46  ;;  %v2636_v55 = vunpack.c.h.s8.bf16 %v8128_v54  ;;  %v2638_v46 = vunpack.c.h.s8.bf16 %v8129_v13  ;;  %v8145_v54 = vld [vmem:[#allocation171_spill] sm:$0xff] }
 0x658   :  { %3203 = vmatpush1.bf16.msra.mxu0 %v3024_v52  ;;  %3367 = vmatpush1.bf16.msra.mxu1 %v3026_v17  ;;  %v8130_v52 = vld [vmem:[#allocation121_spill] sm:$0xff] }
 0x659   :  { %3204 = vmatprep.subr.bf16.mxu0 %v3032_v31  ;;  %3368 = vmatprep.subr.bf16.mxu1 %v3034_v27  ;;  %v2644_v17 = vunpack.c.l.s8.bf16 %v8130_v52  ;;  %v2701_v31 = vunpack.c.l.s8.bf16 %v8131_v22  ;;  %v2643_v27 = vunpack.c.l.s8.bf16 %v8132_v25  ;;  %v2651_v47 = vunpack.c.h.s8.bf16 %v8130_v52  ;;  %v8147_v52 = vld [vmem:[#allocation206_spill] sm:$0xff] }
 0x65c   :  { %3205 = vmatpush1.bf16.msra.mxu0 %v3031_v53  ;;  %3369 = vmatpush1.bf16.msra.mxu1 %v3033_v38  ;;  %v2645_v53 = vunpack.c.l.s8.bf16 %v8133_v24  ;;  %v2708_v38 = vunpack.c.h.s8.bf16 %v8131_v22  ;;  %v8148_v22 = vld [vmem:[#allocation148_spill] sm:$0xff] }
 0x65d   :  { %3206 = vmatprep.subr.bf16.mxu0 %v3039_v44  ;;  %3370 = vmatprep.subr.bf16.mxu1 %v3041_v1  ;;  %v2650_v44 = vunpack.c.h.s8.bf16 %v8132_v25  ;;  %v2652_v1 = vunpack.c.h.s8.bf16 %v8133_v24  ;;  %v8149_v25 = vld [vmem:[#allocation178_spill] sm:$0xff] }
 0x660   :  { %3207 = vmatpush1.bf16.msra.mxu0 %v3038_v5  ;;  %3371 = vmatpush1.bf16.msra.mxu1 %v3040_v37  ;;  %v8134_v5 = vld [vmem:[#allocation128_spill] sm:$0xff] }
 0x661   :  { %3381 = vmatprep.subr.bf16.mxu0 %v2602_v4  ;;  %3955 = vmatprep.subr.bf16.mxu1 %v2659_v34  ;;  %v2658_v37 = vunpack.c.l.s8.bf16 %v8134_v5  ;;  %v2771_v4 = vunpack.c.l.s8.bf16 %v8135_v3  ;;  %v2657_v34 = vunpack.c.l.s8.bf16 %v8136_v26  ;;  %v2665_v42 = vunpack.c.h.s8.bf16 %v8134_v5  ;;  %v8151_v5 = vld [vmem:[#allocation241_spill] sm:$0xff] }
 0x663   :  { %3209 = vmatmul.mubr.bf16.vlgmr.msra.gmra.mrb[12].mxu0 %v7003_v45  ;;  %3373 = vmatmul.mubr.bf16.vlgmr.msra.gmra.mrb[20].mxu1 %v7003_v45 }
 0x664   :  { %3382 = vmatpush1.bf16.msra.mxu0 %v2601_v36  ;;  %3956 = vmatpush3.bf16.msra.mxu1 %v2603_v14  ;;  %v2715_v36 = vunpack.c.l.s8.bf16 %v8137_v2  ;;  %v2778_v14 = vunpack.c.h.s8.bf16 %v8135_v3  ;;  %v8152_v3 = vld [vmem:[#allocation155_spill] sm:$0xff] }
 0x665   :  { %3383 = vmatprep.subr.bf16.mxu0 %v2609_v9  ;;  %3957 = vmatprep.subr.bf16.mxu1 %v2666_v11  ;;  %v2664_v9 = vunpack.c.h.s8.bf16 %v8136_v26  ;;  %v2722_v11 = vunpack.c.h.s8.bf16 %v8137_v2  ;;  %v8153_v26 = vld [vmem:[#allocation213_spill] sm:$0xff] }
 0x666   :  { %3413 = vmatprep.mubr.bf16.mxu0 %v6725_v28  ;;  %3577 = vmatprep.mubr.bf16.mxu1 %v6725_v28  ;;  %v8126_v28 = vld [vmem:[#allocation114_spill] sm:$0xff] }
 0x667   :  { %v2630_v58 = vunpack.c.l.s8.bf16 %v8126_v28  ;;  %v2637_v6 = vunpack.c.h.s8.bf16 %v8126_v28  ;;  %v8143_v28 = vld [vmem:[#allocation199_spill] sm:$0xff] }
 0x668   :  { %3384 = vmatpush1.bf16.msra.mxu0 %v2608_v33  ;;  %3958 = vmatpush3.bf16.msra.mxu1 %v2610_v49  ;;  %v8138_v33 = vld [vmem:[#allocation135_spill] sm:$0xff] }
 0x669   :  { %3385 = vmatprep.subr.bf16.mxu0 %v2616_v62  ;;  %3959 = vmatprep.subr.bf16.mxu1 %v2673_v8  ;;  %v2672_v49 = vunpack.c.l.s8.bf16 %v8138_v33  ;;  %v2785_v62 = vunpack.c.l.s8.bf16 %v8139_v41  ;;  %v2671_v8 = vunpack.c.l.s8.bf16 %v8140_v60  ;;  %v2679_v30 = vunpack.c.h.s8.bf16 %v8138_v33  ;;  %v8155_v33 = vld [vmem:[#allocation248_spill] sm:$0xff] }
 0x66c   :  { %3386 = vmatpush1.bf16.msra.mxu0 %v2615_v20  ;;  %3960 = vmatpush3.bf16.msra.mxu1 %v2617_v57  ;;  %v2729_v20 = vunpack.c.l.s8.bf16 %v8141_v10  ;;  %v2792_v57 = vunpack.c.h.s8.bf16 %v8139_v41 }
 0x66d   :  { %3387 = vmatprep.subr.bf16.mxu0 %v2623_v43  ;;  %3961 = vmatprep.subr.bf16.mxu1 %v2680_v59  ;;  %v2678_v43 = vunpack.c.h.s8.bf16 %v8140_v60  ;;  %v2736_v59 = vunpack.c.h.s8.bf16 %v8141_v10  ;;  %v2904_v10 = vunpack.c.h.s8.bf16 %v8155_v33 }
 0x670   :  { %3388 = vmatpush1.bf16.msra.mxu0 %v2622_v23  ;;  %3962 = vmatpush3.bf16.msra.mxu1 %v2624_v56  ;;  %v8142_v23 = vld [vmem:[#allocation142_spill] sm:$0xff] }
 0x671   :  { %3389 = vmatprep.subr.bf16.mxu0 %v2630_v58  ;;  %3963 = vmatprep.subr.bf16.mxu1 %v2687_v19  ;;  %v2686_v56 = vunpack.c.l.s8.bf16 %v8142_v23  ;;  %v2799_v58 = vunpack.c.l.s8.bf16 %v8143_v28  ;;  %v2685_v19 = vunpack.c.l.s8.bf16 %v8144_v21  ;;  %v2693_v13 = vunpack.c.h.s8.bf16 %v8142_v23  ;;  %v8160_v23 = vld [vmem:[#allocation169_spill] sm:$0xff] }
 0x674   :  { %3390 = vmatpush1.bf16.msra.mxu0 %v2629_v18  ;;  %3964 = vmatpush3.bf16.msra.mxu1 %v2631_v12  ;;  %v2743_v18 = vunpack.c.l.s8.bf16 %v8145_v54  ;;  %v2806_v12 = vunpack.c.h.s8.bf16 %v8143_v28  ;;  %v8161_v28 = vld [vmem:[#allocation227_spill] sm:$0xff] }
 0x675   :  { %3391 = vmatprep.subr.bf16.mxu0 %v2637_v6  ;;  %3965 = vmatprep.subr.bf16.mxu1 %v2694_v63  ;;  %v2692_v6 = vunpack.c.h.s8.bf16 %v8144_v21  ;;  %v2750_v63 = vunpack.c.h.s8.bf16 %v8145_v54  ;;  %v2748_v54 = vunpack.c.h.s8.bf16 %v8160_v23 }
 0x678   :  { %3392 = vmatpush1.bf16.msra.mxu0 %v2636_v55  ;;  %3966 = vmatpush3.bf16.msra.mxu1 %v2638_v46  ;;  %v8146_v55 = vld [vmem:[#allocation149_spill] sm:$0xff] }
 0x679   :  { %3393 = vmatprep.subr.bf16.mxu0 %v2644_v17  ;;  %3967 = vmatprep.subr.bf16.mxu1 %v2701_v31  ;;  %v2700_v46 = vunpack.c.l.s8.bf16 %v8146_v55  ;;  %v2813_v17 = vunpack.c.l.s8.bf16 %v8147_v52  ;;  %v2699_v31 = vunpack.c.l.s8.bf16 %v8148_v22  ;;  %v2707_v24 = vunpack.c.h.s8.bf16 %v8146_v55  ;;  %v8164_v55 = vld [vmem:[#allocation176_spill] sm:$0xff] }
 0x67c   :  { %3394 = vmatpush1.bf16.msra.mxu0 %v2643_v27  ;;  %3968 = vmatpush3.bf16.msra.mxu1 %v2645_v53  ;;  %v2757_v27 = vunpack.c.l.s8.bf16 %v8149_v25  ;;  %v2820_v53 = vunpack.c.h.s8.bf16 %v8147_v52  ;;  %v8165_v52 = vld [vmem:[#allocation234_spill] sm:$0xff] }
 0x67d   :  { %3395 = vmatprep.subr.bf16.mxu0 %v2651_v47  ;;  %3969 = vmatprep.subr.bf16.mxu1 %v2708_v38  ;;  %v2706_v47 = vunpack.c.h.s8.bf16 %v8148_v22  ;;  %v2764_v38 = vunpack.c.h.s8.bf16 %v8149_v25  ;;  %v2762_v25 = vunpack.c.h.s8.bf16 %v8164_v55 }
 0x680   :  { %3396 = vmatpush1.bf16.msra.mxu0 %v2650_v44  ;;  %3970 = vmatpush3.bf16.msra.mxu1 %v2652_v1  ;;  %v8150_v44 = vld [vmem:[#allocation156_spill] sm:$0xff] }
 0x681   :  { %3397 = vmatprep.subr.bf16.mxu0 %v2658_v37  ;;  %3977 = vmatprep.subr.bf16.mxu1 %v2771_v4  ;;  %v2714_v1 = vunpack.c.l.s8.bf16 %v8150_v44  ;;  %v2883_v37 = vunpack.c.l.s8.bf16 %v8151_v5  ;;  %v2713_v4 = vunpack.c.l.s8.bf16 %v8152_v3  ;;  %v2721_v2 = vunpack.c.h.s8.bf16 %v8150_v44  ;;  %v8168_v44 = vld [vmem:[#allocation183_spill] sm:$0xff] }
 0x683   :  { %3578 = vmatmul.mubr.bf16.vlgmr.msra.gmra.mrb[24].mxu1 %v6775_v15 }
 0x684   :  { %3398 = vmatpush1.bf16.msra.mxu0 %v2657_v34  ;;  %3978 = vmatpush3.bf16.msra.mxu1 %v2715_v36  ;;  %v2827_v34 = vunpack.c.l.s8.bf16 %v8153_v26  ;;  %v2890_v36 = vunpack.c.h.s8.bf16 %v8151_v5  ;;  %v8169_v5 = vld [vmem:[#allocation269_spill] sm:$0xff] }
 0x685   :  { %3399 = vmatprep.subr.bf16.mxu0 %v2665_v42  ;;  %3979 = vmatprep.subr.bf16.mxu1 %v2778_v14  ;;  %v2720_v42 = vunpack.c.h.s8.bf16 %v8152_v3  ;;  %v2834_v14 = vunpack.c.h.s8.bf16 %v8153_v26  ;;  %v2776_v26 = vunpack.c.h.s8.bf16 %v8168_v44 }
 0x686   :  { %3617 = vmatprep.mubr.bf16.mxu1 %v6783_v50 }
 0x688   :  { %3400 = vmatpush1.bf16.msra.mxu0 %v2664_v9  ;;  %3980 = vmatpush3.bf16.msra.mxu1 %v2722_v11  ;;  %v8154_v9 = vld [vmem:[#allocation163_spill] sm:$0xff] }
 0x689   :  { %3401 = vmatprep.subr.bf16.mxu0 %v2672_v49  ;;  %3981 = vmatprep.subr.bf16.mxu1 %v2785_v62  ;;  %v2728_v11 = vunpack.c.l.s8.bf16 %v8154_v9  ;;  %v2897_v49 = vunpack.c.l.s8.bf16 %v8155_v33  ;;  %v8157_v62 = vld [vmem:[#allocation220_spill] sm:$0xff] }
 0x68a   :  { %v2841_v60 = vunpack.c.l.s8.bf16 %v8157_v62  ;;  %v8173_v33 = vld [vmem:[#allocation276_spill] sm:$0xff] }
 0x68c   :  { %3402 = vmatpush1.bf16.msra.mxu0 %v2671_v8  ;;  %3982 = vmatpush3.bf16.msra.mxu1 %v2729_v20  ;;  %v2735_v8 = vunpack.c.h.s8.bf16 %v8154_v9  ;;  %v8172_v9 = vld [vmem:[#allocation190_spill] sm:$0xff] }
 0x68d   :  { %3403 = vmatprep.subr.bf16.mxu0 %v2679_v30  ;;  %3983 = vmatprep.subr.bf16.mxu1 %v2792_v57  ;;  %v8158_v30 = vld [vmem:[#allocation170_spill] sm:$0xff] }
 0x68e   :  { %v2742_v57 = vunpack.c.l.s8.bf16 %v8158_v30  ;;  %v2749_v21 = vunpack.c.h.s8.bf16 %v8158_v30  ;;  %v8176_v30 = vld [vmem:[#allocation197_spill] sm:$0xff] }
 0x690   :  { %3404 = vmatpush1.bf16.msra.mxu0 %v2678_v43  ;;  %3984 = vmatpush3.bf16.msra.mxu1 %v2736_v59  ;;  %v8159_v43 = vld [vmem:[#allocation255_spill] sm:$0xff] }
 0x691   :  { %3405 = vmatprep.subr.bf16.mxu0 %v2686_v56  ;;  %3985 = vmatprep.subr.bf16.mxu1 %v2799_v58  ;;  %v2911_v59 = vunpack.c.l.s8.bf16 %v8159_v43  ;;  %v2741_v56 = vunpack.c.l.s8.bf16 %v8160_v23  ;;  %v2855_v58 = vunpack.c.l.s8.bf16 %v8161_v28 }
 0x694   :  { %3406 = vmatpush1.bf16.msra.mxu0 %v2685_v19  ;;  %3986 = vmatpush3.bf16.msra.mxu1 %v2743_v18  ;;  %v2918_v19 = vunpack.c.h.s8.bf16 %v8159_v43  ;;  %v2862_v18 = vunpack.c.h.s8.bf16 %v8161_v28  ;;  %v8177_v43 = vld [vmem:[#allocation283_spill] sm:$0xff]  ;;  %v2804_v28 = vunpack.c.h.s8.bf16 %v8176_v30 }
 0x695   :  { %3407 = vmatprep.subr.bf16.mxu0 %v2693_v13  ;;  %3987 = vmatprep.subr.bf16.mxu1 %v2806_v12  ;;  %v8162_v13 = vld [vmem:[#allocation177_spill] sm:$0xff] }
 0x696   :  { %v2756_v12 = vunpack.c.l.s8.bf16 %v8162_v13  ;;  %v2763_v22 = vunpack.c.h.s8.bf16 %v8162_v13  ;;  %v8180_v13 = vld [vmem:[#allocation204_spill] sm:$0xff] }
 0x698   :  { %3408 = vmatpush1.bf16.msra.mxu0 %v2692_v6  ;;  %3988 = vmatpush3.bf16.msra.mxu1 %v2750_v63  ;;  %v8163_v6 = vld [vmem:[#allocation262_spill] sm:$0xff] }
 0x699   :  { %3409 = vmatprep.subr.bf16.mxu0 %v2700_v46  ;;  %3989 = vmatprep.subr.bf16.mxu1 %v2813_v17  ;;  %v2925_v63 = vunpack.c.l.s8.bf16 %v8163_v6  ;;  %v2755_v46 = vunpack.c.l.s8.bf16 %v8164_v55  ;;  %v2869_v17 = vunpack.c.l.s8.bf16 %v8165_v52 }
 0x69c   :  { %3410 = vmatpush1.bf16.msra.mxu0 %v2699_v31  ;;  %3990 = vmatpush3.bf16.msra.mxu1 %v2757_v27  ;;  %v2932_v31 = vunpack.c.h.s8.bf16 %v8163_v6  ;;  %v2876_v27 = vunpack.c.h.s8.bf16 %v8165_v52  ;;  %v8181_v6 = vld [vmem:[#allocation290_spill] sm:$0xff]  ;;  %v2818_v52 = vunpack.c.h.s8.bf16 %v8180_v13 }
 0x69d   :  { %3411 = vmatprep.subr.bf16.mxu0 %v2707_v24  ;;  %3991 = vmatprep.subr.bf16.mxu1 %v2820_v53  ;;  %v8166_v24 = vld [vmem:[#allocation184_spill] sm:$0xff] }
 0x69e   :  { %v2770_v53 = vunpack.c.l.s8.bf16 %v8166_v24  ;;  %v2777_v3 = vunpack.c.h.s8.bf16 %v8166_v24 }
 0x6a0   :  { %3412 = vmatpush1.bf16.msra.mxu0 %v2706_v47  ;;  %3992 = vmatpush3.bf16.msra.mxu1 %v2764_v38  ;;  %v8167_v47 = vld [vmem:[#allocation297_spill] sm:$0xff] }
 0x6a1   :  { %3422 = vmatprep.subr.bf16.mxu0 %v2714_v1  ;;  %3999 = vmatprep.subr.bf16.mxu1 %v2883_v37  ;;  %v2995_v38 = vunpack.c.l.s8.bf16 %v8167_v47  ;;  %v2769_v1 = vunpack.c.l.s8.bf16 %v8168_v44  ;;  %v2939_v37 = vunpack.c.l.s8.bf16 %v8169_v5  ;;  %v8185_v44 = vld [vmem:[#allocation218_spill] sm:$0xff] }
 0x6a3   :  { %3414 = vmatmul.mubr.bf16.vlgmr.msra.gmra.mrb[16].mxu0 %v6775_v15  ;;  %3618 = vmatmul.mubr.bf16.vlgmr.msra.gmra.mrb[28].mxu1 %v6851_v40  ;;  %v8156_v15 = vld [vmem:[#allocation162_spill] sm:$0xff] }
 0x6a4   :  { %3423 = vmatpush1.bf16.msra.mxu0 %v2713_v4  ;;  %4000 = vmatpush3.bf16.msra.mxu1 %v2827_v34  ;;  %v2727_v41 = vunpack.c.l.s8.bf16 %v8156_v15  ;;  %v2734_v20 = vunpack.c.h.s8.bf16 %v8156_v15  ;;  %v3002_v4 = vunpack.c.h.s8.bf16 %v8167_v47  ;;  %v2946_v34 = vunpack.c.h.s8.bf16 %v8169_v5  ;;  %v8184_v47 = vld [vmem:[#allocation219_spill] sm:$0xff] }
 0x6a5   :  { %3424 = vmatprep.subr.bf16.mxu0 %v2721_v2  ;;  %4001 = vmatprep.subr.bf16.mxu1 %v2890_v36  ;;  %v8170_v2 = vld [vmem:[#allocation191_spill] sm:$0xff]  ;;  %v2847_v5 = vunpack.c.h.s8.bf16 %v8184_v47 }
 0x6a6   :  { %3454 = vmatprep.mubr.bf16.mxu0 %v6783_v50  ;;  %3657 = vmatprep.mubr.bf16.mxu1 %v6859_v48  ;;  %v2848_v50 = vunpack.c.h.s8.bf16 %v8157_v62  ;;  %v2784_v36 = vunpack.c.l.s8.bf16 %v8170_v2  ;;  %v2791_v15 = vunpack.c.h.s8.bf16 %v8170_v2  ;;  %v2790_v62 = vunpack.c.h.s8.bf16 %v8172_v9  ;;  %v8188_v2 = vld [vmem:[#allocation233_spill] sm:$0xff] }
 0x6a8   :  { %3425 = vmatpush1.bf16.msra.mxu0 %v2720_v42  ;;  %4002 = vmatpush3.bf16.msra.mxu1 %v2834_v14  ;;  %v8171_v42 = vld [vmem:[#allocation304_spill] sm:$0xff] }
 0x6a9   :  { %3426 = vmatprep.subr.bf16.mxu0 %v2728_v11  ;;  %4003 = vmatprep.subr.bf16.mxu1 %v2897_v49  ;;  %v3009_v14 = vunpack.c.l.s8.bf16 %v8171_v42  ;;  %v2783_v11 = vunpack.c.l.s8.bf16 %v8172_v9  ;;  %v2953_v49 = vunpack.c.l.s8.bf16 %v8173_v33  ;;  %v2875_v9 = vunpack.c.h.s8.bf16 %v8188_v2 }
 0x6ac   :  { %3427 = vmatpush1.bf16.msra.mxu0 %v2727_v41  ;;  %4004 = vmatpush3.bf16.msra.mxu1 %v2841_v60  ;;  %v3016_v41 = vunpack.c.h.s8.bf16 %v8171_v42  ;;  %v2960_v60 = vunpack.c.h.s8.bf16 %v8173_v33  ;;  %v8189_v42 = vld [vmem:[#allocation232_spill] sm:$0xff] }
 0x6ad   :  { %3428 = vmatprep.subr.bf16.mxu0 %v2735_v8  ;;  %4005 = vmatprep.subr.bf16.mxu1 %v2904_v10  ;;  %v8174_v8 = vld [vmem:[#allocation198_spill] sm:$0xff]  ;;  %v8190_v33 = vld [vmem:[#allocation240_spill] sm:$0xff] }
 0x6ae   :  { %v2798_v10 = vunpack.c.l.s8.bf16 %v8174_v8  ;;  %v2805_v23 = vunpack.c.h.s8.bf16 %v8174_v8  ;;  %v8192_v8 = vld [vmem:[#allocation247_spill] sm:$0xff] }
 0x6b0   :  { %3429 = vmatpush1.bf16.msra.mxu0 %v2734_v20  ;;  %4006 = vmatpush3.bf16.msra.mxu1 %v2848_v50  ;;  %v8175_v20 = vld [vmem:[#allocation311_spill] sm:$0xff] }
 0x6b1   :  { %3430 = vmatprep.subr.bf16.mxu0 %v2742_v57  ;;  %4007 = vmatprep.subr.bf16.mxu1 %v2911_v59  ;;  %v3023_v50 = vunpack.c.l.s8.bf16 %v8175_v20  ;;  %v2797_v57 = vunpack.c.l.s8.bf16 %v8176_v30  ;;  %v2967_v59 = vunpack.c.l.s8.bf16 %v8177_v43  ;;  %v2903_v30 = vunpack.c.h.s8.bf16 %v8192_v8 }
 0x6b4   :  { %3431 = vmatpush1.bf16.msra.mxu0 %v2741_v56  ;;  %4008 = vmatpush3.bf16.msra.mxu1 %v2855_v58  ;;  %v3030_v56 = vunpack.c.h.s8.bf16 %v8175_v20  ;;  %v2974_v58 = vunpack.c.h.s8.bf16 %v8177_v43  ;;  %v8193_v20 = vld [vmem:[#allocation246_spill] sm:$0xff] }
 0x6b5   :  { %3432 = vmatprep.subr.bf16.mxu0 %v2749_v21  ;;  %4009 = vmatprep.subr.bf16.mxu1 %v2918_v19  ;;  %v8178_v21 = vld [vmem:[#allocation205_spill] sm:$0xff]  ;;  %v8194_v43 = vld [vmem:[#allocation254_spill] sm:$0xff] }
 0x6b6   :  { %v2812_v19 = vunpack.c.l.s8.bf16 %v8178_v21  ;;  %v2819_v55 = vunpack.c.h.s8.bf16 %v8178_v21  ;;  %v8196_v21 = vld [vmem:[#allocation261_spill] sm:$0xff] }
 0x6b8   :  { %3433 = vmatpush1.bf16.msra.mxu0 %v2748_v54  ;;  %4010 = vmatpush3.bf16.msra.mxu1 %v2862_v18  ;;  %v8179_v54 = vld [vmem:[#allocation318_spill] sm:$0xff] }
 0x6b9   :  { %3434 = vmatprep.subr.bf16.mxu0 %v2756_v12  ;;  %4011 = vmatprep.subr.bf16.mxu1 %v2925_v63  ;;  %v3037_v18 = vunpack.c.l.s8.bf16 %v8179_v54  ;;  %v2811_v12 = vunpack.c.l.s8.bf16 %v8180_v13  ;;  %v2981_v63 = vunpack.c.l.s8.bf16 %v8181_v6  ;;  %v2931_v13 = vunpack.c.h.s8.bf16 %v8196_v21 }
 0x6bc   :  { %3435 = vmatpush1.bf16.msra.mxu0 %v2755_v46  ;;  %4012 = vmatpush3.bf16.msra.mxu1 %v2869_v17  ;;  %v3044_v46 = vunpack.c.h.s8.bf16 %v8179_v54  ;;  %v2988_v17 = vunpack.c.h.s8.bf16 %v8181_v6  ;;  %v8197_v54 = vld [vmem:[#allocation260_spill] sm:$0xff] }
 0x6bd   :  { %3436 = vmatprep.subr.bf16.mxu0 %v2763_v22  ;;  %4013 = vmatprep.subr.bf16.mxu1 %v2932_v31  ;;  %v8182_v22 = vld [vmem:[#allocation212_spill] sm:$0xff] }
 0x6be   :  { %v2826_v31 = vunpack.c.l.s8.bf16 %v8182_v22  ;;  %v2833_v24 = vunpack.c.h.s8.bf16 %v8182_v22  ;;  %v8198_v6 = vld [vmem:[#allocation268_spill] sm:$0xff]  ;;  %v8200_v22 = vld [vmem:[#allocation275_spill] sm:$0xff] }
 0x6c0   :  { %3437 = vmatpush1.bf16.msra.mxu0 %v2762_v25  ;;  %4014 = vmatpush3.bf16.msra.mxu1 %v2876_v27  ;;  %v8183_v25 = vld [vmem:[#allocation211_spill] sm:$0xff] }
 0x6c1   :  { %3438 = vmatprep.subr.bf16.mxu0 %v2770_v53  ;;  %4021 = vmatprep.subr.bf16.mxu1 %v2995_v38  ;;  %v2825_v27 = vunpack.c.l.s8.bf16 %v8183_v25  ;;  %v2832_v53 = vunpack.c.h.s8.bf16 %v8183_v25  ;;  %v2840_v38 = vunpack.c.l.s8.bf16 %v8184_v47  ;;  %v8201_v25 = vld [vmem:[#allocation274_spill] sm:$0xff] }
 0x6c2   :  { %v8202_v47 = vld [vmem:[#allocation282_spill] sm:$0xff] }
 0x6c3   :  { %3658 = vmatmul.mubr.bf16.vlgmr.msra.gmra.mrb[32].mxu1 %v6927_v39 }
 0x6c4   :  { %3439 = vmatpush1.bf16.msra.mxu0 %v2769_v1  ;;  %4022 = vmatpush3.bf16.msra.mxu1 %v2939_v37  ;;  %v2839_v1 = vunpack.c.l.s8.bf16 %v8185_v44  ;;  %v2846_v37 = vunpack.c.h.s8.bf16 %v8185_v44  ;;  %v3948_v44 = vld [vmem:[%s7275_s6 + $0x4] ss:$8 sm:$0xf] }
 0x6c5   :  { %3440 = vmatprep.subr.bf16.mxu0 %v2777_v3  ;;  %4023 = vmatprep.subr.bf16.mxu1 %v3002_v4  ;;  %v8187_v4 = vld [vmem:[#allocation225_spill] sm:$0xff] }
 0x6c6   :  { %3697 = vmatprep.mubr.bf16.mxu1 %v6935_v51 }
 0x6c8   :  { %3441 = vmatpush1.bf16.msra.mxu0 %v2776_v26  ;;  %4024 = vmatpush3.bf16.msra.mxu1 %v2946_v34  ;;  %v2853_v26 = vunpack.c.l.s8.bf16 %v8187_v4  ;;  %v2860_v34 = vunpack.c.h.s8.bf16 %v8187_v4  ;;  %v2973_v4 = vunpack.c.h.s8.bf16 %v8202_v47 }
 0x6c9   :  { %3442 = vmatprep.subr.bf16.mxu0 %v2784_v36  ;;  %4025 = vmatprep.subr.bf16.mxu1 %v3009_v14  ;;  %v2868_v36 = vunpack.c.l.s8.bf16 %v8188_v2  ;;  %v2867_v14 = vunpack.c.l.s8.bf16 %v8189_v42 }
 0x6cc   :  { %3443 = vmatpush1.bf16.msra.mxu0 %v2783_v11  ;;  %4026 = vmatpush3.bf16.msra.mxu1 %v2953_v49  ;;  %v2874_v11 = vunpack.c.h.s8.bf16 %v8189_v42  ;;  %v2882_v49 = vunpack.c.l.s8.bf16 %v8190_v33 }
 0x6cd   :  { %3444 = vmatprep.subr.bf16.mxu0 %v2791_v15  ;;  %4027 = vmatprep.subr.bf16.mxu1 %v3016_v41  ;;  %v8191_v15 = vld [vmem:[#allocation239_spill] sm:$0xff] }
 0x6ce   :  { %v2881_v41 = vunpack.c.l.s8.bf16 %v8191_v15 }
 0x6d0   :  { %3445 = vmatpush1.bf16.msra.mxu0 %v2790_v62  ;;  %4028 = vmatpush3.bf16.msra.mxu1 %v2960_v60  ;;  %v2889_v62 = vunpack.c.h.s8.bf16 %v8190_v33  ;;  %v2888_v60 = vunpack.c.h.s8.bf16 %v8191_v15 }
 0x6d1   :  { %3446 = vmatprep.subr.bf16.mxu0 %v2798_v10  ;;  %4029 = vmatprep.subr.bf16.mxu1 %v3023_v50  ;;  %v2896_v10 = vunpack.c.l.s8.bf16 %v8192_v8  ;;  %v2895_v50 = vunpack.c.l.s8.bf16 %v8193_v20 }
 0x6d4   :  { %3447 = vmatpush1.bf16.msra.mxu0 %v2797_v57  ;;  %4030 = vmatpush3.bf16.msra.mxu1 %v2967_v59  ;;  %v2902_v57 = vunpack.c.h.s8.bf16 %v8193_v20  ;;  %v2910_v59 = vunpack.c.l.s8.bf16 %v8194_v43 }
 0x6d5   :  { %3448 = vmatprep.subr.bf16.mxu0 %v2805_v23  ;;  %4031 = vmatprep.subr.bf16.mxu1 %v3030_v56  ;;  %v8195_v23 = vld [vmem:[#allocation253_spill] sm:$0xff] }
 0x6d6   :  { %v2909_v56 = vunpack.c.l.s8.bf16 %v8195_v23 }
 0x6d8   :  { %3449 = vmatpush1.bf16.msra.mxu0 %v2804_v28  ;;  %4032 = vmatpush3.bf16.msra.mxu1 %v2974_v58  ;;  %v2917_v28 = vunpack.c.h.s8.bf16 %v8194_v43  ;;  %v2916_v58 = vunpack.c.h.s8.bf16 %v8195_v23 }
 0x6d9   :  { %3450 = vmatprep.subr.bf16.mxu0 %v2812_v19  ;;  %4033 = vmatprep.subr.bf16.mxu1 %v3037_v18  ;;  %v2924_v19 = vunpack.c.l.s8.bf16 %v8196_v21  ;;  %v2923_v18 = vunpack.c.l.s8.bf16 %v8197_v54  ;;  %v8206_v21 = vld [vmem:[#allocation296_spill] sm:$0xff] }
 0x6dc   :  { %3451 = vmatpush1.bf16.msra.mxu0 %v2811_v12  ;;  %4034 = vmatpush3.bf16.msra.mxu1 %v2981_v63  ;;  %v2930_v12 = vunpack.c.h.s8.bf16 %v8197_v54  ;;  %v2938_v63 = vunpack.c.l.s8.bf16 %v8198_v6  ;;  %v8207_v54 = vld [vmem:[#allocation295_spill] sm:$0xff] }
 0x6dd   :  { %3452 = vmatprep.subr.bf16.mxu0 %v2819_v55  ;;  %4035 = vmatprep.subr.bf16.mxu1 %v3044_v46  ;;  %v8199_v55 = vld [vmem:[#allocation267_spill] sm:$0xff] }
 0x6de   :  { %v2937_v46 = vunpack.c.l.s8.bf16 %v8199_v55 }
 0x6e0   :  { %3453 = vmatpush1.bf16.msra.mxu0 %v2818_v52  ;;  %4036 = vmatpush3.bf16.msra.mxu1 %v2988_v17  ;;  %v2945_v52 = vunpack.c.h.s8.bf16 %v8198_v6  ;;  %v2944_v17 = vunpack.c.h.s8.bf16 %v8199_v55 }
 0x6e1   :  { %3463 = vmatprep.subr.bf16.mxu0 %v2826_v31  ;;  %v2952_v31 = vunpack.c.l.s8.bf16 %v8200_v22 }
 0x6e3   :  { %3455 = vmatmul.mubr.bf16.vlgmr.msra.gmra.mrb[16].mxu0 %v6851_v40  ;;  %3698 = vmatmul.mubr.bf16.vlgmr.msra.gmra.mrb[36].mxu1 %v7003_v45  ;;  %v8186_v40 = vld [vmem:[#allocation226_spill] sm:$0xff] }
 0x6e4   :  { %3464 = vmatpush1.bf16.msra.mxu0 %v2825_v27  ;;  %3495 = vmatprep.mubr.bf16.mxu0 %v6859_v48  ;;  %v2854_v3 = vunpack.c.l.s8.bf16 %v8186_v40  ;;  %v2861_v48 = vunpack.c.h.s8.bf16 %v8186_v40  ;;  %v2951_v27 = vunpack.c.l.s8.bf16 %v8201_v25 }
 0x6e5   :  { %3465 = vmatprep.subr.bf16.mxu0 %v2833_v24  ;;  %v2959_v24 = vunpack.c.h.s8.bf16 %v8200_v22  ;;  %v8209_v22 = vld [vmem:[#allocation302_spill] sm:$0xff] }
 0x6e8   :  { %3466 = vmatpush1.bf16.msra.mxu0 %v2832_v53  ;;  %v2958_v53 = vunpack.c.h.s8.bf16 %v8201_v25 }
 0x6e9   :  { %3467 = vmatprep.subr.bf16.mxu0 %v2840_v38  ;;  %v2966_v38 = vunpack.c.l.s8.bf16 %v8202_v47 }
 0x6ec   :  { %3468 = vmatpush1.bf16.msra.mxu0 %v2839_v1  ;;  %v3949_v1 = vld [vmem:[%s7275_s6 + $0x4] ss:$8 sm:$0x70] }
 0x6ed   :  { %3469 = vmatprep.subr.bf16.mxu0 %v2847_v5 }
 0x6f0   :  { %3470 = vmatpush1.bf16.msra.mxu0 %v2846_v37  ;;  %v8203_v37 = vld [vmem:[#allocation281_spill] sm:$0xff] }
 0x6f1   :  { %3471 = vmatprep.subr.bf16.mxu0 %v2854_v3  ;;  %v2965_v40 = vunpack.c.l.s8.bf16 %v8203_v37  ;;  %v7204_v3 = vor.u32 %v3949_v1, %v3948_v44  ;;  %v8212_v44 = vld [vmem:[#allocation317_spill] sm:$0xff] }
 0x6f2   :  { %v3036_v1 = vunpack.c.l.s8.bf16 %v8212_v44 }
 0x6f3   :  { %v3760_v42 = vrot.slane %v7204_v3, %v7986_v35  ;;  %v3764_v15 = vrot.slane %v7204_v3, %v7988_v0 }
 0x6f4   :  { %3472 = vmatpush1.bf16.msra.mxu0 %v2853_v26 }
 0x6f5   :  { %3473 = vmatprep.subr.bf16.mxu0 %v2861_v48 }
 0x6f8   :  { %3474 = vmatpush1.bf16.msra.mxu0 %v2860_v34 }
 0x6f9   :  { %3475 = vmatprep.subr.bf16.mxu0 %v2868_v36  ;;  %v2972_v36 = vunpack.c.h.s8.bf16 %v8203_v37 }
 0x6fc   :  { %3476 = vmatpush1.bf16.msra.mxu0 %v2867_v14  ;;  %v3768_v14 = vrot.slane %v7204_v3, %v7987_v32 }
 0x6fd   :  { %3477 = vmatprep.subr.bf16.mxu0 %v2875_v9  ;;  %v8204_v9 = vld [vmem:[#allocation289_spill] sm:$0xff] }
 0x700   :  { %3478 = vmatpush1.bf16.msra.mxu0 %v2874_v11  ;;  %v2980_v11 = vunpack.c.l.s8.bf16 %v8204_v9 }
 0x701   :  { %3479 = vmatprep.subr.bf16.mxu0 %v2882_v49 }
 0x704   :  { %3480 = vmatpush1.bf16.msra.mxu0 %v2881_v41  ;;  %v3772_v41 = vrot.slane %v7204_v3, %v6355_v29 }
 0x705   :  { %3481 = vmatprep.subr.bf16.mxu0 %v2889_v62 }
 0x708   :  { %3482 = vmatpush1.bf16.msra.mxu0 %v2888_v60 }
 0x709   :  { %3483 = vmatprep.subr.bf16.mxu0 %v2896_v10 }
 0x70c   :  { %3484 = vmatpush1.bf16.msra.mxu0 %v2895_v50 }
 0x70d   :  { %3485 = vmatprep.subr.bf16.mxu0 %v2903_v30 }
 0x710   :  { %3486 = vmatpush1.bf16.msra.mxu0 %v2902_v57 }
 0x711   :  { %3487 = vmatprep.subr.bf16.mxu0 %v2910_v59 }
 0x714   :  { %3488 = vmatpush1.bf16.msra.mxu0 %v2909_v56 }
 0x715   :  { %3489 = vmatprep.subr.bf16.mxu0 %v2917_v28 }
 0x718   :  { %3490 = vmatpush1.bf16.msra.mxu0 %v2916_v58 }
 0x719   :  { %3491 = vmatprep.subr.bf16.mxu0 %v2924_v19  ;;  %v2994_v19 = vunpack.c.l.s8.bf16 %v8206_v21 }
 0x71c   :  { %3492 = vmatpush1.bf16.msra.mxu0 %v2923_v18  ;;  %v2993_v18 = vunpack.c.l.s8.bf16 %v8207_v54 }
 0x71d   :  { %3493 = vmatprep.subr.bf16.mxu0 %v2931_v13  ;;  %v3001_v13 = vunpack.c.h.s8.bf16 %v8206_v21 }
 0x720   :  { %3494 = vmatpush1.bf16.msra.mxu0 %v2930_v12  ;;  %v3000_v12 = vunpack.c.h.s8.bf16 %v8207_v54 }
 0x721   :  { %3504 = vmatprep.subr.bf16.mxu0 %v2938_v63  ;;  %v8208_v63 = vld [vmem:[#allocation303_spill] sm:$0xff] }
 0x722   :  { %v3008_v55 = vunpack.c.l.s8.bf16 %v8208_v63  ;;  %v3015_v25 = vunpack.c.h.s8.bf16 %v8208_v63 }
 0x723   :  { %3496 = vmatmul.mubr.bf16.vlgmr.msra.gmra.mrb[16].mxu0 %v6927_v39  ;;  %v3946_v39 = vld [vmem:[%s7275_s6 + $0x6] ss:$8 sm:$0xf] }
 0x724   :  { %3505 = vmatpush1.bf16.msra.mxu0 %v2937_v46  ;;  %3536 = vmatprep.mubr.bf16.mxu0 %v6935_v51  ;;  %v3947_v51 = vld [vmem:[%s7275_s6 + $0x6] ss:$8 sm:$0x70]  ;;  %s4274_s6 = smov [#allocation5]  }
 0x725   :  { %3506 = vmatprep.subr.bf16.mxu0 %v2945_v52  ;;  %v7201_v5 = vor.u32 %v3947_v51, %v3946_v39  ;;  %v8211_v39 = vld [vmem:[#allocation309_spill] sm:$0xff]  ;;  %s3820_s0 = sshll.u32 %s4274_s6, 4  ;;  %s3821_s0 = int_to_ptr.vmem [resolvable:$true] %s3820_s0 }
 0x726   :  { %v3021_v51 = vunpack.c.l.s8.bf16 %v8211_v39  ;;  %s4243_s12 = scalar_lea.vmem %s3821_s0, 896  ;;  %p4248_p1 = scmp.lt.s32.totalorder %s3821_s0, %s3821_s0 }
 0x727   :  { %v3713_v26 = vrot.slane %v7201_v5, %v7986_v35  ;;  %v3721_v48 = vrot.slane %v7201_v5, %v7987_v32  ;;  %v3717_v34 = vrot.slane %v7201_v5, %v7988_v0  ;;  %v3725_v2 = vrot.slane %v7201_v5, %v6355_v29  ;;  %v8205_v32 = vld [vmem:[#allocation288_spill] sm:$0xff]  ;;  %p4244_p0 = scmp.ne.s32.totalorder %s3821_s0, %s4243_s12  ;;  %p4249_p2 = scmp.lt.s32.totalorder %s4243_s12, %s4243_s12 }
 0x728   :  { %3507 = vmatpush1.bf16.msra.mxu0 %v2944_v17  ;;  %v2979_v57 = vunpack.c.l.s8.bf16 %v8205_v32  ;;  %v2987_v0 = vunpack.c.h.s8.bf16 %v8204_v9  ;;  %v2986_v58 = vunpack.c.h.s8.bf16 %v8205_v32  ;;  %v3737_v32 = vrot.slane %v7201_v5, %v6681_v7 }
 0x729   :  { %3508 = vmatprep.subr.bf16.mxu0 %v2952_v31  ;;  %v3007_v31 = vunpack.c.l.s8.bf16 %v8209_v22  ;;  %p4250_p3 = por %p4249_p2, %p4248_p1 }
 0x72b   :  { %p4251_p4 = pnand %p4250_p3, %p4244_p0 }
 0x72c   :  { %3509 = vmatpush1.bf16.msra.mxu0 %v2951_v27  ;;  %v3014_v27 = vunpack.c.h.s8.bf16 %v8209_v22 }
 0x72d   :  { %3510 = vmatprep.subr.bf16.mxu0 %v2959_v24  ;;  %v8210_v24 = vld [vmem:[#allocation310_spill] sm:$0xff] }
 0x72e   :  { %v3029_v47 = vunpack.c.h.s8.bf16 %v8210_v24 }
 0x730   :  { %3511 = vmatpush1.bf16.msra.mxu0 %v2958_v53  ;;  %v3022_v53 = vunpack.c.l.s8.bf16 %v8210_v24 }
 0x731   :  { %3512 = vmatprep.subr.bf16.mxu0 %v2966_v38  ;;  %v3028_v38 = vunpack.c.h.s8.bf16 %v8211_v39 }
 0x734   :  { %3513 = vmatpush1.bf16.msra.mxu0 %v2965_v40 }
 0x735   :  { %3514 = vmatprep.subr.bf16.mxu0 %v2973_v4  ;;  %v8213_v4 = vld [vmem:[#allocation316_spill] sm:$0xff] }
 0x736   :  { %v3210_v33 = vpop.f32.mrb[12].mxu0  ;;  %v3374_v49 = vpop.f32.mrb[20].mxu1 }
 0x737   :  { %v3745_v62 = vmul.f32 %v3713_v26, %v3210_v33  ;;  %v3747_v60 = vmul.f32 %v3721_v48, %v3374_v49  ;;  %v3212_v8 = vpop.f32.mrb[13].mxu0  ;;  %v3376_v10 = vpop.f32.mrb[21].mxu1  ;;  %v3035_v26 = vunpack.c.l.s8.bf16 %v8213_v4 }
 0x738   :  { %v3746_v20 = vmul.f32 %v3717_v34, %v3212_v8  ;;  %v3748_v35 = vmul.f32 %v3725_v2, %v3376_v10  ;;  %v3214_v50 = vpop.f32.mrb[14].mxu0  ;;  %v3378_v30 = vpop.f32.mrb[22].mxu1  ;;  %3515 = vmatpush1.bf16.msra.mxu0 %v2972_v36  ;;  %v3043_v2 = vunpack.c.h.s8.bf16 %v8212_v44 }
 0x739   :  { %v3792_v43 = vadd.f32 %v3760_v42, %v3745_v62  ;;  %v3794_v59 = vadd.f32 %v3768_v14, %v3747_v60  ;;  %v3215_v23 = vpop.f32.mrb[15].mxu0  ;;  %v3379_v56 = vpop.f32.mrb[23].mxu1  ;;  %3516 = vmatprep.subr.bf16.mxu0 %v2980_v11  ;;  %v3042_v42 = vunpack.c.h.s8.bf16 %v8213_v4 }
 0x73a   :  { %v3793_v28 = vadd.f32 %v3764_v15, %v3746_v20  ;;  %v3795_v29 = vadd.f32 %v3772_v41, %v3748_v35 }
 0x73b   :  { %4229 = vtanh.f32 %v3792_v43 }
 0x73c   :  { %4231 = vtanh.f32 %v3794_v59  ;;  %3517 = vmatpush1.bf16.msra.mxu0 %v2979_v57  ;;  %v3784_v59 = vrot.slane %v7204_v3, %v6681_v7 }
 0x73d   :  { %4233 = vtanh.f32 %v3793_v28  ;;  %3518 = vmatprep.subr.bf16.mxu0 %v2987_v0  ;;  %v3729_v28 = vrot.slane %v7201_v5, %v6678_v61 }
 0x73e   :  { %4235 = vtanh.f32 %v3795_v29  ;;  %v3733_v29 = vrot.slane %v7201_v5, %v6684_v16 }
 0x740   :  { %3519 = vmatpush1.bf16.msra.mxu0 %v2986_v58  ;;  %v3776_v58 = vrot.slane %v7204_v3, %v6678_v61 }
 0x741   :  { %3520 = vmatprep.subr.bf16.mxu0 %v2994_v19  ;;  %v3780_v19 = vrot.slane %v7204_v3, %v6684_v16 }
 0x744   :  { %3521 = vmatpush1.bf16.msra.mxu0 %v2993_v18 }
 0x745   :  { %v4230_v6 = vpop.eup %4229  ;;  %3522 = vmatprep.subr.bf16.mxu0 %v3001_v13 }
 0x746   :  { %v4232_v46 = vpop.eup %4231  ;;  %3806 = vst [vmem:[#allocation5] sm:$0xff] %v4230_v6 }
 0x747   :  { %v4234_v52 = vpop.eup %4233  ;;  %3808 = vst [vmem:[#allocation5 + $0x10] sm:$0xff] %v4232_v46 }
 0x748   :  { %v4236_v17 = vpop.eup %4235  ;;  %3807 = vst [vmem:[#allocation5 + $0x8] sm:$0xff] %v4234_v52  ;;  %3523 = vmatpush1.bf16.msra.mxu0 %v3000_v12 }
 0x749   :  { %3809 = vst [vmem:[#allocation5 + $0x18] sm:$0xff] %v4236_v17  ;;  %3524 = vmatprep.subr.bf16.mxu0 %v3008_v55 }
 0x74c   :  { %3525 = vmatpush1.bf16.msra.mxu0 %v3007_v31 }
 0x74d   :  { %3526 = vmatprep.subr.bf16.mxu0 %v3015_v25 }
 0x750   :  { %3527 = vmatpush1.bf16.msra.mxu0 %v3014_v27 }
 0x751   :  { %3528 = vmatprep.subr.bf16.mxu0 %v3022_v53 }
 0x754   :  { %3529 = vmatpush1.bf16.msra.mxu0 %v3021_v51 }
 0x755   :  { %3530 = vmatprep.subr.bf16.mxu0 %v3029_v47 }
 0x756   :  { %v3971_v37 = vpop.f32.mrb[24].mxu1 }
 0x757   :  { %v3972_v40 = vpop.f32.mrb[25].mxu1 }
 0x758   :  { %3531 = vmatpush1.bf16.msra.mxu0 %v3028_v38  ;;  %v3973_v48 = vadd.f32 %v3972_v40, %v3971_v37  ;;  %v3974_v34 = vpop.f32.mrb[26].mxu1 }
 0x759   :  { %3532 = vmatprep.subr.bf16.mxu0 %v3036_v1  ;;  %v3975_v36 = vpop.f32.mrb[27].mxu1 }
 0x75c   :  { %3533 = vmatpush1.bf16.msra.mxu0 %v3035_v26 }
 0x75d   :  { %3534 = vmatprep.subr.bf16.mxu0 %v3043_v2 }
 0x760   :  { %3535 = vmatpush1.bf16.msra.mxu0 %v3042_v42 }
 0x763   :  { %3537 = vmatmul.mubr.bf16.vlgmr.msra.gmra.mrb[16].mxu0 %v7003_v45 }
 0x776   :  { %v3993_v14 = vpop.f32.mrb[28].mxu1 }
 0x777   :  { %v3994_v9 = vpop.f32.mrb[29].mxu1 }
 0x778   :  { %v3995_v11 = vadd.f32 %v3994_v9, %v3993_v14  ;;  %v3996_v33 = vpop.f32.mrb[30].mxu1 }
 0x779   :  { %v3997_v49 = vpop.f32.mrb[31].mxu1 }
 0x77a   :  { %v3620_v15 = vadd.f32 %v3995_v11, %v3973_v48 }
 0x796   :  { %v4015_v41 = vpop.f32.mrb[32].mxu1 }
 0x797   :  { %v4016_v62 = vpop.f32.mrb[33].mxu1 }
 0x798   :  { %v4017_v60 = vadd.f32 %v4016_v62, %v4015_v41  ;;  %v4018_v8 = vpop.f32.mrb[34].mxu1 }
 0x799   :  { %v4019_v10 = vpop.f32.mrb[35].mxu1 }
 0x79a   :  { %v3660_v20 = vadd.f32 %v4017_v60, %v3620_v15 }
 0x7b6   :  { %v4037_v35 = vpop.f32.mrb[36].mxu1 }
 0x7b7   :  { %v4038_v50 = vpop.f32.mrb[37].mxu1 }
 0x7b8   :  { %v4039_v30 = vadd.f32 %v4038_v50, %v4037_v35  ;;  %v4040_v57 = vpop.f32.mrb[38].mxu1 }
 0x7b9   :  { %v4041_v45 = vpop.f32.mrb[39].mxu1 }
 0x7ba   :  { %v3700_v43 = vadd.f32 %v4039_v30, %v3660_v20 }
 0x7bc   :  { %v3751_v23 = vmul.f32 %v3737_v32, %v3700_v43 }
 0x7be   :  { %v3798_v56 = vadd.f32 %v3784_v59, %v3751_v23 }
 0x7c0   :  { %4237 = vtanh.f32 %v3798_v56 }
 0x7ca   :  { %v4238_v0 = vpop.eup %4237 }
 0x7cb   :  { %3813 = vst.msk [vmem:[#allocation5 + $0x30] sm:$0xff] %vm3812_vm3, %v4238_v0 }
 0x836   :  { %v3538_v21 = vpop.f32.mrb[16].mxu0 }
 0x837   :  { %v3749_v7 = vmul.f32 %v3729_v28, %v3538_v21  ;;  %v3540_v54 = vpop.f32.mrb[17].mxu0 }
 0x838   :  { %v3750_v18 = vmul.f32 %v3733_v29, %v3540_v54  ;;  %v3542_v13 = vpop.f32.mrb[18].mxu0 }
 0x839   :  { %v3796_v12 = vadd.f32 %v3776_v58, %v3749_v7  ;;  %v3543_v6 = vpop.f32.mrb[19].mxu0 }
 0x83a   :  { %v3797_v63 = vadd.f32 %v3780_v19, %v3750_v18 }
 0x83b   :  { %4239 = vtanh.f32 %v3796_v12 }
 0x83c   :  { %4241 = vtanh.f32 %v3797_v63 }
 0x845   :  { %v4240_v55 = vpop.eup %4239 }
 0x846   :  { %v4242_v5 = vpop.eup %4241  ;;  %3810 = vst [vmem:[#allocation5 + $0x20] sm:$0xff] %v4240_v55 }
 0x847   :  { %3811 = vst [vmem:[#allocation5 + $0x28] sm:$0xff] %v4242_v5 }
 0x848   :  { %4254 = shalt.err (!%p4251_p4)
}
 0x849   :  { %s4255_s15 = scalar_lea.hbm %s7276_s7, 896 }
 0x84a   :  { %p4256_p5 = scmp.ne.s32.totalorder %s7276_s7, %s4255_s15  ;;  %p4259_p6 = scmp.lt.u32.totalorder %s4255_s15, %s7276_s7 }
 0x84c   :  { %p4261_p7 = pnand %p4259_p6, %p4256_p5 }
 0x84e   :  { %4264 = shalt.err (!%p4261_p7)
}
 0x84f   :  { %3823 = dma.vmem_to_hbm [thread:$0]  %s3821_s0, 896, %s7276_s7, [#allocation6]  }
 0x850   :  { %4269 = dma.done.wait [#allocation6], 896  }
 0x851   :  { %4270 = vsyncadd [#allocation6], 4294966400 }
 0x852   :  { %3827 = vsyncpa [#allocation6], 1 }
 0x853   :  { %3828 = vsyncmov [#allocation4] }
 0x856   :  { %s3829_s22 = vpop.sfrf %3828 }
 0x857   :  { %p3950_p8 = scmp.ne.s32.totalorder %s3829_s22, 0 }
 0x859   :  { %3833 = shalt.err (%p3950_p8)  }
 0x85a   :  { %3835 = vsyncmov [#allocation4 + $0x1] }
 0x85d   :  { %s3836_s23 = vpop.sfrf %3835 }
 0x85e   :  { %p3951_p9 = scmp.ne.s32.totalorder %s3836_s23, 0 }
 0x860   :  { %3840 = shalt.err (%p3951_p9)  }

</bundles_post_ra>
